<compile_context>
chip_gen: v7x
topology: tpu7x:2x2x1
jax: 0.10.0
libtpu: 0.0.40
codegen_flags: <defaults>
</compile_context>

<pallas_src>
import functools
import math
import numpy as np
import jax
import jax.numpy as jnp
from jax.experimental import pallas as pl
from jax.experimental.pallas import tpu as pltpu

# ---- model config (small demo, consistent with the module's constructor) ----
INPUT_SIZE = 5
K_PAD = 8                 # input features zero-padded 5 -> 8 (sublane aligned)
OUTPUT_SIZE = 10
OUT_PAD = 128             # output lanes zero-padded 10 -> 128 (lane-dense stores)
HIDDEN = 128              # hidden_size (512 default in the module; shrunk for demo)
H2 = HIDDEN // 2
H2_PAD = 128              # feature width zero-padded 64 -> 128 (lane-dense, K=128)
NUM_BLOCKS = 4
BN_EPS = 1e-5
BATCH = 256


# ----------------------------- the fused kernel -----------------------------
def polyroot_kernel(x_ref, w_in_ref, aff_ref, rw1_ref, rw2_ref, w_f_ref, w_o_ref,
                    b_o_ref, o_ref, *, num_splits):
    mm = lambda a, b: jnp.dot(a, b, preferred_element_type=jnp.float32)
    relu = lambda z: jnp.maximum(z, 0.0)
    bf16 = jnp.bfloat16

    tb = x_ref.shape[0]
    rows = tb // num_splits
    row_slices = [slice(p * rows, (p + 1) * rows) for p in range(num_splits)]

    # ---- input layer: Linear(5->H) -> ReLU -> eval-mode BN (post-ReLU affine) ----
    w_in = w_in_ref[...]                       # bf16, read once, shared by sub-tiles
    aff_s = aff_ref[0:1, :]                    # (1, H) f32 BN scale
    aff_t = aff_ref[1:2, :]                    # (1, H) f32 BN shift
    h = [None] * num_splits
    for p in range(num_splits):
        z = relu(mm(x_ref[row_slices[p], :], w_in))        # f32 out of the MXU
        h[p] = z * aff_s + aff_t                           # exact for any BN stats

    # ---- residual blocks (unrolled); BN1/BN2 folded into the second Linear ----
    # Two independent batch sub-tiles are interleaved through the serial matmul
    # chain so one sub-tile's matmul can overlap the other's ReLU/residual work.
    for i in range(NUM_BLOCKS):
        w1 = rw1_ref[i]                        # (H, H) bf16
        w2 = rw2_ref[i]                        # (H, H) bf16, BN1/BN2 folded
        for p in range(num_splits):
            res = h[p]                                     # f32 residual carry
            a = relu(mm(h[p].astype(bf16), w1))            # Linear1 -> ReLU
            y = mm(a.astype(bf16), w2)                     # (BN1->) Linear2 (->BN2)
            h[p] = relu(y + res)                           # residual add + ReLU (f32)

    # ---- feature layers + output layer (BN folded into output Linear) ----
    w_f = w_f_ref[...]
    w_o = w_o_ref[...]
    b_o = b_o_ref[...]
    for p in range(num_splits):
        f = relu(mm(h[p].astype(bf16), w_f))               # Linear(H->H2) -> ReLU
        o_ref[row_slices[p], :] = mm(f.astype(bf16), w_o) + b_o


# ------------------------------- host wrapper --------------------------------
def _tensorcores_per_chip():
    """Best-effort TensorCores-per-chip (v7x = 2, v5e/v6e = 1)."""
    try:
        kind = jax.devices()[0].device_kind.lower()
    except Exception:
        return 1
    return 2 if ("v7" in kind or "7x" in kind) else 1


def _pick_batch_tile(B, num_tc):
    # Single-TC chips: one grid step (no per-step overhead, M=B for the MXU).
    # v7x: one "parallel" grid step per TensorCore so neither core idles.
    if num_tc > 1 and B % num_tc == 0 and (B // num_tc) % 8 == 0:
        return B // num_tc
    return B


def _vmem_limit_bytes(TB, params):
    """Derive a modest VMEM cap from the (double-buffered) working set."""
    weight_bytes = sum(int(np.prod(p.shape)) * p.dtype.itemsize for p in params)
    io_bytes = TB * 128 * 2 + TB * OUT_PAD * 4   # lane-padded x tile + f32 out tile
    return max(8 << 20, 2 * (weight_bytes + io_bytes) + (4 << 20))


def polynomial_root_net(x, kernel_params):
    w_in, aff_in, rw1, rw2, w_f, w_o, b_o = kernel_params
    B = x.shape[0]

    num_tc = _tensorcores_per_chip()
    TB = _pick_batch_tile(B, num_tc)
    assert B % TB == 0
    num_splits = 2 if (TB % 16 == 0 and TB >= 16) else 1

    # zero-pad input features 5 -> 8 and cast to bf16 host-side
    x_pad = jnp.pad(x, ((0, 0), (0, K_PAD - INPUT_SIZE))).astype(jnp.bfloat16)

    def const_spec(shape):
        nd = len(shape)
        return pl.BlockSpec(shape, lambda i, _nd=nd: (0,) * _nd)
    # TODO(synk): at production HIDDEN=512, add pipeline_mode=pl.Buffered(1) to the
    # grid-invariant weight specs (single weight buffer) — negligible at H=128.

    out_pad = pl.pallas_call(
        functools.partial(polyroot_kernel, num_splits=num_splits),
        out_shape=jax.ShapeDtypeStruct((B, OUT_PAD), jnp.float32),
        grid_spec=pltpu.PrefetchScalarGridSpec(
            num_scalar_prefetch=0,
            grid=(B // TB,),
            in_specs=[
                pl.BlockSpec((TB, K_PAD), lambda i: (i, 0)),   # x (bf16, K-padded)
                const_spec(w_in.shape),                        # (8, H)    bf16
                const_spec(aff_in.shape),                      # (2, H)    f32
                const_spec(rw1.shape),                         # (NB, H, H) bf16
                const_spec(rw2.shape),                         # (NB, H, H) bf16
                const_spec(w_f.shape),                         # (H, 128)  bf16
                const_spec(w_o.shape),                         # (128, 128) bf16
                const_spec(b_o.shape),                         # (1, 128)  f32
            ],
            out_specs=pl.BlockSpec((TB, OUT_PAD), lambda i: (i, 0)),
        ),
        compiler_params=pltpu.CompilerParams(
            dimension_semantics=("parallel",),
            vmem_limit_bytes=_vmem_limit_bytes(TB, kernel_params),
        ),
    )(x_pad, w_in, aff_in, rw1, rw2, w_f, w_o, b_o)

    return out_pad[:, :OUTPUT_SIZE]


# ---------------- deterministic parameter construction ----------------
def xavier_normal(key, fan_in, fan_out):
    std = math.sqrt(2.0 / (fan_in + fan_out))
    # stored as (in, out) == PyTorch weight (out, in) transposed
    return jax.random.normal(key, (fan_in, fan_out), jnp.float32) * std


def make_raw_params(key):
    """Un-folded params mirroring the PyTorch module in eval mode."""
    bn_scale = 1.0 / math.sqrt(1.0 + BN_EPS)   # gamma/sqrt(var+eps) with defaults
    ks = iter(jax.random.split(key, 2 * NUM_BLOCKS + 3))

    raw = {}
    raw["w_in"] = xavier_normal(next(ks), INPUT_SIZE, HIDDEN)
    raw["b_in"] = jnp.zeros((HIDDEN,), jnp.float32)
    raw["s_in"] = jnp.full((HIDDEN,), bn_scale, jnp.float32)
    raw["t_in"] = jnp.zeros((HIDDEN,), jnp.float32)

    w1, w2 = [], []
    for _ in range(NUM_BLOCKS):
        w1.append(xavier_normal(next(ks), HIDDEN, HIDDEN))
        w2.append(xavier_normal(next(ks), HIDDEN, HIDDEN))
    raw["w1"] = jnp.stack(w1)
    raw["w2"] = jnp.stack(w2)
    raw["b1"] = jnp.zeros((NUM_BLOCKS, HIDDEN), jnp.float32)
    raw["b2"] = jnp.zeros((NUM_BLOCKS, HIDDEN), jnp.float32)
    raw["s1"] = jnp.full((NUM_BLOCKS, HIDDEN), bn_scale, jnp.float32)
    raw["t1"] = jnp.zeros((NUM_BLOCKS, HIDDEN), jnp.float32)
    raw["s2"] = jnp.full((NUM_BLOCKS, HIDDEN), bn_scale, jnp.float32)
    raw["t2"] = jnp.zeros((NUM_BLOCKS, HIDDEN), jnp.float32)

    raw["w_f"] = xavier_normal(next(ks), HIDDEN, H2)
    raw["b_f"] = jnp.zeros((H2,), jnp.float32)
    raw["s_f"] = jnp.full((H2,), bn_scale, jnp.float32)
    raw["t_f"] = jnp.zeros((H2,), jnp.float32)

    raw["w_o"] = xavier_normal(next(ks), H2, OUTPUT_SIZE)
    raw["b_o"] = jnp.zeros((OUTPUT_SIZE,), jnp.float32)
    return raw


def fold_params(raw):
    """Fold eval-mode BN + (zero) biases into the weights; cast weights to bf16."""
    bf16 = jnp.bfloat16

    # Input layer: keep the post-ReLU BN as an explicit (scale, shift) affine so
    # the kernel is exact for arbitrary trained running stats.  Pad K 5 -> 8.
    w_in = jnp.pad(raw["w_in"], ((0, K_PAD - INPUT_SIZE), (0, 0))).astype(bf16)
    aff_in = jnp.stack([raw["s_in"], raw["t_in"]], axis=0)          # (2, H) f32

    # Residual blocks: BN1 folds into Linear2's input side, BN2 into its output
    # side (exact for arbitrary stats with zero biases).
    rw1 = raw["w1"].astype(bf16)
    rw2 = (raw["s1"][:, :, None] * raw["w2"] * raw["s2"][:, None, :]).astype(bf16)

    # Feature-layer BN folds into the output Linear (+ bias), exact for any stats.
    w_f = jnp.pad(raw["w_f"], ((0, 0), (0, H2_PAD - H2))).astype(bf16)
    w_o = raw["s_f"][:, None] * raw["w_o"]
    b_o = raw["t_f"] @ raw["w_o"] + raw["b_o"]

    # Pad feature rows 64 -> 128 and output lanes 10 -> 128 (lane-dense tiles).
    w_o = jnp.pad(w_o, ((0, H2_PAD - H2), (0, OUT_PAD - OUTPUT_SIZE))).astype(bf16)
    b_o = jnp.pad(b_o, (0, OUT_PAD - OUTPUT_SIZE)).reshape(1, OUT_PAD)
    return (w_in, aff_in, rw1, rw2, w_f, w_o, b_o)


# ---------------- plain-JAX reference (un-folded, eval-mode module) ----------------
def reference_forward(x, raw):
    relu = lambda z: jnp.maximum(z, 0.0)
    dot = lambda a, b: jnp.dot(a, b, preferred_element_type=jnp.float32)

    h = relu(dot(x, raw["w_in"]) + raw["b_in"]) * raw["s_in"] + raw["t_in"]
    for i in range(NUM_BLOCKS):
        res = h
        a = relu(dot(h, raw["w1"][i]) + raw["b1"][i]) * raw["s1"][i] + raw["t1"][i]
        y = (dot(a, raw["w2"][i]) + raw["b2"][i]) * raw["s2"][i] + raw["t2"][i]
        h = relu(y + res)
    f = relu(dot(h, raw["w_f"]) + raw["b_f"]) * raw["s_f"] + raw["t_f"]
    return dot(f, raw["w_o"]) + raw["b_o"]


if __name__ == "__main__":
    key = jax.random.PRNGKey(0)
    kx, kp = jax.random.split(key)
    x = jax.random.normal(kx, (BATCH, INPUT_SIZE), jnp.float32)

    raw = make_raw_params(kp)
    kparams = fold_params(raw)

    out = jax.block_until_ready(polynomial_root_net(x, kparams))
    ref = jax.block_until_ready(reference_forward(x, raw))

    # bf16 MXU passes in the kernel vs. default-precision f32 reference -> loose tol.
    np.testing.assert_allclose(np.asarray(out), np.asarray(ref),
                               rtol=2e-2, atol=2e-2)
    assert out.shape == (BATCH, OUTPUT_SIZE)
    print("KERNEL_OK")
</pallas_src>

<mosaic_0001>
module attributes {stable_mosaic.version = 11 : i64} {
  func.func @polyroot_kernel(%arg0: i32, %arg1: memref<256x8xbf16, #tpu.memory_space<vmem>>, %arg2: memref<8x128xbf16, #tpu.memory_space<vmem>>, %arg3: memref<2x128xf32, #tpu.memory_space<vmem>>, %arg4: memref<4x128x128xbf16, #tpu.memory_space<vmem>>, %arg5: memref<4x128x128xbf16, #tpu.memory_space<vmem>>, %arg6: memref<128x128xbf16, #tpu.memory_space<vmem>>, %arg7: memref<128x128xbf16, #tpu.memory_space<vmem>>, %arg8: memref<1x128xf32, #tpu.memory_space<vmem>>, %arg9: memref<256x128xf32, #tpu.memory_space<vmem>>) attributes {dimension_semantics = [#tpu.dimension_semantics<parallel>], iteration_bounds = array<i64: 1>, scalar_prefetch = 0 : i64, scratch_operands = 0 : i64, tpu.core_type = #tpu.core_type<tc>, window_params = [{transform_indices = @transform_0, window_bounds = array<i64: 256, 8>}, {pipeline_mode = #tpu.pipeline_mode<synchronous>, transform_indices = @transform_1, window_bounds = array<i64: 8, 128>}, {pipeline_mode = #tpu.pipeline_mode<synchronous>, transform_indices = @transform_2, window_bounds = array<i64: 2, 128>}, {pipeline_mode = #tpu.pipeline_mode<synchronous>, transform_indices = @transform_3, window_bounds = array<i64: 4, 128, 128>}, {pipeline_mode = #tpu.pipeline_mode<synchronous>, transform_indices = @transform_4, window_bounds = array<i64: 4, 128, 128>}, {pipeline_mode = #tpu.pipeline_mode<synchronous>, transform_indices = @transform_5, window_bounds = array<i64: 128, 128>}, {pipeline_mode = #tpu.pipeline_mode<synchronous>, transform_indices = @transform_6, window_bounds = array<i64: 128, 128>}, {pipeline_mode = #tpu.pipeline_mode<synchronous>, transform_indices = @transform_7, window_bounds = array<i64: 1, 128>}, {transform_indices = @transform_8, window_bounds = array<i64: 256, 128>}]} {
    %c0 = arith.constant 0 : index
    %c0_0 = arith.constant 0 : index
    %0 = vector.load %arg2[%c0, %c0_0] : memref<8x128xbf16, #tpu.memory_space<vmem>>, vector<8x128xbf16>
    %c0_1 = arith.constant 0 : index
    %c0_2 = arith.constant 0 : index
    %1 = vector.load %arg3[%c0_1, %c0_2] : memref<2x128xf32, #tpu.memory_space<vmem>>, vector<1x128xf32>
    %c1 = arith.constant 1 : index
    %c0_3 = arith.constant 0 : index
    %2 = vector.load %arg3[%c1, %c0_3] : memref<2x128xf32, #tpu.memory_space<vmem>>, vector<1x128xf32>
    %c0_4 = arith.constant 0 : index
    %c0_5 = arith.constant 0 : index
    %3 = vector.load %arg1[%c0_4, %c0_5] : memref<256x8xbf16, #tpu.memory_space<vmem>>, vector<128x8xbf16>
    %cst = arith.constant dense<0.000000e+00> : vector<128x128xf32>
    %4 = tpu.matmul %3, %0, %cst {dimension_numbers = #tpu.dot_dimension_numbers<[1], [0], [0], [1], [0, 0, 1, 1], [], []>} : vector<128x8xbf16>, vector<8x128xbf16>, vector<128x128xf32> -> vector<128x128xf32>
    %cst_6 = arith.constant 0.000000e+00 : f32
    %5 = vector.broadcast %cst_6 : f32 to vector<128x128xf32>
    %6 = arith.maximumf %4, %5 : vector<128x128xf32>
    %7 = vector.broadcast %1 : vector<1x128xf32> to vector<128x128xf32>
    %8 = arith.mulf %6, %7 : vector<128x128xf32>
    %9 = vector.broadcast %2 : vector<1x128xf32> to vector<128x128xf32>
    %10 = arith.addf %8, %9 : vector<128x128xf32>
    %c128 = arith.constant 128 : index
    %c0_7 = arith.constant 0 : index
    %11 = vector.load %arg1[%c128, %c0_7] : memref<256x8xbf16, #tpu.memory_space<vmem>>, vector<128x8xbf16>
    %cst_8 = arith.constant dense<0.000000e+00> : vector<128x128xf32>
    %12 = tpu.matmul %11, %0, %cst_8 {dimension_numbers = #tpu.dot_dimension_numbers<[1], [0], [0], [1], [0, 0, 1, 1], [], []>} : vector<128x8xbf16>, vector<8x128xbf16>, vector<128x128xf32> -> vector<128x128xf32>
    %cst_9 = arith.constant 0.000000e+00 : f32
    %13 = vector.broadcast %cst_9 : f32 to vector<128x128xf32>
    %14 = arith.maximumf %12, %13 : vector<128x128xf32>
    %15 = vector.broadcast %1 : vector<1x128xf32> to vector<128x128xf32>
    %16 = arith.mulf %14, %15 : vector<128x128xf32>
    %17 = vector.broadcast %2 : vector<1x128xf32> to vector<128x128xf32>
    %18 = arith.addf %16, %17 : vector<128x128xf32>
    %c0_10 = arith.constant 0 : index
    %c0_11 = arith.constant 0 : index
    %c0_12 = arith.constant 0 : index
    %19 = vector.load %arg4[%c0_10, %c0_11, %c0_12] : memref<4x128x128xbf16, #tpu.memory_space<vmem>>, vector<1x128x128xbf16>
    %20 = vector.shape_cast %19 : vector<1x128x128xbf16> to vector<128x128xbf16>
    %c0_13 = arith.constant 0 : index
    %c0_14 = arith.constant 0 : index
    %c0_15 = arith.constant 0 : index
    %21 = vector.load %arg5[%c0_13, %c0_14, %c0_15] : memref<4x128x128xbf16, #tpu.memory_space<vmem>>, vector<1x128x128xbf16>
    %22 = vector.shape_cast %21 : vector<1x128x128xbf16> to vector<128x128xbf16>
    %23 = arith.truncf %10 : vector<128x128xf32> to vector<128x128xbf16>
    %cst_16 = arith.constant dense<0.000000e+00> : vector<128x128xf32>
    %24 = tpu.matmul %23, %20, %cst_16 {dimension_numbers = #tpu.dot_dimension_numbers<[1], [0], [0], [1], [0, 0, 1, 1], [], []>} : vector<128x128xbf16>, vector<128x128xbf16>, vector<128x128xf32> -> vector<128x128xf32>
    %cst_17 = arith.constant 0.000000e+00 : f32
    %25 = vector.broadcast %cst_17 : f32 to vector<128x128xf32>
    %26 = arith.maximumf %24, %25 : vector<128x128xf32>
    %27 = arith.truncf %26 : vector<128x128xf32> to vector<128x128xbf16>
    %cst_18 = arith.constant dense<0.000000e+00> : vector<128x128xf32>
    %28 = tpu.matmul %27, %22, %cst_18 {dimension_numbers = #tpu.dot_dimension_numbers<[1], [0], [0], [1], [0, 0, 1, 1], [], []>} : vector<128x128xbf16>, vector<128x128xbf16>, vector<128x128xf32> -> vector<128x128xf32>
    %29 = arith.addf %28, %10 : vector<128x128xf32>
    %cst_19 = arith.constant 0.000000e+00 : f32
    %30 = vector.broadcast %cst_19 : f32 to vector<128x128xf32>
    %31 = arith.maximumf %29, %30 : vector<128x128xf32>
    %32 = arith.truncf %18 : vector<128x128xf32> to vector<128x128xbf16>
    %cst_20 = arith.constant dense<0.000000e+00> : vector<128x128xf32>
    %33 = tpu.matmul %32, %20, %cst_20 {dimension_numbers = #tpu.dot_dimension_numbers<[1], [0], [0], [1], [0, 0, 1, 1], [], []>} : vector<128x128xbf16>, vector<128x128xbf16>, vector<128x128xf32> -> vector<128x128xf32>
    %cst_21 = arith.constant 0.000000e+00 : f32
    %34 = vector.broadcast %cst_21 : f32 to vector<128x128xf32>
    %35 = arith.maximumf %33, %34 : vector<128x128xf32>
    %36 = arith.truncf %35 : vector<128x128xf32> to vector<128x128xbf16>
    %cst_22 = arith.constant dense<0.000000e+00> : vector<128x128xf32>
    %37 = tpu.matmul %36, %22, %cst_22 {dimension_numbers = #tpu.dot_dimension_numbers<[1], [0], [0], [1], [0, 0, 1, 1], [], []>} : vector<128x128xbf16>, vector<128x128xbf16>, vector<128x128xf32> -> vector<128x128xf32>
    %38 = arith.addf %37, %18 : vector<128x128xf32>
    %cst_23 = arith.constant 0.000000e+00 : f32
    %39 = vector.broadcast %cst_23 : f32 to vector<128x128xf32>
    %40 = arith.maximumf %38, %39 : vector<128x128xf32>
    %c1_24 = arith.constant 1 : index
    %c0_25 = arith.constant 0 : index
    %c0_26 = arith.constant 0 : index
    %41 = vector.load %arg4[%c1_24, %c0_25, %c0_26] : memref<4x128x128xbf16, #tpu.memory_space<vmem>>, vector<1x128x128xbf16>
    %42 = vector.shape_cast %41 : vector<1x128x128xbf16> to vector<128x128xbf16>
    %c1_27 = arith.constant 1 : index
    %c0_28 = arith.constant 0 : index
    %c0_29 = arith.constant 0 : index
    %43 = vector.load %arg5[%c1_27, %c0_28, %c0_29] : memref<4x128x128xbf16, #tpu.memory_space<vmem>>, vector<1x128x128xbf16>
    %44 = vector.shape_cast %43 : vector<1x128x128xbf16> to vector<128x128xbf16>
    %45 = arith.truncf %31 : vector<128x128xf32> to vector<128x128xbf16>
    %cst_30 = arith.constant dense<0.000000e+00> : vector<128x128xf32>
    %46 = tpu.matmul %45, %42, %cst_30 {dimension_numbers = #tpu.dot_dimension_numbers<[1], [0], [0], [1], [0, 0, 1, 1], [], []>} : vector<128x128xbf16>, vector<128x128xbf16>, vector<128x128xf32> -> vector<128x128xf32>
    %cst_31 = arith.constant 0.000000e+00 : f32
    %47 = vector.broadcast %cst_31 : f32 to vector<128x128xf32>
    %48 = arith.maximumf %46, %47 : vector<128x128xf32>
    %49 = arith.truncf %48 : vector<128x128xf32> to vector<128x128xbf16>
    %cst_32 = arith.constant dense<0.000000e+00> : vector<128x128xf32>
    %50 = tpu.matmul %49, %44, %cst_32 {dimension_numbers = #tpu.dot_dimension_numbers<[1], [0], [0], [1], [0, 0, 1, 1], [], []>} : vector<128x128xbf16>, vector<128x128xbf16>, vector<128x128xf32> -> vector<128x128xf32>
    %51 = arith.addf %50, %31 : vector<128x128xf32>
    %cst_33 = arith.constant 0.000000e+00 : f32
    %52 = vector.broadcast %cst_33 : f32 to vector<128x128xf32>
    %53 = arith.maximumf %51, %52 : vector<128x128xf32>
    %54 = arith.truncf %40 : vector<128x128xf32> to vector<128x128xbf16>
    %cst_34 = arith.constant dense<0.000000e+00> : vector<128x128xf32>
    %55 = tpu.matmul %54, %42, %cst_34 {dimension_numbers = #tpu.dot_dimension_numbers<[1], [0], [0], [1], [0, 0, 1, 1], [], []>} : vector<128x128xbf16>, vector<128x128xbf16>, vector<128x128xf32> -> vector<128x128xf32>
    %cst_35 = arith.constant 0.000000e+00 : f32
    %56 = vector.broadcast %cst_35 : f32 to vector<128x128xf32>
    %57 = arith.maximumf %55, %56 : vector<128x128xf32>
    %58 = arith.truncf %57 : vector<128x128xf32> to vector<128x128xbf16>
    %cst_36 = arith.constant dense<0.000000e+00> : vector<128x128xf32>
    %59 = tpu.matmul %58, %44, %cst_36 {dimension_numbers = #tpu.dot_dimension_numbers<[1], [0], [0], [1], [0, 0, 1, 1], [], []>} : vector<128x128xbf16>, vector<128x128xbf16>, vector<128x128xf32> -> vector<128x128xf32>
    %60 = arith.addf %59, %40 : vector<128x128xf32>
    %cst_37 = arith.constant 0.000000e+00 : f32
    %61 = vector.broadcast %cst_37 : f32 to vector<128x128xf32>
    %62 = arith.maximumf %60, %61 : vector<128x128xf32>
    %c2 = arith.constant 2 : index
    %c0_38 = arith.constant 0 : index
    %c0_39 = arith.constant 0 : index
    %63 = vector.load %arg4[%c2, %c0_38, %c0_39] : memref<4x128x128xbf16, #tpu.memory_space<vmem>>, vector<1x128x128xbf16>
    %64 = vector.shape_cast %63 : vector<1x128x128xbf16> to vector<128x128xbf16>
    %c2_40 = arith.constant 2 : index
    %c0_41 = arith.constant 0 : index
    %c0_42 = arith.constant 0 : index
    %65 = vector.load %arg5[%c2_40, %c0_41, %c0_42] : memref<4x128x128xbf16, #tpu.memory_space<vmem>>, vector<1x128x128xbf16>
    %66 = vector.shape_cast %65 : vector<1x128x128xbf16> to vector<128x128xbf16>
    %67 = arith.truncf %53 : vector<128x128xf32> to vector<128x128xbf16>
    %cst_43 = arith.constant dense<0.000000e+00> : vector<128x128xf32>
    %68 = tpu.matmul %67, %64, %cst_43 {dimension_numbers = #tpu.dot_dimension_numbers<[1], [0], [0], [1], [0, 0, 1, 1], [], []>} : vector<128x128xbf16>, vector<128x128xbf16>, vector<128x128xf32> -> vector<128x128xf32>
    %cst_44 = arith.constant 0.000000e+00 : f32
    %69 = vector.broadcast %cst_44 : f32 to vector<128x128xf32>
    %70 = arith.maximumf %68, %69 : vector<128x128xf32>
    %71 = arith.truncf %70 : vector<128x128xf32> to vector<128x128xbf16>
    %cst_45 = arith.constant dense<0.000000e+00> : vector<128x128xf32>
    %72 = tpu.matmul %71, %66, %cst_45 {dimension_numbers = #tpu.dot_dimension_numbers<[1], [0], [0], [1], [0, 0, 1, 1], [], []>} : vector<128x128xbf16>, vector<128x128xbf16>, vector<128x128xf32> -> vector<128x128xf32>
    %73 = arith.addf %72, %53 : vector<128x128xf32>
    %cst_46 = arith.constant 0.000000e+00 : f32
    %74 = vector.broadcast %cst_46 : f32 to vector<128x128xf32>
    %75 = arith.maximumf %73, %74 : vector<128x128xf32>
    %76 = arith.truncf %62 : vector<128x128xf32> to vector<128x128xbf16>
    %cst_47 = arith.constant dense<0.000000e+00> : vector<128x128xf32>
    %77 = tpu.matmul %76, %64, %cst_47 {dimension_numbers = #tpu.dot_dimension_numbers<[1], [0], [0], [1], [0, 0, 1, 1], [], []>} : vector<128x128xbf16>, vector<128x128xbf16>, vector<128x128xf32> -> vector<128x128xf32>
    %cst_48 = arith.constant 0.000000e+00 : f32
    %78 = vector.broadcast %cst_48 : f32 to vector<128x128xf32>
    %79 = arith.maximumf %77, %78 : vector<128x128xf32>
    %80 = arith.truncf %79 : vector<128x128xf32> to vector<128x128xbf16>
    %cst_49 = arith.constant dense<0.000000e+00> : vector<128x128xf32>
    %81 = tpu.matmul %80, %66, %cst_49 {dimension_numbers = #tpu.dot_dimension_numbers<[1], [0], [0], [1], [0, 0, 1, 1], [], []>} : vector<128x128xbf16>, vector<128x128xbf16>, vector<128x128xf32> -> vector<128x128xf32>
    %82 = arith.addf %81, %62 : vector<128x128xf32>
    %cst_50 = arith.constant 0.000000e+00 : f32
    %83 = vector.broadcast %cst_50 : f32 to vector<128x128xf32>
    %84 = arith.maximumf %82, %83 : vector<128x128xf32>
    %c3 = arith.constant 3 : index
    %c0_51 = arith.constant 0 : index
    %c0_52 = arith.constant 0 : index
    %85 = vector.load %arg4[%c3, %c0_51, %c0_52] : memref<4x128x128xbf16, #tpu.memory_space<vmem>>, vector<1x128x128xbf16>
    %86 = vector.shape_cast %85 : vector<1x128x128xbf16> to vector<128x128xbf16>
    %c3_53 = arith.constant 3 : index
    %c0_54 = arith.constant 0 : index
    %c0_55 = arith.constant 0 : index
    %87 = vector.load %arg5[%c3_53, %c0_54, %c0_55] : memref<4x128x128xbf16, #tpu.memory_space<vmem>>, vector<1x128x128xbf16>
    %88 = vector.shape_cast %87 : vector<1x128x128xbf16> to vector<128x128xbf16>
    %89 = arith.truncf %75 : vector<128x128xf32> to vector<128x128xbf16>
    %cst_56 = arith.constant dense<0.000000e+00> : vector<128x128xf32>
    %90 = tpu.matmul %89, %86, %cst_56 {dimension_numbers = #tpu.dot_dimension_numbers<[1], [0], [0], [1], [0, 0, 1, 1], [], []>} : vector<128x128xbf16>, vector<128x128xbf16>, vector<128x128xf32> -> vector<128x128xf32>
    %cst_57 = arith.constant 0.000000e+00 : f32
    %91 = vector.broadcast %cst_57 : f32 to vector<128x128xf32>
    %92 = arith.maximumf %90, %91 : vector<128x128xf32>
    %93 = arith.truncf %92 : vector<128x128xf32> to vector<128x128xbf16>
    %cst_58 = arith.constant dense<0.000000e+00> : vector<128x128xf32>
    %94 = tpu.matmul %93, %88, %cst_58 {dimension_numbers = #tpu.dot_dimension_numbers<[1], [0], [0], [1], [0, 0, 1, 1], [], []>} : vector<128x128xbf16>, vector<128x128xbf16>, vector<128x128xf32> -> vector<128x128xf32>
    %95 = arith.addf %94, %75 : vector<128x128xf32>
    %cst_59 = arith.constant 0.000000e+00 : f32
    %96 = vector.broadcast %cst_59 : f32 to vector<128x128xf32>
    %97 = arith.maximumf %95, %96 : vector<128x128xf32>
    %98 = arith.truncf %84 : vector<128x128xf32> to vector<128x128xbf16>
    %cst_60 = arith.constant dense<0.000000e+00> : vector<128x128xf32>
    %99 = tpu.matmul %98, %86, %cst_60 {dimension_numbers = #tpu.dot_dimension_numbers<[1], [0], [0], [1], [0, 0, 1, 1], [], []>} : vector<128x128xbf16>, vector<128x128xbf16>, vector<128x128xf32> -> vector<128x128xf32>
    %cst_61 = arith.constant 0.000000e+00 : f32
    %100 = vector.broadcast %cst_61 : f32 to vector<128x128xf32>
    %101 = arith.maximumf %99, %100 : vector<128x128xf32>
    %102 = arith.truncf %101 : vector<128x128xf32> to vector<128x128xbf16>
    %cst_62 = arith.constant dense<0.000000e+00> : vector<128x128xf32>
    %103 = tpu.matmul %102, %88, %cst_62 {dimension_numbers = #tpu.dot_dimension_numbers<[1], [0], [0], [1], [0, 0, 1, 1], [], []>} : vector<128x128xbf16>, vector<128x128xbf16>, vector<128x128xf32> -> vector<128x128xf32>
    %104 = arith.addf %103, %84 : vector<128x128xf32>
    %cst_63 = arith.constant 0.000000e+00 : f32
    %105 = vector.broadcast %cst_63 : f32 to vector<128x128xf32>
    %106 = arith.maximumf %104, %105 : vector<128x128xf32>
    %c0_64 = arith.constant 0 : index
    %c0_65 = arith.constant 0 : index
    %107 = vector.load %arg6[%c0_64, %c0_65] : memref<128x128xbf16, #tpu.memory_space<vmem>>, vector<128x128xbf16>
    %c0_66 = arith.constant 0 : index
    %c0_67 = arith.constant 0 : index
    %108 = vector.load %arg7[%c0_66, %c0_67] : memref<128x128xbf16, #tpu.memory_space<vmem>>, vector<128x128xbf16>
    %c0_68 = arith.constant 0 : index
    %c0_69 = arith.constant 0 : index
    %109 = vector.load %arg8[%c0_68, %c0_69] : memref<1x128xf32, #tpu.memory_space<vmem>>, vector<1x128xf32>
    %110 = arith.truncf %97 : vector<128x128xf32> to vector<128x128xbf16>
    %cst_70 = arith.constant dense<0.000000e+00> : vector<128x128xf32>
    %111 = tpu.matmul %110, %107, %cst_70 {dimension_numbers = #tpu.dot_dimension_numbers<[1], [0], [0], [1], [0, 0, 1, 1], [], []>} : vector<128x128xbf16>, vector<128x128xbf16>, vector<128x128xf32> -> vector<128x128xf32>
    %cst_71 = arith.constant 0.000000e+00 : f32
    %112 = vector.broadcast %cst_71 : f32 to vector<128x128xf32>
    %113 = arith.maximumf %111, %112 : vector<128x128xf32>
    %114 = arith.truncf %113 : vector<128x128xf32> to vector<128x128xbf16>
    %cst_72 = arith.constant dense<0.000000e+00> : vector<128x128xf32>
    %115 = tpu.matmul %114, %108, %cst_72 {dimension_numbers = #tpu.dot_dimension_numbers<[1], [0], [0], [1], [0, 0, 1, 1], [], []>} : vector<128x128xbf16>, vector<128x128xbf16>, vector<128x128xf32> -> vector<128x128xf32>
    %116 = vector.broadcast %109 : vector<1x128xf32> to vector<128x128xf32>
    %117 = arith.addf %115, %116 : vector<128x128xf32>
    %c0_73 = arith.constant 0 : index
    %c0_74 = arith.constant 0 : index
    %118 = vector.load %arg9[%c0_73, %c0_74] : memref<256x128xf32, #tpu.memory_space<vmem>>, vector<128x128xf32>
    tpu.vector_store %arg9[%c0_73, %c0_74], %117 {strides = array<i32>} : memref<256x128xf32, #tpu.memory_space<vmem>>, vector<128x128xf32>,
    %119 = arith.truncf %106 : vector<128x128xf32> to vector<128x128xbf16>
    %cst_75 = arith.constant dense<0.000000e+00> : vector<128x128xf32>
    %120 = tpu.matmul %119, %107, %cst_75 {dimension_numbers = #tpu.dot_dimension_numbers<[1], [0], [0], [1], [0, 0, 1, 1], [], []>} : vector<128x128xbf16>, vector<128x128xbf16>, vector<128x128xf32> -> vector<128x128xf32>
    %cst_76 = arith.constant 0.000000e+00 : f32
    %121 = vector.broadcast %cst_76 : f32 to vector<128x128xf32>
    %122 = arith.maximumf %120, %121 : vector<128x128xf32>
    %123 = arith.truncf %122 : vector<128x128xf32> to vector<128x128xbf16>
    %cst_77 = arith.constant dense<0.000000e+00> : vector<128x128xf32>
    %124 = tpu.matmul %123, %108, %cst_77 {dimension_numbers = #tpu.dot_dimension_numbers<[1], [0], [0], [1], [0, 0, 1, 1], [], []>} : vector<128x128xbf16>, vector<128x128xbf16>, vector<128x128xf32> -> vector<128x128xf32>
    %125 = vector.broadcast %109 : vector<1x128xf32> to vector<128x128xf32>
    %126 = arith.addf %124, %125 : vector<128x128xf32>
    %c128_78 = arith.constant 128 : index
    %c0_79 = arith.constant 0 : index
    %127 = vector.load %arg9[%c128_78, %c0_79] : memref<256x128xf32, #tpu.memory_space<vmem>>, vector<128x128xf32>
    tpu.vector_store %arg9[%c128_78, %c0_79], %126 {strides = array<i32>} : memref<256x128xf32, #tpu.memory_space<vmem>>, vector<128x128xf32>,
    return
  }
  func.func @transform_0(%arg0: i32) -> (i32, i32) {
    %c0_i32 = arith.constant 0 : i32
    %c0_i32_0 = arith.constant 0 : i32
    return %arg0, %c0_i32 : i32, i32
  }
  func.func @transform_1(%arg0: i32) -> (i32, i32) {
    %c0_i32 = arith.constant 0 : i32
    %c0_i32_0 = arith.constant 0 : i32
    %c0_i32_1 = arith.constant 0 : i32
    return %c0_i32, %c0_i32_0 : i32, i32
  }
  func.func @transform_2(%arg0: i32) -> (i32, i32) {
    %c0_i32 = arith.constant 0 : i32
    %c0_i32_0 = arith.constant 0 : i32
    %c0_i32_1 = arith.constant 0 : i32
    return %c0_i32, %c0_i32_0 : i32, i32
  }
  func.func @transform_3(%arg0: i32) -> (i32, i32, i32) {
    %c0_i32 = arith.constant 0 : i32
    %c0_i32_0 = arith.constant 0 : i32
    %c0_i32_1 = arith.constant 0 : i32
    %c0_i32_2 = arith.constant 0 : i32
    return %c0_i32, %c0_i32_0, %c0_i32_1 : i32, i32, i32
  }
  func.func @transform_4(%arg0: i32) -> (i32, i32, i32) {
    %c0_i32 = arith.constant 0 : i32
    %c0_i32_0 = arith.constant 0 : i32
    %c0_i32_1 = arith.constant 0 : i32
    %c0_i32_2 = arith.constant 0 : i32
    return %c0_i32, %c0_i32_0, %c0_i32_1 : i32, i32, i32
  }
  func.func @transform_5(%arg0: i32) -> (i32, i32) {
    %c0_i32 = arith.constant 0 : i32
    %c0_i32_0 = arith.constant 0 : i32
    %c0_i32_1 = arith.constant 0 : i32
    return %c0_i32, %c0_i32_0 : i32, i32
  }
  func.func @transform_6(%arg0: i32) -> (i32, i32) {
    %c0_i32 = arith.constant 0 : i32
    %c0_i32_0 = arith.constant 0 : i32
    %c0_i32_1 = arith.constant 0 : i32
    return %c0_i32, %c0_i32_0 : i32, i32
  }
  func.func @transform_7(%arg0: i32) -> (i32, i32) {
    %c0_i32 = arith.constant 0 : i32
    %c0_i32_0 = arith.constant 0 : i32
    %c0_i32_1 = arith.constant 0 : i32
    return %c0_i32, %c0_i32_0 : i32, i32
  }
  func.func @transform_8(%arg0: i32) -> (i32, i32) {
    %c0_i32 = arith.constant 0 : i32
    %c0_i32_0 = arith.constant 0 : i32
    return %arg0, %c0_i32 : i32, i32
  }
}

</mosaic_0001>

<bundles_post_ra>
// kernel: tpu_custom_call.1
= control target key start
LH: loop header
LB: loop body
LE: loop exit
PB: predicated region body
PF: predicated region fallthrough
CT: control target
= control target key end

     0   :  { %13 = vsyncpa [#allocation3], 0  ;;  %s6543_s0 = inlined_call_operand.vmem [shape: bf16[256,8], index: 0, kind: input, shape index: {}]   ;;  %s6544_s1 = inlined_call_operand.vmem [shape: bf16[8,128], index: 1, kind: input, shape index: {}]   ;;  %s6545_s2 = inlined_call_operand.vmem [shape: f32[2,128], index: 2, kind: input, shape index: {}]   ;;  %s6546_s3 = inlined_call_operand.hbm [shape: bf16[4,128,128], index: 3, kind: input, shape index: {}]   ;;  %s6547_s4 = inlined_call_operand.hbm [shape: bf16[4,128,128], index: 4, kind: input, shape index: {}]   ;;  %s6548_s5 = inlined_call_operand.vmem [shape: bf16[128,128], index: 5, kind: input, shape index: {}]   ;;  %s6549_s6 = inlined_call_operand.vmem [shape: bf16[128,128], index: 6, kind: input, shape index: {}]   ;;  %s6550_s7 = inlined_call_operand.vmem [shape: f32[1,128], index: 7, kind: input, shape index: {}]   ;;  %s6551_s8 = inlined_call_operand.hbm [shape: f32[256,128], index: 8, kind: output, shape index: {}]  }
   0x1   :  { %14 = vsyncpa [#allocation6], 0 }
   0x2   :  { %15 = vsyncpa [#allocation4], 0  ;;  %s4922_s27 = smov [#allocation2]   ;;  %s4850_s9 = scalar_lea.hbm %s6546_s3, 4096 }
   0x3   :  { %s27_s28 = sshll.u32 %s4922_s27, 4  ;;  %p4851_p0 = scmp.ne.s32.totalorder %s6546_s3, %s4850_s9  ;;  %s28_s28 = int_to_ptr.vmem [resolvable:$true] %s27_s28 }
   0x4   :  { %p4854_p1 = scmp.lt.u32.totalorder %s4850_s9, %s6546_s3 }
   0x6   :  { %p4856_p2 = pnand %p4854_p1, %p4851_p0 }
   0x8   :  { %4859 = shalt.err (!%p4856_p2)
}
   0x9   :  { %s4860_s14 = scalar_lea.vmem %s28_s28, 4096  ;;  %p4865_p4 = scmp.lt.s32.totalorder %s28_s28, %s28_s28 }
   0xa   :  { %p4861_p3 = scmp.ne.s32.totalorder %s28_s28, %s4860_s14  ;;  %p4866_p5 = scmp.lt.s32.totalorder %s4860_s14, %s4860_s14 }
   0xc   :  { %p4867_p6 = por %p4866_p5, %p4865_p4 }
   0xe   :  { %p4868_p7 = pnand %p4867_p6, %p4861_p3 }
  0x10   :  { %4871 = shalt.err (!%p4868_p7)
}
  0x11   :  { %s4923_s15 = smov 64   ;;  %s4924_s16 = smov 4  }
  0x12   :  { %33 = dma.hbm_to_vmem [thread:$0]  %s6546_s3, 4096, %s28_s28, [#allocation3], %s4923_s15, %s4923_s15, %s4924_s16  }
  0x13   :  { %s4925_s19 = smov [#allocation5]   ;;  %s4872_s23 = scalar_lea.hbm %s6547_s4, 4096 }
  0x14   :  { %s39_s20 = sshll.u32 %s4925_s19, 4  ;;  %p4873_p8 = scmp.ne.s32.totalorder %s6547_s4, %s4872_s23  ;;  %s40_s20 = int_to_ptr.vmem [resolvable:$true] %s39_s20 }
  0x15   :  { %p4876_p9 = scmp.lt.u32.totalorder %s4872_s23, %s6547_s4 }
  0x17   :  { %p4878_p10 = pnand %p4876_p9, %p4873_p8 }
  0x19   :  { %4881 = shalt.err (!%p4878_p10)
}
  0x1a   :  { %s4882_s29 = scalar_lea.vmem %s40_s20, 4096  ;;  %p4887_p12 = scmp.lt.s32.totalorder %s40_s20, %s40_s20 }
  0x1b   :  { %p4883_p11 = scmp.ne.s32.totalorder %s40_s20, %s4882_s29  ;;  %p4888_p13 = scmp.lt.s32.totalorder %s4882_s29, %s4882_s29 }
  0x1d   :  { %p4889_p0 = por %p4888_p13, %p4887_p12 }
  0x1f   :  { %p4890_p1 = pnand %p4889_p0, %p4883_p11 }
  0x21   :  { %4893 = shalt.err (!%p4890_p1)
}
  0x22   :  { %45 = dma.hbm_to_vmem [thread:$0]  %s6547_s4, 4096, %s40_s20, [#allocation6], %s4923_s15, %s4923_s15, %s4924_s16  }
  0x23   :  { %4916 = dma.done.wait [#allocation3], 4096  }
  0x24   :  { %4917 = vsyncadd [#allocation3], 4294963200 }
  0x25   :  { %4918 = dma.done.wait [#allocation6], 4096  }
  0x26   :  { %4919 = vsyncadd [#allocation6], 4294963200  ;;  %vm143_vm0 = vcmask 1043456   ;;  %vm118_vm1 = vcmask 64512   ;;  %v59_v0 = vld [vmem:[%s6544_s1] sm:$0xf] }
  0x27   :  { %4745 = vmatprep.subr.msk.bf16.mxu0 %vm143_vm0, %v59_v0  ;;  %v145_v1 = vsel %vm143_vm0, %v59_v0, 0  ;;  %v4754_v2 = vld [vmem:[%s6543_s0] sm:$0xff]   ;;  %4746 = vmatprep.subr.msk.bf16.mxu1 %vm143_vm0, %v59_v0  ;;  %v4755_v3 = vld [vmem:[%s6543_s0 + $0x8] sm:$0xff]   ;;  %v4756_v4 = vld [vmem:[%s6543_s0 + $0x10] sm:$0xff]  }
  0x28   :  { %4070 = vmatpush3.bf16.msra.mxu0 %v145_v1  ;;  %4088 = vmatpush3.bf16.msra.mxu1 %v145_v1  ;;  %v4757_v5 = vld [vmem:[%s6543_s0 + $0x18] sm:$0xff]   ;;  %v4758_v6 = vld [vmem:[%s6543_s0 + $0x20] sm:$0xff]   ;;  %v4763_v8 = vld [vmem:[%s6543_s0 + $0x48] sm:$0xff]  }
  0x29   :  { %4071 = vmatprep.mubr.msk.bf16.mxu0 %vm118_vm1, %v4754_v2  ;;  %v4762_v7 = vld [vmem:[%s6543_s0 + $0x40] sm:$0xff]   ;;  %v4764_v9 = vld [vmem:[%s6543_s0 + $0x50] sm:$0xff]   ;;  %v4759_v10 = vld [vmem:[%s6543_s0 + $0x28] sm:$0xff]  }
  0x2a   :  { %4089 = vmatprep.mubr.msk.bf16.mxu1 %vm118_vm1, %v4762_v7  ;;  %v4765_v11 = vld [vmem:[%s6543_s0 + $0x58] sm:$0xff]   ;;  %v4760_v12 = vld [vmem:[%s6543_s0 + $0x30] sm:$0xff]   ;;  %v4766_v13 = vld [vmem:[%s6543_s0 + $0x60] sm:$0xff]  }
  0x2b   :  { %4072 = vmatmul.mubr.msk.bf16.vlgmr.msra.gmra.mrb[0].mxu0 %vm118_vm1, %v4755_v3  ;;  %4090 = vmatmul.mubr.msk.bf16.vlgmr.msra.gmra.mrb[0].mxu1 %vm118_vm1, %v4763_v8  ;;  %v5045_v14 = vld [vmem:[#allocation2] sm:$0xff]   ;;  %v5047_v15 = vld [vmem:[#allocation2 + $0x8] sm:$0xff]   ;;  %v5054_v16 = vld [vmem:[#allocation2 + $0x10] sm:$0xff]  }
  0x2c   :  { %4075 = vmatprep.mubr.msk.bf16.mxu0 %vm118_vm1, %v4756_v4  ;;  %4093 = vmatprep.mubr.msk.bf16.mxu1 %vm118_vm1, %v4764_v9  ;;  %v4767_v17 = vld [vmem:[%s6543_s0 + $0x68] sm:$0xff]   ;;  %v4761_v18 = vld [vmem:[%s6543_s0 + $0x38] sm:$0xff]   ;;  %v4768_v19 = vld [vmem:[%s6543_s0 + $0x70] sm:$0xff]  }
  0x2d   :  { %4105 = vmatprep.subr.bf16.mxu0 %v5045_v14  ;;  %v5068_v20 = vld [vmem:[#allocation2 + $0x18] sm:$0xff]   ;;  %v5071_v21 = vld [vmem:[#allocation2 + $0x20] sm:$0xff]   ;;  %v5085_v23 = vld [vmem:[#allocation2 + $0x28] sm:$0xff]  }
  0x2e   :  { %4106 = vmatpush3.bf16.msra.mxu0 %v5045_v14  ;;  %v4769_v22 = vld [vmem:[%s6543_s0 + $0x78] sm:$0xff]   ;;  %v5089_v24 = vld [vmem:[#allocation2 + $0x30] sm:$0xff]   ;;  %v5098_v26 = vld [vmem:[#allocation5] sm:$0xff]  }
  0x2f   :  { %4107 = vmatprep.subr.bf16.mxu0 %v5047_v15  ;;  %v5093_v25 = vld [vmem:[#allocation2 + $0x38] sm:$0xff]   ;;  %v5100_v27 = vld [vmem:[#allocation5 + $0x8] sm:$0xff]   ;;  %4137 = vmatprep.subr.bf16.mxu1 %v5098_v26  ;;  %v5105_v28 = vld [vmem:[#allocation5 + $0x10] sm:$0xff]  }
  0x30   :  { %4138 = vmatpush3.bf16.msra.mxu1 %v5098_v26  ;;  %v5109_v29 = vld [vmem:[#allocation5 + $0x18] sm:$0xff]   ;;  %v5113_v30 = vld [vmem:[#allocation5 + $0x20] sm:$0xff]   ;;  %v5117_v31 = vld [vmem:[#allocation5 + $0x28] sm:$0xff]  }
  0x31   :  { %4139 = vmatprep.subr.bf16.mxu1 %v5100_v27  ;;  %v5125_v33 = vld [vmem:[%s6545_s2] ss:$0 sm:$0xff]  ;;  %v5131_v42 = vld [vmem:[%s6545_s2 + $0x1] ss:$0 sm:$0xff] }
  0x32   :  { %4108 = vmatpush3.bf16.msra.mxu0 %v5047_v15 }
  0x33   :  { %4076 = vmatmul.mubr.msk.bf16.gmra.mrb[4].mxu0 %vm118_vm1, %v4757_v5  ;;  %4094 = vmatmul.mubr.msk.bf16.gmra.mrb[4].mxu1 %vm118_vm1, %v4765_v11 }
  0x34   :  { %4079 = vmatprep.mubr.msk.bf16.mxu0 %vm118_vm1, %v4758_v6  ;;  %4097 = vmatprep.mubr.msk.bf16.mxu1 %vm118_vm1, %v4766_v13 }
  0x35   :  { %4109 = vmatprep.subr.bf16.mxu0 %v5054_v16  ;;  %4140 = vmatpush3.bf16.msra.mxu1 %v5100_v27 }
  0x36   :  { %4110 = vmatpush3.bf16.msra.mxu0 %v5054_v16  ;;  %4141 = vmatprep.subr.bf16.mxu1 %v5105_v28 }
  0x37   :  { %4111 = vmatprep.subr.bf16.mxu0 %v5068_v20 }
  0x39   :  { %4142 = vmatpush3.bf16.msra.mxu1 %v5105_v28 }
  0x3a   :  { %4112 = vmatpush3.bf16.msra.mxu0 %v5068_v20  ;;  %4143 = vmatprep.subr.bf16.mxu1 %v5109_v29 }
  0x3b   :  { %4080 = vmatmul.mubr.msk.bf16.gmra.mrb[8].mxu0 %vm118_vm1, %v4759_v10  ;;  %4098 = vmatmul.mubr.msk.bf16.gmra.mrb[8].mxu1 %vm118_vm1, %v4767_v17 }
  0x3c   :  { %4083 = vmatprep.mubr.msk.bf16.mxu0 %vm118_vm1, %v4760_v12  ;;  %4101 = vmatprep.mubr.msk.bf16.mxu1 %vm118_vm1, %v4768_v19 }
  0x3d   :  { %4113 = vmatprep.subr.bf16.mxu0 %v5071_v21  ;;  %4144 = vmatpush3.bf16.msra.mxu1 %v5109_v29 }
  0x3e   :  { %4114 = vmatpush3.bf16.msra.mxu0 %v5071_v21  ;;  %4145 = vmatprep.subr.bf16.mxu1 %v5113_v30 }
  0x3f   :  { %4115 = vmatprep.subr.bf16.mxu0 %v5085_v23 }
  0x41   :  { %4146 = vmatpush3.bf16.msra.mxu1 %v5113_v30 }
  0x42   :  { %4116 = vmatpush3.bf16.msra.mxu0 %v5085_v23  ;;  %4147 = vmatprep.subr.bf16.mxu1 %v5117_v31 }
  0x43   :  { %4084 = vmatmul.mubr.msk.bf16.gmra.mrb[12].mxu0 %vm118_vm1, %v4761_v18  ;;  %4102 = vmatmul.mubr.msk.bf16.gmra.mrb[12].mxu1 %vm118_vm1, %v4769_v22 }
  0x44   :  { %4117 = vmatprep.subr.bf16.mxu0 %v5089_v24 }
  0x45   :  { %4148 = vmatpush3.bf16.msra.mxu1 %v5117_v31 }
  0x46   :  { %4118 = vmatpush3.bf16.msra.mxu0 %v5089_v24 }
  0x47   :  { %4119 = vmatprep.subr.bf16.mxu0 %v5093_v25 }
  0x4a   :  { %4120 = vmatpush3.bf16.msra.mxu0 %v5093_v25 }
  0x4b   :  { %4169 = vmatprep.subr.bf16.mxu0 %v5045_v14 }
  0xfe   :  { %v4073_v32 = vpop.f32.mrb[0].mxu0  ;;  %v5139_v47 = vpop.f32.mrb[0].mxu1 }
  0xff   :  { %v246_v34 = vmax.f32 %v4073_v32, 0.0  ;;  %v181_v35 = vpop.f32.mrb[1].mxu0  ;;  %v414_v51 = vpop.f32.mrb[1].mxu1 }
 0x100   :  { %v244_v36 = vmax.f32 %v181_v35, 0.0  ;;  %v4074_v37 = vpop.f32.mrb[2].mxu0  ;;  %v5150_v55 = vpop.f32.mrb[2].mxu1 }
 0x101   :  { %v247_v38 = vmax.f32 %v4074_v37, 0.0  ;;  %v184_v39 = vpop.f32.mrb[3].mxu0  ;;  %v266_v43 = vmul.f32 %v5125_v33, %v246_v34  ;;  %v417_v59 = vpop.f32.mrb[3].mxu1 }
 0x102   :  { %v264_v40 = vmul.f32 %v5125_v33, %v244_v36  ;;  %v245_v41 = vmax.f32 %v184_v39, 0.0 }
 0x103   :  { %v267_v44 = vmul.f32 %v5125_v33, %v247_v38  ;;  %v5148_v52 = vadd.f32 %v5131_v42, %v266_v43  ;;  %v477_v38 = vmax.f32 %v414_v51, 0.0 }
 0x104   :  { %v265_v45 = vmul.f32 %v5125_v33, %v245_v41  ;;  %v5142_v48 = vadd.f32 %v5131_v42, %v264_v40  ;;  %v478_v40 = vmax.f32 %v417_v59, 0.0 }
 0x105   :  { %v5137_v46 = vadd.f32 %v5131_v42, %v267_v44 }
 0x106   :  { %v5145_v49 = vadd.f32 %v5131_v42, %v265_v45  ;;  %v4077_v50 = vpop.f32.mrb[4].mxu0  ;;  %v5165_v5 = vpop.f32.mrb[4].mxu1 }
 0x107   :  { %v250_v53 = vmax.f32 %v4077_v50, 0.0  ;;  %v197_v54 = vpop.f32.mrb[5].mxu0  ;;  %v558_v60 = vpack.c.bf16 %v5137_v46, %v5148_v52  ;;  %v5173_v9 = vpop.f32.mrb[5].mxu1 }
 0x108   :  { %v248_v56 = vmax.f32 %v197_v54, 0.0  ;;  %v4078_v57 = vpop.f32.mrb[6].mxu0  ;;  %v557_v58 = vpack.c.bf16 %v5145_v49, %v5142_v48  ;;  %v5178_v13 = vpop.f32.mrb[6].mxu1 }
 0x109   :  { %v251_v61 = vmax.f32 %v4078_v57, 0.0  ;;  %v200_v62 = vpop.f32.mrb[7].mxu0  ;;  %v270_v1 = vmul.f32 %v5125_v33, %v250_v53  ;;  %v5183_v19 = vpop.f32.mrb[7].mxu1 }
 0x10a   :  { %v268_v63 = vmul.f32 %v5125_v33, %v248_v56  ;;  %v249_v0 = vmax.f32 %v200_v62, 0.0  ;;  %4121 = vmatprep.mubr.bf16.mxu0 %v557_v58  ;;  %v493_v56 = vmul.f32 %v5125_v33, %v477_v38 }
 0x10b   :  { %v271_v2 = vmul.f32 %v5125_v33, %v251_v61  ;;  %4122 = vmatmul.mubr.bf16.vlgmr.msra.gmra.mrb[16].mxu0 %v558_v60  ;;  %v5176_v10 = vadd.f32 %v5131_v42, %v270_v1  ;;  %v494_v61 = vmul.f32 %v5125_v33, %v478_v40 }
 0x10c   :  { %v269_v3 = vmul.f32 %v5125_v33, %v249_v0  ;;  %4170 = vmatpush3.bf16.msra.mxu0 %v5045_v14  ;;  %v5168_v6 = vadd.f32 %v5131_v42, %v268_v63 }
 0x10d   :  { %v5162_v4 = vadd.f32 %v5131_v42, %v271_v2  ;;  %4171 = vmatprep.subr.bf16.mxu0 %v5047_v15 }
 0x10e   :  { %v5171_v7 = vadd.f32 %v5131_v42, %v269_v3  ;;  %v4081_v8 = vpop.f32.mrb[8].mxu0  ;;  %v5197_v43 = vpop.f32.mrb[8].mxu1 }
 0x10f   :  { %v254_v11 = vmax.f32 %v4081_v8, 0.0  ;;  %v213_v12 = vpop.f32.mrb[9].mxu0  ;;  %v560_v34 = vpack.c.bf16 %v5162_v4, %v5176_v10  ;;  %v5205_v51 = vpop.f32.mrb[9].mxu1 }
 0x110   :  { %v252_v14 = vmax.f32 %v213_v12, 0.0  ;;  %4172 = vmatpush3.bf16.msra.mxu0 %v5047_v15  ;;  %v4082_v17 = vpop.f32.mrb[10].mxu0  ;;  %v559_v18 = vpack.c.bf16 %v5171_v7, %v5168_v6  ;;  %v5211_v57 = vpop.f32.mrb[10].mxu1 }
 0x111   :  { %v255_v22 = vmax.f32 %v4082_v17, 0.0  ;;  %v216_v32 = vpop.f32.mrb[11].mxu0  ;;  %4173 = vmatprep.subr.bf16.mxu0 %v5054_v16  ;;  %v274_v37 = vmul.f32 %v5125_v33, %v254_v11  ;;  %v449_v62 = vpop.f32.mrb[11].mxu1  ;;  %v5224_v11 = vadd.f32 %v5131_v42, %v493_v56  ;;  %v481_v17 = vmax.f32 %v5173_v9, 0.0 }
 0x112   :  { %v272_v35 = vmul.f32 %v5125_v33, %v252_v14  ;;  %v253_v36 = vmax.f32 %v216_v32, 0.0  ;;  %4125 = vmatprep.mubr.bf16.mxu0 %v559_v18  ;;  %v5229_v14 = vadd.f32 %v5131_v42, %v494_v61  ;;  %v482_v18 = vmax.f32 %v5183_v19, 0.0 }
 0x113   :  { %v275_v15 = vmul.f32 %v5125_v33, %v255_v22  ;;  %4126 = vmatmul.mubr.bf16.gmra.mrb[20].mxu0 %v560_v34  ;;  %v5208_v53 = vadd.f32 %v5131_v42, %v274_v37  ;;  %v479_v32 = vmax.f32 %v5139_v47, 0.0  ;;  %v480_v34 = vmax.f32 %v5150_v55, 0.0 }
 0x114   :  { %v273_v39 = vmul.f32 %v5125_v33, %v253_v36  ;;  %4174 = vmatpush3.bf16.msra.mxu0 %v5054_v16  ;;  %v5200_v44 = vadd.f32 %v5131_v42, %v272_v35  ;;  %v497_v55 = vmul.f32 %v5125_v33, %v481_v17  ;;  %v895_v38 = vpack.c.bf16 %v5229_v14, %v5224_v11 }
 0x115   :  { %v5194_v41 = vadd.f32 %v5131_v42, %v275_v15  ;;  %4175 = vmatprep.subr.bf16.mxu0 %v5068_v20  ;;  %v498_v15 = vmul.f32 %v5125_v33, %v482_v18  ;;  %v495_v40 = vmul.f32 %v5125_v33, %v479_v32  ;;  %v485_v56 = vmax.f32 %v5205_v51, 0.0 }
 0x116   :  { %v5203_v45 = vadd.f32 %v5131_v42, %v273_v39  ;;  %v4085_v50 = vpop.f32.mrb[12].mxu0  ;;  %v4103_v35 = vpop.f32.mrb[12].mxu1  ;;  %v483_v61 = vmax.f32 %v5165_v5, 0.0  ;;  %v488_v17 = vmax.f32 %v5211_v57, 0.0 }
 0x117   :  { %v258_v16 = vmax.f32 %v4085_v50, 0.0  ;;  %v229_v54 = vpop.f32.mrb[13].mxu0  ;;  %v562_v1 = vpack.c.bf16 %v5194_v41, %v5208_v53  ;;  %v462_v37 = vpop.f32.mrb[13].mxu1  ;;  %v496_v50 = vmul.f32 %v5125_v33, %v480_v34 }
 0x118   :  { %v256_v58 = vmax.f32 %v229_v54, 0.0  ;;  %4176 = vmatpush3.bf16.msra.mxu0 %v5068_v20  ;;  %v4086_v59 = vpop.f32.mrb[14].mxu0  ;;  %v561_v60 = vpack.c.bf16 %v5203_v45, %v5200_v44  ;;  %v4104_v19 = vpop.f32.mrb[14].mxu1  ;;  %v5265_v54 = vadd.f32 %v5131_v42, %v498_v15 }
 0x119   :  { %v259_v63 = vmax.f32 %v4086_v59, 0.0  ;;  %v232_v0 = vpop.f32.mrb[15].mxu0  ;;  %4177 = vmatprep.subr.bf16.mxu0 %v5071_v21  ;;  %v278_v20 = vmul.f32 %v5125_v33, %v258_v16  ;;  %v465_v39 = vpop.f32.mrb[15].mxu1  ;;  %v5262_v16 = vadd.f32 %v5131_v42, %v497_v55  ;;  %v5269_v59 = vadd.f32 %v5131_v42, %v495_v40 }
 0x11a   :  { %v276_v2 = vmul.f32 %v5125_v33, %v256_v58  ;;  %v257_v3 = vmax.f32 %v232_v0, 0.0  ;;  %4129 = vmatprep.mubr.bf16.mxu0 %v561_v60  ;;  %v486_v58 = vmax.f32 %v449_v62, 0.0  ;;  %v5272_v60 = vadd.f32 %v5131_v42, %v496_v50 }
 0x11b   :  { %v279_v8 = vmul.f32 %v5125_v33, %v259_v63  ;;  %4130 = vmatmul.mubr.bf16.gmra.mrb[24].mxu0 %v562_v1  ;;  %v5246_v9 = vadd.f32 %v5131_v42, %v278_v20  ;;  %v501_v63 = vmul.f32 %v5125_v33, %v485_v56  ;;  %v897_v51 = vpack.c.bf16 %v5265_v54, %v5262_v16 }
 0x11c   :  { %v277_v12 = vmul.f32 %v5125_v33, %v257_v3  ;;  %4178 = vmatpush3.bf16.msra.mxu0 %v5071_v21  ;;  %v5240_v36 = vadd.f32 %v5131_v42, %v276_v2  ;;  %v502_v0 = vmul.f32 %v5125_v33, %v486_v58  ;;  %v896_v62 = vpack.c.bf16 %v5272_v60, %v5269_v59 }
 0x11d   :  { %v5234_v22 = vadd.f32 %v5131_v42, %v279_v8  ;;  %4179 = vmatprep.subr.bf16.mxu0 %v5085_v23  ;;  %v499_v1 = vmul.f32 %v5125_v33, %v483_v61  ;;  %v489_v2 = vmax.f32 %v462_v37, 0.0  ;;  %v490_v3 = vmax.f32 %v465_v39, 0.0 }
 0x11e   :  { %v5243_v21 = vadd.f32 %v5131_v42, %v277_v12  ;;  %v487_v12 = vmax.f32 %v5197_v43, 0.0  ;;  %v491_v39 = vmax.f32 %v4103_v35, 0.0  ;;  %v492_v40 = vmax.f32 %v4104_v19, 0.0  ;;  %v5334_v19 = vld [vmem:[#allocation5 + $0x30] sm:$0xff]  }
 0x11f   :  { %v5293_v20 = vadd.f32 %v5131_v42, %v499_v1  ;;  %v505_v18 = vmul.f32 %v5125_v33, %v489_v2  ;;  %v506_v32 = vmul.f32 %v5125_v33, %v490_v3  ;;  %4149 = vmatprep.subr.bf16.mxu1 %v5334_v19  ;;  %v5362_v1 = vld [vmem:[#allocation2 + $0x68] sm:$0xff]  }
 0x120   :  { %4180 = vmatpush3.bf16.msra.mxu0 %v5085_v23  ;;  %v563_v47 = vpack.c.bf16 %v5243_v21, %v5240_v36  ;;  %v564_v23 = vpack.c.bf16 %v5234_v22, %v5246_v9  ;;  %v503_v37 = vmul.f32 %v5125_v33, %v487_v12  ;;  %v508_v56 = vmul.f32 %v5125_v33, %v492_v40 }
 0x121   :  { %4181 = vmatprep.subr.bf16.mxu0 %v5089_v24  ;;  %v5309_v15 = vadd.f32 %v5131_v42, %v505_v18  ;;  %v5312_v43 = vadd.f32 %v5131_v42, %v506_v32  ;;  %4150 = vmatpush3.bf16.msra.mxu1 %v5334_v19 }
 0x122   :  { %4133 = vmatprep.mubr.bf16.mxu0 %v563_v47  ;;  %v504_v47 = vmul.f32 %v5125_v33, %v488_v17  ;;  %v5315_v57 = vadd.f32 %v5131_v42, %v503_v37 }
 0x123   :  { %4134 = vmatmul.mubr.bf16.gmra.mrb[28].mxu0 %v564_v23  ;;  %v901_v50 = vpack.c.bf16 %v5312_v43, %v5309_v15  ;;  %v507_v23 = vmul.f32 %v5125_v33, %v491_v39 }
 0x124   :  { %4182 = vmatpush3.bf16.msra.mxu0 %v5089_v24  ;;  %4185 = vmatprep.mubr.bf16.mxu0 %v895_v38  ;;  %v484_v24 = vmax.f32 %v5178_v13, 0.0  ;;  %v5287_v13 = vadd.f32 %v5131_v42, %v501_v63  ;;  %v5318_v38 = vadd.f32 %v5131_v42, %v504_v47  ;;  %v5345_v63 = vld [vmem:[#allocation2 + $0x48] sm:$0xff]  }
 0x125   :  { %4183 = vmatprep.subr.bf16.mxu0 %v5093_v25  ;;  %v5327_v61 = vadd.f32 %v5131_v42, %v507_v23 }
 0x126   :  { %v500_v5 = vmul.f32 %v5125_v33, %v484_v24  ;;  %v900_v58 = vpack.c.bf16 %v5318_v38, %v5315_v57  ;;  %v5330_v24 = vadd.f32 %v5131_v42, %v508_v56  ;;  %v5338_v33 = vld [vmem:[#allocation5 + $0x38] sm:$0xff]  }
 0x127   :  { %4151 = vmatprep.subr.bf16.mxu1 %v5338_v33 }
 0x128   :  { %4184 = vmatpush3.bf16.msra.mxu0 %v5093_v25  ;;  %v5290_v25 = vadd.f32 %v5131_v42, %v502_v0  ;;  %v5296_v8 = vadd.f32 %v5131_v42, %v500_v5  ;;  %v902_v35 = vpack.c.bf16 %v5330_v24, %v5327_v61  ;;  %4152 = vmatpush3.bf16.msra.mxu1 %v5338_v33  ;;  %v5343_v42 = vld [vmem:[#allocation2 + $0x40] sm:$0xff]   ;;  %v5350_v0 = vld [vmem:[#allocation2 + $0x50] sm:$0xff]  }
 0x129   :  { %4201 = vmatprep.subr.bf16.mxu1 %v5098_v26  ;;  %4233 = vmatprep.subr.bf16.mxu0 %v5343_v42 }
 0x12a   :  { %v899_v34 = vpack.c.bf16 %v5290_v25, %v5287_v13  ;;  %v898_v55 = vpack.c.bf16 %v5296_v8, %v5293_v20 }
 0x12b   :  { %4186 = vmatmul.mubr.bf16.vlgmr.msra.gmra.mrb[32].mxu0 %v896_v62  ;;  %v5358_v62 = vld [vmem:[#allocation2 + $0x60] sm:$0xff]  }
 0x12c   :  { %4189 = vmatprep.mubr.bf16.mxu0 %v897_v51  ;;  %4234 = vmatpush3.bf16.msra.mxu0 %v5343_v42  ;;  %v5354_v51 = vld [vmem:[#allocation2 + $0x58] sm:$0xff]  }
 0x12d   :  { %4235 = vmatprep.subr.bf16.mxu0 %v5345_v63 }
 0x130   :  { %4236 = vmatpush3.bf16.msra.mxu0 %v5345_v63 }
 0x131   :  { %4237 = vmatprep.subr.bf16.mxu0 %v5350_v0 }
 0x133   :  { %4190 = vmatmul.mubr.bf16.gmra.mrb[36].mxu0 %v898_v55 }
 0x134   :  { %4193 = vmatprep.mubr.bf16.mxu0 %v899_v34  ;;  %4238 = vmatpush3.bf16.msra.mxu0 %v5350_v0 }
 0x135   :  { %4239 = vmatprep.subr.bf16.mxu0 %v5354_v51 }
 0x138   :  { %4240 = vmatpush3.bf16.msra.mxu0 %v5354_v51 }
 0x139   :  { %4241 = vmatprep.subr.bf16.mxu0 %v5358_v62 }
 0x13b   :  { %4194 = vmatmul.mubr.bf16.gmra.mrb[40].mxu0 %v900_v58 }
 0x13c   :  { %4197 = vmatprep.mubr.bf16.mxu0 %v901_v50  ;;  %4242 = vmatpush3.bf16.msra.mxu0 %v5358_v62 }
 0x13d   :  { %4243 = vmatprep.subr.bf16.mxu0 %v5362_v1 }
 0x140   :  { %4244 = vmatpush3.bf16.msra.mxu0 %v5362_v1 }
 0x143   :  { %4198 = vmatmul.mubr.bf16.gmra.mrb[44].mxu0 %v902_v35 }
 0x1de   :  { %v4123_v5 = vpop.f32.mrb[16].mxu0 }
 0x1df   :  { %v647_v2 = vpop.f32.mrb[17].mxu0  ;;  %v712_v12 = vmax.f32 %v4123_v5, 0.0 }
 0x1e0   :  { %v4124_v3 = vpop.f32.mrb[18].mxu0  ;;  %v710_v32 = vmax.f32 %v647_v2, 0.0 }
 0x1e1   :  { %v713_v17 = vmax.f32 %v4124_v3, 0.0  ;;  %v650_v18 = vpop.f32.mrb[19].mxu0 }
 0x1e2   :  { %v711_v34 = vmax.f32 %v650_v18, 0.0 }
 0x1e3   :  { %v727_v37 = vpack.c.bf16 %v713_v17, %v712_v12 }
 0x1e4   :  { %v726_v47 = vpack.c.bf16 %v711_v34, %v710_v32 }
 0x1e6   :  { %v4127_v55 = vpop.f32.mrb[20].mxu0  ;;  %4153 = vmatprep.mubr.bf16.mxu1 %v726_v47 }
 0x1e7   :  { %v663_v39 = vpop.f32.mrb[21].mxu0  ;;  %4154 = vmatmul.mubr.bf16.vlgmr.msra.gmra.mrb[16].mxu1 %v727_v37  ;;  %v716_v50 = vmax.f32 %v4127_v55, 0.0 }
 0x1e8   :  { %4202 = vmatpush3.bf16.msra.mxu1 %v5098_v26  ;;  %v4128_v40 = vpop.f32.mrb[22].mxu0  ;;  %v714_v58 = vmax.f32 %v663_v39, 0.0 }
 0x1e9   :  { %v717_v23 = vmax.f32 %v4128_v40, 0.0  ;;  %v666_v56 = vpop.f32.mrb[23].mxu0  ;;  %4203 = vmatprep.subr.bf16.mxu1 %v5100_v27 }
 0x1ea   :  { %v715_v35 = vmax.f32 %v666_v56, 0.0 }
 0x1eb   :  { %v729_v5 = vpack.c.bf16 %v717_v23, %v716_v50 }
 0x1ec   :  { %v728_v3 = vpack.c.bf16 %v715_v35, %v714_v58  ;;  %4204 = vmatpush3.bf16.msra.mxu1 %v5100_v27 }
 0x1ed   :  { %4205 = vmatprep.subr.bf16.mxu1 %v5105_v28 }
 0x1ee   :  { %v4131_v2 = vpop.f32.mrb[24].mxu0  ;;  %4157 = vmatprep.mubr.bf16.mxu1 %v728_v3 }
 0x1ef   :  { %v679_v12 = vpop.f32.mrb[25].mxu0  ;;  %4158 = vmatmul.mubr.bf16.gmra.mrb[20].mxu1 %v729_v5  ;;  %v720_v17 = vmax.f32 %v4131_v2, 0.0 }
 0x1f0   :  { %4206 = vmatpush3.bf16.msra.mxu1 %v5105_v28  ;;  %v4132_v26 = vpop.f32.mrb[26].mxu0  ;;  %v718_v34 = vmax.f32 %v679_v12, 0.0 }
 0x1f1   :  { %v721_v18 = vmax.f32 %v4132_v26, 0.0  ;;  %v682_v32 = vpop.f32.mrb[27].mxu0  ;;  %4207 = vmatprep.subr.bf16.mxu1 %v5109_v29 }
 0x1f2   :  { %v719_v37 = vmax.f32 %v682_v32, 0.0 }
 0x1f3   :  { %v731_v47 = vpack.c.bf16 %v721_v18, %v720_v17 }
 0x1f4   :  { %v730_v55 = vpack.c.bf16 %v719_v37, %v718_v34  ;;  %4208 = vmatpush3.bf16.msra.mxu1 %v5109_v29 }
 0x1f5   :  { %4209 = vmatprep.subr.bf16.mxu1 %v5113_v30 }
 0x1f6   :  { %v4135_v27 = vpop.f32.mrb[28].mxu0  ;;  %4161 = vmatprep.mubr.bf16.mxu1 %v730_v55 }
 0x1f7   :  { %v695_v39 = vpop.f32.mrb[29].mxu0  ;;  %4162 = vmatmul.mubr.bf16.gmra.mrb[24].mxu1 %v731_v47  ;;  %v724_v40 = vmax.f32 %v4135_v27, 0.0 }
 0x1f8   :  { %4210 = vmatpush3.bf16.msra.mxu1 %v5113_v30  ;;  %v4136_v28 = vpop.f32.mrb[30].mxu0  ;;  %v722_v56 = vmax.f32 %v695_v39, 0.0 }
 0x1f9   :  { %v725_v50 = vmax.f32 %v4136_v28, 0.0  ;;  %v698_v23 = vpop.f32.mrb[31].mxu0  ;;  %4211 = vmatprep.subr.bf16.mxu1 %v5117_v31 }
 0x1fa   :  { %v723_v58 = vmax.f32 %v698_v23, 0.0 }
 0x1fb   :  { %v733_v35 = vpack.c.bf16 %v725_v50, %v724_v40 }
 0x1fc   :  { %v732_v5 = vpack.c.bf16 %v723_v58, %v722_v56  ;;  %4212 = vmatpush3.bf16.msra.mxu1 %v5117_v31 }
 0x1fd   :  { %4213 = vmatprep.subr.bf16.mxu1 %v5334_v19 }
 0x1fe   :  { %4165 = vmatprep.mubr.bf16.mxu1 %v732_v5  ;;  %v4187_v29 = vpop.f32.mrb[32].mxu0 }
 0x1ff   :  { %4166 = vmatmul.mubr.bf16.gmra.mrb[28].mxu1 %v733_v35  ;;  %v937_v3 = vpop.f32.mrb[33].mxu0  ;;  %v1002_v2 = vmax.f32 %v4187_v29, 0.0 }
 0x200   :  { %4214 = vmatpush3.bf16.msra.mxu1 %v5334_v19  ;;  %v4188_v30 = vpop.f32.mrb[34].mxu0  ;;  %v1000_v17 = vmax.f32 %v937_v3, 0.0 }
 0x201   :  { %v1003_v12 = vmax.f32 %v4188_v30, 0.0  ;;  %v940_v26 = vpop.f32.mrb[35].mxu0  ;;  %4215 = vmatprep.subr.bf16.mxu1 %v5338_v33 }
 0x202   :  { %v1001_v18 = vmax.f32 %v940_v26, 0.0 }
 0x203   :  { %v1017_v32 = vpack.c.bf16 %v1003_v12, %v1002_v2 }
 0x204   :  { %v1016_v34 = vpack.c.bf16 %v1001_v18, %v1000_v17  ;;  %4216 = vmatpush3.bf16.msra.mxu1 %v5338_v33 }
 0x206   :  { %v4191_v31 = vpop.f32.mrb[36].mxu0  ;;  %4217 = vmatprep.mubr.bf16.mxu1 %v1016_v34 }
 0x207   :  { %v953_v37 = vpop.f32.mrb[37].mxu0  ;;  %4218 = vmatmul.mubr.bf16.vlgmr.msra.gmra.mrb[32].mxu1 %v1017_v32  ;;  %v1006_v55 = vmax.f32 %v4191_v31, 0.0 }
 0x208   :  { %v4192_v47 = vpop.f32.mrb[38].mxu0  ;;  %v1004_v39 = vmax.f32 %v953_v37, 0.0 }
 0x209   :  { %v1007_v27 = vmax.f32 %v4192_v47, 0.0  ;;  %v956_v19 = vpop.f32.mrb[39].mxu0 }
 0x20a   :  { %v1005_v28 = vmax.f32 %v956_v19, 0.0  ;;  %v5386_v19 = vld [vmem:[#allocation2 + $0x78] sm:$0xff]  }
 0x20b   :  { %v1019_v40 = vpack.c.bf16 %v1007_v27, %v1006_v55  ;;  %v5382_v27 = vld [vmem:[#allocation2 + $0x70] sm:$0xff]  }
 0x20c   :  { %v1018_v50 = vpack.c.bf16 %v1005_v28, %v1004_v39  ;;  %4245 = vmatprep.subr.bf16.mxu0 %v5382_v27  ;;  %v5391_v39 = vld [vmem:[#allocation5 + $0x40] sm:$0xff]   ;;  %v5393_v28 = vld [vmem:[#allocation5 + $0x48] sm:$0xff]  }
 0x20d   :  { %4246 = vmatpush3.bf16.msra.mxu0 %v5382_v27  ;;  %4265 = vmatprep.subr.bf16.mxu1 %v5391_v39 }
 0x20e   :  { %v4195_v23 = vpop.f32.mrb[40].mxu0  ;;  %4221 = vmatprep.mubr.bf16.mxu1 %v1018_v50  ;;  %4247 = vmatprep.subr.bf16.mxu0 %v5386_v19  ;;  %v5402_v50 = vld [vmem:[#allocation5 + $0x58] sm:$0xff]  }
 0x20f   :  { %v969_v56 = vpop.f32.mrb[41].mxu0  ;;  %4222 = vmatmul.mubr.bf16.gmra.mrb[36].mxu1 %v1019_v40  ;;  %v1010_v35 = vmax.f32 %v4195_v23, 0.0  ;;  %v5398_v40 = vld [vmem:[#allocation5 + $0x50] sm:$0xff]   ;;  %v5406_v23 = vld [vmem:[#allocation5 + $0x60] sm:$0xff]  }
 0x210   :  { %v4196_v58 = vpop.f32.mrb[42].mxu0  ;;  %v1008_v29 = vmax.f32 %v969_v56, 0.0  ;;  %4266 = vmatpush3.bf16.msra.mxu1 %v5391_v39  ;;  %v5410_v56 = vld [vmem:[#allocation5 + $0x68] sm:$0xff]  }
 0x211   :  { %v1011_v5 = vmax.f32 %v4196_v58, 0.0  ;;  %v972_v33 = vpop.f32.mrb[43].mxu0  ;;  %4248 = vmatpush3.bf16.msra.mxu0 %v5386_v19  ;;  %4267 = vmatprep.subr.bf16.mxu1 %v5393_v28 }
 0x212   :  { %v1009_v3 = vmax.f32 %v972_v33, 0.0  ;;  %4297 = vmatprep.subr.bf16.mxu0 %v5343_v42 }
 0x213   :  { %v1021_v30 = vpack.c.bf16 %v1011_v5, %v1010_v35 }
 0x214   :  { %v1020_v2 = vpack.c.bf16 %v1009_v3, %v1008_v29  ;;  %4268 = vmatpush3.bf16.msra.mxu1 %v5393_v28 }
 0x215   :  { %4269 = vmatprep.subr.bf16.mxu1 %v5398_v40 }
 0x216   :  { %v4199_v12 = vpop.f32.mrb[44].mxu0  ;;  %4225 = vmatprep.mubr.bf16.mxu1 %v1020_v2 }
 0x217   :  { %v985_v26 = vpop.f32.mrb[45].mxu0  ;;  %4226 = vmatmul.mubr.bf16.gmra.mrb[40].mxu1 %v1021_v30  ;;  %v1014_v18 = vmax.f32 %v4199_v12, 0.0 }
 0x218   :  { %v4200_v17 = vpop.f32.mrb[46].mxu0  ;;  %v1012_v31 = vmax.f32 %v985_v26, 0.0  ;;  %4270 = vmatpush3.bf16.msra.mxu1 %v5398_v40 }
 0x219   :  { %v1015_v32 = vmax.f32 %v4200_v17, 0.0  ;;  %v988_v34 = vpop.f32.mrb[47].mxu0  ;;  %4271 = vmatprep.subr.bf16.mxu1 %v5402_v50 }
 0x21a   :  { %v1013_v37 = vmax.f32 %v988_v34, 0.0 }
 0x21b   :  { %v1023_v47 = vpack.c.bf16 %v1015_v32, %v1014_v18 }
 0x21c   :  { %v1022_v55 = vpack.c.bf16 %v1013_v37, %v1012_v31  ;;  %4272 = vmatpush3.bf16.msra.mxu1 %v5402_v50 }
 0x21d   :  { %4273 = vmatprep.subr.bf16.mxu1 %v5406_v23 }
 0x21e   :  { %4229 = vmatprep.mubr.bf16.mxu1 %v1022_v55 }
 0x21f   :  { %4230 = vmatmul.mubr.bf16.gmra.mrb[44].mxu1 %v1023_v47 }
 0x220   :  { %4274 = vmatpush3.bf16.msra.mxu1 %v5406_v23 }
 0x221   :  { %4275 = vmatprep.subr.bf16.mxu1 %v5410_v56 }
 0x224   :  { %4276 = vmatpush3.bf16.msra.mxu1 %v5410_v56 }
 0x2ba   :  { %v4155_v58 = vpop.f32.mrb[16].mxu1 }
 0x2bb   :  { %v816_v35 = vpop.f32.mrb[17].mxu1  ;;  %v5419_v29 = vadd.f32 %v4155_v58, %v5148_v52 }
 0x2bc   :  { %v5416_v5 = vadd.f32 %v816_v35, %v5142_v48  ;;  %v4156_v33 = vpop.f32.mrb[18].mxu1 }
 0x2bd   :  { %v5422_v3 = vadd.f32 %v4156_v33, %v5137_v46  ;;  %v819_v30 = vpop.f32.mrb[19].mxu1  ;;  %v6582_v48 = vmax.f32 %v5419_v29, 0.0 }
 0x2be   :  { %v5425_v2 = vadd.f32 %v819_v30, %v5145_v49  ;;  %v6583_v26 = vmax.f32 %v5416_v5, 0.0 }
 0x2bf   :  { %v6581_v12 = vmax.f32 %v5422_v3, 0.0 }
 0x2c0   :  { %v6580_v17 = vmax.f32 %v5425_v2, 0.0 }
 0x2c1   :  { %v1172_v46 = vpack.c.bf16 %v6581_v12, %v6582_v48 }
 0x2c2   :  { %v1171_v52 = vpack.c.bf16 %v6580_v17, %v6583_v26  ;;  %v4159_v18 = vpop.f32.mrb[20].mxu1 }
 0x2c3   :  { %v832_v49 = vpop.f32.mrb[21].mxu1  ;;  %v5443_v31 = vadd.f32 %v4159_v18, %v5176_v10 }
 0x2c4   :  { %v5440_v32 = vadd.f32 %v832_v49, %v5168_v6  ;;  %v4160_v34 = vpop.f32.mrb[22].mxu1  ;;  %4249 = vmatprep.mubr.bf16.mxu0 %v1171_v52 }
 0x2c5   :  { %v5446_v37 = vadd.f32 %v4160_v34, %v5162_v4  ;;  %v835_v47 = vpop.f32.mrb[23].mxu1  ;;  %4250 = vmatmul.mubr.bf16.vlgmr.msra.gmra.mrb[48].mxu0 %v1172_v46  ;;  %v6578_v10 = vmax.f32 %v5443_v31, 0.0 }
 0x2c6   :  { %v5449_v55 = vadd.f32 %v835_v47, %v5171_v7  ;;  %4298 = vmatpush3.bf16.msra.mxu0 %v5343_v42  ;;  %v6579_v6 = vmax.f32 %v5440_v32, 0.0 }
 0x2c7   :  { %v6577_v58 = vmax.f32 %v5446_v37, 0.0  ;;  %4299 = vmatprep.subr.bf16.mxu0 %v5345_v63 }
 0x2c8   :  { %v6576_v35 = vmax.f32 %v5449_v55, 0.0 }
 0x2c9   :  { %v1174_v42 = vpack.c.bf16 %v6577_v58, %v6578_v10 }
 0x2ca   :  { %v1173_v4 = vpack.c.bf16 %v6576_v35, %v6579_v6  ;;  %4300 = vmatpush3.bf16.msra.mxu0 %v5345_v63  ;;  %v4163_v7 = vpop.f32.mrb[24].mxu1 }
 0x2cb   :  { %v848_v33 = vpop.f32.mrb[25].mxu1  ;;  %4301 = vmatprep.subr.bf16.mxu0 %v5350_v0  ;;  %v5471_v18 = vadd.f32 %v4163_v7, %v5208_v53 }
 0x2cc   :  { %v5468_v30 = vadd.f32 %v848_v33, %v5200_v44  ;;  %v4164_v52 = vpop.f32.mrb[26].mxu1  ;;  %4253 = vmatprep.mubr.bf16.mxu0 %v1173_v4 }
 0x2cd   :  { %v5474_v46 = vadd.f32 %v4164_v52, %v5194_v41  ;;  %v851_v63 = vpop.f32.mrb[27].mxu1  ;;  %4254 = vmatmul.mubr.bf16.gmra.mrb[52].mxu0 %v1174_v42  ;;  %v6574_v53 = vmax.f32 %v5471_v18, 0.0 }
 0x2ce   :  { %v5477_v49 = vadd.f32 %v851_v63, %v5203_v45  ;;  %4302 = vmatpush3.bf16.msra.mxu0 %v5350_v0  ;;  %v6575_v44 = vmax.f32 %v5468_v30, 0.0 }
 0x2cf   :  { %v6573_v34 = vmax.f32 %v5474_v46, 0.0  ;;  %4303 = vmatprep.subr.bf16.mxu0 %v5354_v51 }
 0x2d0   :  { %v6552_v47 = vmax.f32 %v5477_v49, 0.0 }
 0x2d1   :  { %v1176_v0 = vpack.c.bf16 %v6573_v34, %v6574_v53 }
 0x2d2   :  { %v1175_v41 = vpack.c.bf16 %v6552_v47, %v6575_v44  ;;  %4304 = vmatpush3.bf16.msra.mxu0 %v5354_v51  ;;  %v4167_v45 = vpop.f32.mrb[28].mxu1 }
 0x2d3   :  { %v864_v4 = vpop.f32.mrb[29].mxu1  ;;  %4305 = vmatprep.subr.bf16.mxu0 %v5358_v62  ;;  %v5499_v33 = vadd.f32 %v4167_v45, %v5246_v9 }
 0x2d4   :  { %v5496_v7 = vadd.f32 %v864_v4, %v5240_v36  ;;  %v4168_v42 = vpop.f32.mrb[30].mxu1  ;;  %4257 = vmatprep.mubr.bf16.mxu0 %v1175_v41 }
 0x2d5   :  { %v5502_v52 = vadd.f32 %v4168_v42, %v5234_v22  ;;  %v867_v51 = vpop.f32.mrb[31].mxu1  ;;  %4258 = vmatmul.mubr.bf16.gmra.mrb[56].mxu0 %v1176_v0  ;;  %v6571_v9 = vmax.f32 %v5499_v33, 0.0 }
 0x2d6   :  { %v5505_v63 = vadd.f32 %v867_v51, %v5243_v21  ;;  %4306 = vmatpush3.bf16.msra.mxu0 %v5358_v62  ;;  %v6572_v36 = vmax.f32 %v5496_v7, 0.0 }
 0x2d7   :  { %v6554_v47 = vmax.f32 %v5502_v52, 0.0  ;;  %4307 = vmatprep.subr.bf16.mxu0 %v5362_v1 }
 0x2d8   :  { %v6553_v41 = vmax.f32 %v5505_v63, 0.0 }
 0x2d9   :  { %v1178_v62 = vpack.c.bf16 %v6554_v47, %v6571_v9 }
 0x2da   :  { %v1177_v22 = vpack.c.bf16 %v6553_v41, %v6572_v36  ;;  %4308 = vmatpush3.bf16.msra.mxu0 %v5362_v1  ;;  %v4219_v21 = vpop.f32.mrb[32].mxu1 }
 0x2db   :  { %v1058_v45 = vpop.f32.mrb[33].mxu1  ;;  %4309 = vmatprep.subr.bf16.mxu0 %v5382_v27  ;;  %v5527_v42 = vadd.f32 %v4219_v21, %v5269_v59 }
 0x2dc   :  { %v5524_v0 = vadd.f32 %v1058_v45, %v5224_v11  ;;  %v4220_v4 = vpop.f32.mrb[34].mxu1  ;;  %4261 = vmatprep.mubr.bf16.mxu0 %v1177_v22 }
 0x2dd   :  { %v5530_v51 = vadd.f32 %v4220_v4, %v5272_v60  ;;  %v1061_v1 = vpop.f32.mrb[35].mxu1  ;;  %4262 = vmatmul.mubr.bf16.gmra.mrb[60].mxu0 %v1178_v62  ;;  %v6558_v59 = vmax.f32 %v5527_v42, 0.0 }
 0x2de   :  { %v5533_v41 = vadd.f32 %v1061_v1, %v5229_v14  ;;  %4310 = vmatpush3.bf16.msra.mxu0 %v5382_v27  ;;  %v6556_v11 = vmax.f32 %v5524_v0, 0.0 }
 0x2df   :  { %v6557_v47 = vmax.f32 %v5530_v51, 0.0  ;;  %4311 = vmatprep.subr.bf16.mxu0 %v5386_v19 }
 0x2e0   :  { %v6555_v22 = vmax.f32 %v5533_v41, 0.0 }
 0x2e1   :  { %v1510_v27 = vpack.c.bf16 %v6557_v47, %v6558_v59 }
 0x2e2   :  { %v1509_v60 = vpack.c.bf16 %v6555_v22, %v6556_v11  ;;  %4312 = vmatpush3.bf16.msra.mxu0 %v5386_v19  ;;  %v4223_v14 = vpop.f32.mrb[36].mxu1 }
 0x2e3   :  { %v1074_v21 = vpop.f32.mrb[37].mxu1  ;;  %v5554_v4 = vadd.f32 %v4223_v14, %v5293_v20 }
 0x2e4   :  { %v5551_v62 = vadd.f32 %v1074_v21, %v5262_v16  ;;  %v4224_v45 = vpop.f32.mrb[38].mxu1  ;;  %4313 = vmatprep.mubr.bf16.mxu0 %v1509_v60 }
 0x2e5   :  { %v5557_v1 = vadd.f32 %v4224_v45, %v5296_v8  ;;  %v1077_v22 = vpop.f32.mrb[39].mxu1  ;;  %4314 = vmatmul.mubr.bf16.vlgmr.msra.gmra.mrb[64].mxu0 %v1510_v27  ;;  %v6562_v21 = vmax.f32 %v5554_v4, 0.0 }
 0x2e6   :  { %v5560_v19 = vadd.f32 %v1077_v22, %v5265_v54  ;;  %v6560_v47 = vmax.f32 %v5551_v62, 0.0 }
 0x2e7   :  { %v6561_v11 = vmax.f32 %v5557_v1, 0.0 }
 0x2e8   :  { %v6559_v16 = vmax.f32 %v5560_v19, 0.0 }
 0x2e9   :  { %v1512_v54 = vpack.c.bf16 %v6561_v11, %v6562_v21 }
 0x2ea   :  { %v1511_v20 = vpack.c.bf16 %v6559_v16, %v6560_v47  ;;  %v4227_v8 = vpop.f32.mrb[40].mxu1 }
 0x2eb   :  { %v1090_v22 = vpop.f32.mrb[41].mxu1  ;;  %v5578_v27 = vadd.f32 %v4227_v8, %v5315_v57 }
 0x2ec   :  { %v5575_v60 = vadd.f32 %v1090_v22, %v5287_v13  ;;  %v4228_v14 = vpop.f32.mrb[42].mxu1  ;;  %4317 = vmatprep.mubr.bf16.mxu0 %v1511_v20 }
 0x2ed   :  { %v5581_v45 = vadd.f32 %v4228_v14, %v5318_v38  ;;  %v1093_v59 = vpop.f32.mrb[43].mxu1  ;;  %4318 = vmatmul.mubr.bf16.gmra.mrb[68].mxu0 %v1512_v54  ;;  %v6570_v22 = vmax.f32 %v5578_v27, 0.0 }
 0x2ee   :  { %v5584_v16 = vadd.f32 %v1093_v59, %v5290_v25  ;;  %v6564_v11 = vmax.f32 %v5575_v60, 0.0 }
 0x2ef   :  { %v6565_v47 = vmax.f32 %v5581_v45, 0.0 }
 0x2f0   :  { %v6563_v13 = vmax.f32 %v5584_v16, 0.0 }
 0x2f1   :  { %v1514_v25 = vpack.c.bf16 %v6565_v47, %v6570_v22 }
 0x2f2   :  { %v1513_v57 = vpack.c.bf16 %v6563_v13, %v6564_v11  ;;  %v4231_v38 = vpop.f32.mrb[44].mxu1 }
 0x2f3   :  { %v1106_v59 = vpop.f32.mrb[45].mxu1  ;;  %v5602_v54 = vadd.f32 %v4231_v38, %v5327_v61  ;;  %v5633_v38 = vld [vmem:[#allocation2 + $0x88] sm:$0xff]  }
 0x2f4   :  { %v5599_v20 = vadd.f32 %v1106_v59, %v5309_v15  ;;  %v4232_v8 = vpop.f32.mrb[46].mxu1  ;;  %4321 = vmatprep.mubr.bf16.mxu0 %v1513_v57  ;;  %v5631_v57 = vld [vmem:[#allocation2 + $0x80] sm:$0xff]  }
 0x2f5   :  { %v5605_v14 = vadd.f32 %v4232_v8, %v5330_v24  ;;  %v1109_v21 = vpop.f32.mrb[47].mxu1  ;;  %4322 = vmatmul.mubr.bf16.gmra.mrb[72].mxu0 %v1514_v25  ;;  %v6568_v59 = vmax.f32 %v5602_v54, 0.0  ;;  %4361 = vmatprep.subr.bf16.mxu0 %v5631_v57  ;;  %v5638_v25 = vld [vmem:[#allocation2 + $0x90] sm:$0xff]   ;;  %v5642_v8 = vld [vmem:[#allocation2 + $0x98] sm:$0xff]  }
 0x2f6   :  { %v5608_v13 = vadd.f32 %v1109_v21, %v5312_v43  ;;  %v6569_v47 = vmax.f32 %v5599_v20, 0.0  ;;  %v5622_v43 = vld [vmem:[#allocation5 + $0x70] sm:$0xff]   ;;  %v5626_v21 = vld [vmem:[#allocation5 + $0x78] sm:$0xff]   ;;  %4362 = vmatpush3.bf16.msra.mxu0 %v5631_v57 }
 0x2f7   :  { %v6567_v11 = vmax.f32 %v5605_v14, 0.0  ;;  %4277 = vmatprep.subr.bf16.mxu1 %v5622_v43  ;;  %4363 = vmatprep.subr.bf16.mxu0 %v5633_v38 }
 0x2f8   :  { %v6566_v15 = vmax.f32 %v5608_v13, 0.0  ;;  %4278 = vmatpush3.bf16.msra.mxu1 %v5622_v43 }
 0x2f9   :  { %v1516_v24 = vpack.c.bf16 %v6567_v11, %v6568_v59  ;;  %4279 = vmatprep.subr.bf16.mxu1 %v5626_v21 }
 0x2fa   :  { %v1515_v61 = vpack.c.bf16 %v6566_v15, %v6569_v47  ;;  %4364 = vmatpush3.bf16.msra.mxu0 %v5633_v38 }
 0x2fb   :  { %4365 = vmatprep.subr.bf16.mxu0 %v5638_v25 }
 0x2fc   :  { %4325 = vmatprep.mubr.bf16.mxu0 %v1515_v61  ;;  %4280 = vmatpush3.bf16.msra.mxu1 %v5626_v21  ;;  %v5646_v61 = vld [vmem:[#allocation2 + $0xa0] sm:$0xff]  }
 0x2fd   :  { %4326 = vmatmul.mubr.bf16.gmra.mrb[76].mxu0 %v1516_v24  ;;  %4329 = vmatprep.subr.bf16.mxu1 %v5391_v39  ;;  %v5650_v24 = vld [vmem:[#allocation2 + $0xa8] sm:$0xff]  }
 0x2fe   :  { %4366 = vmatpush3.bf16.msra.mxu0 %v5638_v25 }
 0x2ff   :  { %4367 = vmatprep.subr.bf16.mxu0 %v5642_v8 }
 0x302   :  { %4368 = vmatpush3.bf16.msra.mxu0 %v5642_v8 }
 0x303   :  { %4369 = vmatprep.subr.bf16.mxu0 %v5646_v61 }
 0x306   :  { %4370 = vmatpush3.bf16.msra.mxu0 %v5646_v61 }
 0x307   :  { %4371 = vmatprep.subr.bf16.mxu0 %v5650_v24 }
 0x30a   :  { %4372 = vmatpush3.bf16.msra.mxu0 %v5650_v24 }
 0x398   :  { %v4251_v15 = vpop.f32.mrb[48].mxu0 }
 0x399   :  { %v1261_v11 = vpop.f32.mrb[49].mxu0  ;;  %v1326_v47 = vmax.f32 %v4251_v15, 0.0 }
 0x39a   :  { %v4252_v59 = vpop.f32.mrb[50].mxu0  ;;  %v1324_v36 = vmax.f32 %v1261_v11, 0.0 }
 0x39b   :  { %v1327_v22 = vmax.f32 %v4252_v59, 0.0  ;;  %v1264_v9 = vpop.f32.mrb[51].mxu0 }
 0x39c   :  { %v1325_v34 = vmax.f32 %v1264_v9, 0.0 }
 0x39d   :  { %v1341_v53 = vpack.c.bf16 %v1327_v22, %v1326_v47 }
 0x39e   :  { %v1340_v44 = vpack.c.bf16 %v1325_v34, %v1324_v36 }
 0x3a0   :  { %v4255_v35 = vpop.f32.mrb[52].mxu0  ;;  %4281 = vmatprep.mubr.bf16.mxu1 %v1340_v44 }
 0x3a1   :  { %v1277_v58 = vpop.f32.mrb[53].mxu0  ;;  %4282 = vmatmul.mubr.bf16.vlgmr.msra.gmra.mrb[48].mxu1 %v1341_v53  ;;  %v1330_v6 = vmax.f32 %v4255_v35, 0.0 }
 0x3a2   :  { %4330 = vmatpush3.bf16.msra.mxu1 %v5391_v39  ;;  %v4256_v10 = vpop.f32.mrb[54].mxu0  ;;  %v1328_v48 = vmax.f32 %v1277_v58, 0.0 }
 0x3a3   :  { %v1331_v17 = vmax.f32 %v4256_v10, 0.0  ;;  %v1280_v12 = vpop.f32.mrb[55].mxu0  ;;  %4331 = vmatprep.subr.bf16.mxu1 %v5393_v28 }
 0x3a4   :  { %v1329_v15 = vmax.f32 %v1280_v12, 0.0 }
 0x3a5   :  { %v1343_v59 = vpack.c.bf16 %v1331_v17, %v1330_v6 }
 0x3a6   :  { %v1342_v26 = vpack.c.bf16 %v1329_v15, %v1328_v48  ;;  %4332 = vmatpush3.bf16.msra.mxu1 %v5393_v28 }
 0x3a7   :  { %4333 = vmatprep.subr.bf16.mxu1 %v5398_v40 }
 0x3a8   :  { %v4259_v34 = vpop.f32.mrb[56].mxu0  ;;  %4285 = vmatprep.mubr.bf16.mxu1 %v1342_v26 }
 0x3a9   :  { %v1293_v44 = vpop.f32.mrb[57].mxu0  ;;  %4286 = vmatmul.mubr.bf16.gmra.mrb[52].mxu1 %v1343_v59  ;;  %v1334_v35 = vmax.f32 %v4259_v34, 0.0 }
 0x3aa   :  { %4334 = vmatpush3.bf16.msra.mxu1 %v5398_v40  ;;  %v4260_v39 = vpop.f32.mrb[58].mxu0  ;;  %v1332_v58 = vmax.f32 %v1293_v44, 0.0 }
 0x3ab   :  { %v1335_v10 = vmax.f32 %v4260_v39, 0.0  ;;  %v1296_v47 = vpop.f32.mrb[59].mxu0  ;;  %4335 = vmatprep.subr.bf16.mxu1 %v5402_v50 }
 0x3ac   :  { %v1333_v12 = vmax.f32 %v1296_v47, 0.0 }
 0x3ad   :  { %v1345_v17 = vpack.c.bf16 %v1335_v10, %v1334_v35 }
 0x3ae   :  { %v1344_v48 = vpack.c.bf16 %v1333_v12, %v1332_v58  ;;  %4336 = vmatpush3.bf16.msra.mxu1 %v5402_v50 }
 0x3af   :  { %4337 = vmatprep.subr.bf16.mxu1 %v5406_v23 }
 0x3b0   :  { %v4263_v28 = vpop.f32.mrb[60].mxu0  ;;  %4289 = vmatprep.mubr.bf16.mxu1 %v1344_v48 }
 0x3b1   :  { %v1309_v26 = vpop.f32.mrb[61].mxu0  ;;  %4290 = vmatmul.mubr.bf16.gmra.mrb[56].mxu1 %v1345_v17  ;;  %v1338_v6 = vmax.f32 %v4263_v28, 0.0 }
 0x3b2   :  { %4338 = vmatpush3.bf16.msra.mxu1 %v5406_v23  ;;  %v4264_v40 = vpop.f32.mrb[62].mxu0  ;;  %v1336_v9 = vmax.f32 %v1309_v26, 0.0 }
 0x3b3   :  { %v1339_v53 = vmax.f32 %v4264_v40, 0.0  ;;  %v1312_v36 = vpop.f32.mrb[63].mxu0  ;;  %4339 = vmatprep.subr.bf16.mxu1 %v5410_v56 }
 0x3b4   :  { %v1337_v11 = vmax.f32 %v1312_v36, 0.0 }
 0x3b5   :  { %v1347_v22 = vpack.c.bf16 %v1339_v53, %v1338_v6 }
 0x3b6   :  { %v1346_v15 = vpack.c.bf16 %v1337_v11, %v1336_v9  ;;  %4340 = vmatpush3.bf16.msra.mxu1 %v5410_v56 }
 0x3b7   :  { %4341 = vmatprep.subr.bf16.mxu1 %v5622_v43 }
 0x3b8   :  { %4293 = vmatprep.mubr.bf16.mxu1 %v1346_v15  ;;  %v4315_v50 = vpop.f32.mrb[64].mxu0 }
 0x3b9   :  { %4294 = vmatmul.mubr.bf16.gmra.mrb[60].mxu1 %v1347_v22  ;;  %v1551_v59 = vpop.f32.mrb[65].mxu0  ;;  %v1616_v34 = vmax.f32 %v4315_v50, 0.0 }
 0x3ba   :  { %4342 = vmatpush3.bf16.msra.mxu1 %v5622_v43  ;;  %v4316_v23 = vpop.f32.mrb[66].mxu0  ;;  %v1614_v35 = vmax.f32 %v1551_v59, 0.0 }
 0x3bb   :  { %v1617_v44 = vmax.f32 %v4316_v23, 0.0  ;;  %v1554_v39 = vpop.f32.mrb[67].mxu0  ;;  %4343 = vmatprep.subr.bf16.mxu1 %v5626_v21 }
 0x3bc   :  { %v1615_v10 = vmax.f32 %v1554_v39, 0.0 }
 0x3bd   :  { %v1631_v47 = vpack.c.bf16 %v1617_v44, %v1616_v34 }
 0x3be   :  { %v1630_v58 = vpack.c.bf16 %v1615_v10, %v1614_v35  ;;  %4344 = vmatpush3.bf16.msra.mxu1 %v5626_v21 }
 0x3c0   :  { %v4319_v56 = vpop.f32.mrb[68].mxu0  ;;  %4345 = vmatprep.mubr.bf16.mxu1 %v1630_v58 }
 0x3c1   :  { %v1567_v12 = vpop.f32.mrb[69].mxu0  ;;  %4346 = vmatmul.mubr.bf16.vlgmr.msra.gmra.mrb[64].mxu1 %v1631_v47  ;;  %v1620_v48 = vmax.f32 %v4319_v56, 0.0 }
 0x3c2   :  { %v4320_v17 = vpop.f32.mrb[70].mxu0  ;;  %v1618_v26 = vmax.f32 %v1567_v12, 0.0 }
 0x3c3   :  { %v1621_v28 = vmax.f32 %v4320_v17, 0.0  ;;  %v1570_v43 = vpop.f32.mrb[71].mxu0 }
 0x3c4   :  { %v1619_v40 = vmax.f32 %v1570_v43, 0.0  ;;  %v5674_v43 = vld [vmem:[#allocation2 + $0xb8] sm:$0xff]  }
 0x3c5   :  { %v1633_v6 = vpack.c.bf16 %v1621_v28, %v1620_v48  ;;  %v5670_v28 = vld [vmem:[#allocation2 + $0xb0] sm:$0xff]  }
 0x3c6   :  { %v1632_v53 = vpack.c.bf16 %v1619_v40, %v1618_v26  ;;  %4373 = vmatprep.subr.bf16.mxu0 %v5670_v28  ;;  %v5679_v26 = vld [vmem:[#allocation5 + $0x80] sm:$0xff]   ;;  %v5681_v40 = vld [vmem:[#allocation5 + $0x88] sm:$0xff]  }
 0x3c7   :  { %4374 = vmatpush3.bf16.msra.mxu0 %v5670_v28  ;;  %4393 = vmatprep.subr.bf16.mxu1 %v5679_v26 }
 0x3c8   :  { %v4323_v36 = vpop.f32.mrb[72].mxu0  ;;  %4349 = vmatprep.mubr.bf16.mxu1 %v1632_v53  ;;  %4375 = vmatprep.subr.bf16.mxu0 %v5674_v43  ;;  %v5690_v53 = vld [vmem:[#allocation5 + $0x98] sm:$0xff]  }
 0x3c9   :  { %v1583_v9 = vpop.f32.mrb[73].mxu0  ;;  %4350 = vmatmul.mubr.bf16.gmra.mrb[68].mxu1 %v1633_v6  ;;  %v1624_v22 = vmax.f32 %v4323_v36, 0.0  ;;  %v5686_v6 = vld [vmem:[#allocation5 + $0x90] sm:$0xff]   ;;  %v5694_v36 = vld [vmem:[#allocation5 + $0xa0] sm:$0xff]  }
 0x3ca   :  { %v4324_v11 = vpop.f32.mrb[74].mxu0  ;;  %v1622_v50 = vmax.f32 %v1583_v9, 0.0  ;;  %4394 = vmatpush3.bf16.msra.mxu1 %v5679_v26  ;;  %v5698_v9 = vld [vmem:[#allocation5 + $0xa8] sm:$0xff]  }
 0x3cb   :  { %v1625_v15 = vmax.f32 %v4324_v11, 0.0  ;;  %v1586_v21 = vpop.f32.mrb[75].mxu0  ;;  %4376 = vmatpush3.bf16.msra.mxu0 %v5674_v43  ;;  %4395 = vmatprep.subr.bf16.mxu1 %v5681_v40 }
 0x3cc   :  { %v1623_v59 = vmax.f32 %v1586_v21, 0.0  ;;  %4425 = vmatprep.subr.bf16.mxu0 %v5631_v57 }
 0x3cd   :  { %v1635_v23 = vpack.c.bf16 %v1625_v15, %v1624_v22  ;;  %v6648_v15 = vmax.f32 %v5416_v5, 0.0 }
 0x3ce   :  { %v1634_v34 = vpack.c.bf16 %v1623_v59, %v1622_v50  ;;  %4396 = vmatpush3.bf16.msra.mxu1 %v5681_v40  ;;  %v6649_v59 = vmax.f32 %v5419_v29, 0.0 }
 0x3cf   :  { %4397 = vmatprep.subr.bf16.mxu1 %v5686_v6 }
 0x3d0   :  { %v4327_v44 = vpop.f32.mrb[76].mxu0  ;;  %4353 = vmatprep.mubr.bf16.mxu1 %v1634_v34  ;;  %v6650_v34 = vmax.f32 %v5422_v3, 0.0 }
 0x3d1   :  { %v1599_v39 = vpop.f32.mrb[77].mxu0  ;;  %4354 = vmatmul.mubr.bf16.gmra.mrb[72].mxu1 %v1635_v23  ;;  %v1628_v10 = vmax.f32 %v4327_v44, 0.0 }
 0x3d2   :  { %v4328_v35 = vpop.f32.mrb[78].mxu0  ;;  %v1626_v56 = vmax.f32 %v1599_v39, 0.0  ;;  %4398 = vmatpush3.bf16.msra.mxu1 %v5686_v6 }
 0x3d3   :  { %v1629_v47 = vmax.f32 %v4328_v35, 0.0  ;;  %v1602_v58 = vpop.f32.mrb[79].mxu0  ;;  %4399 = vmatprep.subr.bf16.mxu1 %v5690_v53  ;;  %v6651_v35 = vmax.f32 %v5425_v2, 0.0 }
 0x3d4   :  { %v1627_v12 = vmax.f32 %v1602_v58, 0.0 }
 0x3d5   :  { %v1637_v17 = vpack.c.bf16 %v1629_v47, %v1628_v10 }
 0x3d6   :  { %v1636_v48 = vpack.c.bf16 %v1627_v12, %v1626_v56  ;;  %4400 = vmatpush3.bf16.msra.mxu1 %v5690_v53 }
 0x3d7   :  { %4401 = vmatprep.subr.bf16.mxu1 %v5694_v36 }
 0x3d8   :  { %4357 = vmatprep.mubr.bf16.mxu1 %v1636_v48 }
 0x3d9   :  { %4358 = vmatmul.mubr.bf16.gmra.mrb[76].mxu1 %v1637_v17  ;;  %v6652_v17 = vmax.f32 %v5440_v32, 0.0 }
 0x3da   :  { %4402 = vmatpush3.bf16.msra.mxu1 %v5694_v36 }
 0x3db   :  { %4403 = vmatprep.subr.bf16.mxu1 %v5698_v9 }
 0x3de   :  { %4404 = vmatpush3.bf16.msra.mxu1 %v5698_v9 }
 0x474   :  { %v4283_v11 = vpop.f32.mrb[48].mxu1 }
 0x475   :  { %v1430_v22 = vpop.f32.mrb[49].mxu1  ;;  %v5709_v23 = vadd.f32 %v4283_v11, %v6649_v59 }
 0x476   :  { %v5705_v21 = vadd.f32 %v1430_v22, %v6648_v15  ;;  %v4284_v50 = vpop.f32.mrb[50].mxu1  ;;  %v6653_v22 = vmax.f32 %v5443_v31, 0.0 }
 0x477   :  { %v5713_v44 = vadd.f32 %v4284_v50, %v6650_v34  ;;  %v1433_v39 = vpop.f32.mrb[51].mxu1  ;;  %v6614_v56 = vmax.f32 %v5709_v23, 0.0  ;;  %v6654_v50 = vmax.f32 %v5446_v37, 0.0 }
 0x478   :  { %v5717_v10 = vadd.f32 %v1433_v39, %v6651_v35  ;;  %v6615_v5 = vmax.f32 %v5705_v21, 0.0  ;;  %v6655_v39 = vmax.f32 %v5449_v55, 0.0 }
 0x479   :  { %v6613_v47 = vmax.f32 %v5713_v44, 0.0 }
 0x47a   :  { %v6612_v58 = vmax.f32 %v5717_v10, 0.0 }
 0x47b   :  { %v1786_v2 = vpack.c.bf16 %v6613_v47, %v6614_v56 }
 0x47c   :  { %v1785_v29 = vpack.c.bf16 %v6612_v58, %v6615_v5  ;;  %v4287_v3 = vpop.f32.mrb[52].mxu1 }
 0x47d   :  { %v1446_v12 = vpop.f32.mrb[53].mxu1  ;;  %v5737_v15 = vadd.f32 %v4287_v3, %v6653_v22  ;;  %v6657_v22 = vmax.f32 %v5471_v18, 0.0 }
 0x47e   :  { %v5733_v48 = vadd.f32 %v1446_v12, %v6652_v17  ;;  %v4288_v11 = vpop.f32.mrb[54].mxu1  ;;  %4377 = vmatprep.mubr.bf16.mxu0 %v1785_v29  ;;  %v6656_v12 = vmax.f32 %v5468_v30, 0.0 }
 0x47f   :  { %v5741_v59 = vadd.f32 %v4288_v11, %v6654_v50  ;;  %v1449_v34 = vpop.f32.mrb[55].mxu1  ;;  %4378 = vmatmul.mubr.bf16.vlgmr.msra.gmra.mrb[80].mxu0 %v1786_v2  ;;  %v6610_v37 = vmax.f32 %v5737_v15, 0.0 }
 0x480   :  { %v5745_v35 = vadd.f32 %v1449_v34, %v6655_v39  ;;  %4426 = vmatpush3.bf16.msra.mxu0 %v5631_v57  ;;  %v6611_v31 = vmax.f32 %v5733_v48, 0.0 }
 0x481   :  { %v6585_v32 = vmax.f32 %v5741_v59, 0.0  ;;  %4427 = vmatprep.subr.bf16.mxu0 %v5633_v38 }
 0x482   :  { %v6584_v29 = vmax.f32 %v5745_v35, 0.0 }
 0x483   :  { %v1788_v57 = vpack.c.bf16 %v6585_v32, %v6610_v37 }
 0x484   :  { %v1787_v3 = vpack.c.bf16 %v6584_v29, %v6611_v31  ;;  %4428 = vmatpush3.bf16.msra.mxu0 %v5633_v38  ;;  %v4291_v55 = vpop.f32.mrb[56].mxu1  ;;  %v6658_v38 = vmax.f32 %v5474_v46, 0.0  ;;  %v6659_v29 = vmax.f32 %v5477_v49, 0.0 }
 0x485   :  { %v1462_v2 = vpop.f32.mrb[57].mxu1  ;;  %4429 = vmatprep.subr.bf16.mxu0 %v5638_v25  ;;  %v5769_v50 = vadd.f32 %v4291_v55, %v6657_v22 }
 0x486   :  { %v5765_v17 = vadd.f32 %v1462_v2, %v6656_v12  ;;  %v4292_v11 = vpop.f32.mrb[58].mxu1  ;;  %4381 = vmatprep.mubr.bf16.mxu0 %v1787_v3 }
 0x487   :  { %v5773_v34 = vadd.f32 %v4292_v11, %v6658_v38  ;;  %v1465_v39 = vpop.f32.mrb[59].mxu1  ;;  %4382 = vmatmul.mubr.bf16.gmra.mrb[84].mxu0 %v1788_v57  ;;  %v6608_v46 = vmax.f32 %v5769_v50, 0.0  ;;  %v6660_v57 = vmax.f32 %v5496_v7, 0.0  ;;  %v6661_v11 = vmax.f32 %v5499_v33, 0.0 }
 0x488   :  { %v5777_v32 = vadd.f32 %v1465_v39, %v6659_v29  ;;  %4430 = vmatpush3.bf16.msra.mxu0 %v5638_v25  ;;  %v6609_v18 = vmax.f32 %v5765_v17, 0.0 }
 0x489   :  { %v6587_v30 = vmax.f32 %v5773_v34, 0.0  ;;  %4431 = vmatprep.subr.bf16.mxu0 %v5642_v8 }
 0x48a   :  { %v6586_v3 = vmax.f32 %v5777_v32, 0.0 }
 0x48b   :  { %v1790_v25 = vpack.c.bf16 %v6587_v30, %v6608_v46 }
 0x48c   :  { %v1789_v55 = vpack.c.bf16 %v6586_v3, %v6609_v18  ;;  %4432 = vmatpush3.bf16.msra.mxu0 %v5642_v8  ;;  %v4295_v49 = vpop.f32.mrb[60].mxu1  ;;  %v6662_v8 = vmax.f32 %v5502_v52, 0.0  ;;  %v6663_v3 = vmax.f32 %v5505_v63, 0.0 }
 0x48d   :  { %v1478_v29 = vpop.f32.mrb[61].mxu1  ;;  %4433 = vmatprep.subr.bf16.mxu0 %v5646_v61  ;;  %v5801_v22 = vadd.f32 %v4295_v49, %v6661_v11 }
 0x48e   :  { %v5797_v2 = vadd.f32 %v1478_v29, %v6660_v57  ;;  %v4296_v12 = vpop.f32.mrb[62].mxu1  ;;  %4385 = vmatprep.mubr.bf16.mxu0 %v1789_v55 }
 0x48f   :  { %v5805_v38 = vadd.f32 %v4296_v12, %v6662_v8  ;;  %v1481_v39 = vpop.f32.mrb[63].mxu1  ;;  %4386 = vmatmul.mubr.bf16.gmra.mrb[88].mxu0 %v1790_v25  ;;  %v6606_v52 = vmax.f32 %v5801_v22, 0.0  ;;  %v6664_v25 = vmax.f32 %v5524_v0, 0.0  ;;  %v6665_v12 = vmax.f32 %v5527_v42, 0.0 }
 0x490   :  { %v5809_v30 = vadd.f32 %v1481_v39, %v6663_v3  ;;  %4434 = vmatpush3.bf16.msra.mxu0 %v5646_v61  ;;  %v6607_v33 = vmax.f32 %v5797_v2, 0.0 }
 0x491   :  { %v6589_v7 = vmax.f32 %v5805_v38, 0.0  ;;  %4435 = vmatprep.subr.bf16.mxu0 %v5650_v24 }
 0x492   :  { %v6588_v55 = vmax.f32 %v5809_v30, 0.0 }
 0x493   :  { %v1792_v61 = vpack.c.bf16 %v6589_v7, %v6606_v52 }
 0x494   :  { %v1791_v49 = vpack.c.bf16 %v6588_v55, %v6607_v33  ;;  %4436 = vmatpush3.bf16.msra.mxu0 %v5650_v24  ;;  %v4347_v63 = vpop.f32.mrb[64].mxu1  ;;  %v6666_v24 = vmax.f32 %v5530_v51, 0.0  ;;  %v6667_v55 = vmax.f32 %v5533_v41, 0.0 }
 0x495   :  { %v1672_v3 = vpop.f32.mrb[65].mxu1  ;;  %4437 = vmatprep.subr.bf16.mxu0 %v5670_v28  ;;  %v5833_v11 = vadd.f32 %v4347_v63, %v6665_v12 }
 0x496   :  { %v5829_v29 = vadd.f32 %v1672_v3, %v6664_v25  ;;  %v4348_v57 = vpop.f32.mrb[66].mxu1  ;;  %4389 = vmatprep.mubr.bf16.mxu0 %v1791_v49 }
 0x497   :  { %v5837_v8 = vadd.f32 %v4348_v57, %v6666_v24  ;;  %v1675_v39 = vpop.f32.mrb[67].mxu1  ;;  %4390 = vmatmul.mubr.bf16.gmra.mrb[92].mxu0 %v1792_v61  ;;  %v6594_v51 = vmax.f32 %v5833_v11, 0.0  ;;  %v6668_v61 = vmax.f32 %v5551_v62, 0.0  ;;  %v6669_v57 = vmax.f32 %v5554_v4, 0.0 }
 0x498   :  { %v5841_v7 = vadd.f32 %v1675_v39, %v6667_v55  ;;  %4438 = vmatpush3.bf16.msra.mxu0 %v5670_v28  ;;  %v6605_v42 = vmax.f32 %v5829_v29, 0.0  ;;  %v6670_v24 = vmax.f32 %v5557_v1, 0.0 }
 0x499   :  { %v6591_v0 = vmax.f32 %v5837_v8, 0.0  ;;  %4439 = vmatprep.subr.bf16.mxu0 %v5674_v43 }
 0x49a   :  { %v6590_v49 = vmax.f32 %v5841_v7, 0.0 }
 0x49b   :  { %v2124_v28 = vpack.c.bf16 %v6591_v0, %v6594_v51  ;;  %v6675_v51 = vmax.f32 %v5584_v16, 0.0 }
 0x49c   :  { %v2123_v63 = vpack.c.bf16 %v6590_v49, %v6605_v42  ;;  %4440 = vmatpush3.bf16.msra.mxu0 %v5674_v43  ;;  %v4351_v41 = vpop.f32.mrb[68].mxu1  ;;  %v6671_v49 = vmax.f32 %v5560_v19, 0.0 }
 0x49d   :  { %v1688_v55 = vpop.f32.mrb[69].mxu1  ;;  %v5864_v12 = vadd.f32 %v4351_v41, %v6669_v57  ;;  %v6673_v57 = vmax.f32 %v5578_v27, 0.0 }
 0x49e   :  { %v5860_v3 = vadd.f32 %v1688_v55, %v6668_v61  ;;  %v4352_v25 = vpop.f32.mrb[70].mxu1  ;;  %4441 = vmatprep.mubr.bf16.mxu0 %v2123_v63 }
 0x49f   :  { %v5868_v43 = vadd.f32 %v4352_v25, %v6670_v24  ;;  %v1691_v39 = vpop.f32.mrb[71].mxu1  ;;  %4442 = vmatmul.mubr.bf16.vlgmr.msra.gmra.mrb[96].mxu0 %v2124_v28  ;;  %v6598_v4 = vmax.f32 %v5864_v12, 0.0  ;;  %v6672_v28 = vmax.f32 %v5575_v60, 0.0 }
 0x4a0   :  { %v5872_v0 = vadd.f32 %v1691_v39, %v6671_v49  ;;  %v6593_v55 = vmax.f32 %v5860_v3, 0.0  ;;  %v6674_v39 = vmax.f32 %v5581_v45, 0.0 }
 0x4a1   :  { %v6595_v62 = vmax.f32 %v5868_v43, 0.0 }
 0x4a2   :  { %v6592_v63 = vmax.f32 %v5872_v0, 0.0 }
 0x4a3   :  { %v2126_v19 = vpack.c.bf16 %v6595_v62, %v6598_v4  ;;  %v6679_v4 = vmax.f32 %v5608_v13, 0.0 }
 0x4a4   :  { %v2125_v1 = vpack.c.bf16 %v6592_v63, %v6593_v55  ;;  %v4355_v41 = vpop.f32.mrb[72].mxu1 }
 0x4a5   :  { %v1704_v49 = vpop.f32.mrb[73].mxu1  ;;  %v5892_v24 = vadd.f32 %v4355_v41, %v6673_v57 }
 0x4a6   :  { %v5888_v61 = vadd.f32 %v1704_v49, %v6672_v28  ;;  %v4356_v25 = vpop.f32.mrb[74].mxu1  ;;  %4445 = vmatprep.mubr.bf16.mxu0 %v2125_v1 }
 0x4a7   :  { %v5896_v63 = vadd.f32 %v4356_v25, %v6674_v39  ;;  %v1707_v55 = vpop.f32.mrb[75].mxu1  ;;  %4446 = vmatmul.mubr.bf16.gmra.mrb[100].mxu0 %v2126_v19  ;;  %v6604_v27 = vmax.f32 %v5892_v24, 0.0  ;;  %v6677_v25 = vmax.f32 %v5602_v54, 0.0  ;;  %v6678_v39 = vmax.f32 %v5605_v14, 0.0 }
 0x4a8   :  { %v5900_v62 = vadd.f32 %v1707_v55, %v6675_v51  ;;  %v6597_v49 = vmax.f32 %v5888_v61, 0.0  ;;  %v6676_v55 = vmax.f32 %v5599_v20, 0.0 }
 0x4a9   :  { %v6599_v60 = vmax.f32 %v5896_v63, 0.0 }
 0x4aa   :  { %v6596_v1 = vmax.f32 %v5900_v62, 0.0 }
 0x4ab   :  { %v2128_v16 = vpack.c.bf16 %v6599_v60, %v6604_v27 }
 0x4ac   :  { %v2127_v45 = vpack.c.bf16 %v6596_v1, %v6597_v49  ;;  %v4359_v41 = vpop.f32.mrb[76].mxu1 }
 0x4ad   :  { %v1720_v51 = vpop.f32.mrb[77].mxu1  ;;  %v5920_v57 = vadd.f32 %v4359_v41, %v6677_v25  ;;  %v5951_v41 = vld [vmem:[#allocation2 + $0xc0] sm:$0xff]  }
 0x4ae   :  { %v5916_v19 = vadd.f32 %v1720_v51, %v6676_v55  ;;  %v4360_v28 = vpop.f32.mrb[78].mxu1  ;;  %4449 = vmatprep.mubr.bf16.mxu0 %v2127_v45  ;;  %4489 = vmatprep.subr.bf16.mxu0 %v5951_v41  ;;  %v5958_v55 = vld [vmem:[#allocation2 + $0xd0] sm:$0xff]   ;;  %v5966_v25 = vld [vmem:[#allocation2 + $0xe0] sm:$0xff]  }
 0x4af   :  { %v5924_v1 = vadd.f32 %v4360_v28, %v6678_v39  ;;  %v1723_v49 = vpop.f32.mrb[79].mxu1  ;;  %4450 = vmatmul.mubr.bf16.gmra.mrb[104].mxu0 %v2128_v16  ;;  %v6602_v54 = vmax.f32 %v5920_v57, 0.0  ;;  %v5953_v16 = vld [vmem:[#allocation2 + $0xc8] sm:$0xff]   ;;  %v5962_v28 = vld [vmem:[#allocation2 + $0xd8] sm:$0xff]  }
 0x4b0   :  { %v5928_v60 = vadd.f32 %v1723_v49, %v6679_v4  ;;  %v6603_v51 = vmax.f32 %v5916_v19, 0.0  ;;  %v5942_v4 = vld [vmem:[#allocation5 + $0xb0] sm:$0xff]   ;;  %v5946_v49 = vld [vmem:[#allocation5 + $0xb8] sm:$0xff]   ;;  %4490 = vmatpush3.bf16.msra.mxu0 %v5951_v41  ;;  %v5970_v39 = vld [vmem:[#allocation2 + $0xe8] sm:$0xff]  }
 0x4b1   :  { %v6601_v20 = vmax.f32 %v5924_v1, 0.0  ;;  %4405 = vmatprep.subr.bf16.mxu1 %v5942_v4  ;;  %4491 = vmatprep.subr.bf16.mxu0 %v5953_v16 }
 0x4b2   :  { %v6600_v45 = vmax.f32 %v5928_v60, 0.0  ;;  %4406 = vmatpush3.bf16.msra.mxu1 %v5942_v4 }
 0x4b3   :  { %v2130_v13 = vpack.c.bf16 %v6601_v20, %v6602_v54  ;;  %4407 = vmatprep.subr.bf16.mxu1 %v5946_v49 }
 0x4b4   :  { %v2129_v14 = vpack.c.bf16 %v6600_v45, %v6603_v51  ;;  %4492 = vmatpush3.bf16.msra.mxu0 %v5953_v16 }
 0x4b5   :  { %4493 = vmatprep.subr.bf16.mxu0 %v5958_v55 }
 0x4b6   :  { %4453 = vmatprep.mubr.bf16.mxu0 %v2129_v14  ;;  %4408 = vmatpush3.bf16.msra.mxu1 %v5946_v49 }
 0x4b7   :  { %4454 = vmatmul.mubr.bf16.gmra.mrb[108].mxu0 %v2130_v13  ;;  %4457 = vmatprep.subr.bf16.mxu1 %v5679_v26 }
 0x4b8   :  { %4494 = vmatpush3.bf16.msra.mxu0 %v5958_v55 }
 0x4b9   :  { %4495 = vmatprep.subr.bf16.mxu0 %v5962_v28 }
 0x4bc   :  { %4496 = vmatpush3.bf16.msra.mxu0 %v5962_v28 }
 0x4bd   :  { %4497 = vmatprep.subr.bf16.mxu0 %v5966_v25 }
 0x4c0   :  { %4498 = vmatpush3.bf16.msra.mxu0 %v5966_v25 }
 0x4c1   :  { %4499 = vmatprep.subr.bf16.mxu0 %v5970_v39 }
 0x4c4   :  { %4500 = vmatpush3.bf16.msra.mxu0 %v5970_v39 }
 0x552   :  { %v4379_v14 = vpop.f32.mrb[80].mxu0 }
 0x553   :  { %v1875_v13 = vpop.f32.mrb[81].mxu0  ;;  %v1940_v20 = vmax.f32 %v4379_v14, 0.0 }
 0x554   :  { %v4380_v45 = vpop.f32.mrb[82].mxu0  ;;  %v1938_v27 = vmax.f32 %v1875_v13, 0.0 }
 0x555   :  { %v1941_v54 = vmax.f32 %v4380_v45, 0.0  ;;  %v1878_v51 = vpop.f32.mrb[83].mxu0 }
 0x556   :  { %v1939_v42 = vmax.f32 %v1878_v51, 0.0 }
 0x557   :  { %v1955_v52 = vpack.c.bf16 %v1941_v54, %v1940_v20 }
 0x558   :  { %v1954_v33 = vpack.c.bf16 %v1939_v42, %v1938_v27 }
 0x55a   :  { %v4383_v46 = vpop.f32.mrb[84].mxu0  ;;  %4409 = vmatprep.mubr.bf16.mxu1 %v1954_v33 }
 0x55b   :  { %v1891_v18 = vpop.f32.mrb[85].mxu0  ;;  %4410 = vmatmul.mubr.bf16.vlgmr.msra.gmra.mrb[80].mxu1 %v1955_v52  ;;  %v1944_v31 = vmax.f32 %v4383_v46, 0.0 }
 0x55c   :  { %4458 = vmatpush3.bf16.msra.mxu1 %v5679_v26  ;;  %v4384_v37 = vpop.f32.mrb[86].mxu0  ;;  %v1942_v56 = vmax.f32 %v1891_v18, 0.0 }
 0x55d   :  { %v1945_v58 = vmax.f32 %v4384_v37, 0.0  ;;  %v1894_v47 = vpop.f32.mrb[87].mxu0  ;;  %4459 = vmatprep.subr.bf16.mxu1 %v5681_v40 }
 0x55e   :  { %v1943_v14 = vmax.f32 %v1894_v47, 0.0 }
 0x55f   :  { %v1957_v45 = vpack.c.bf16 %v1945_v58, %v1944_v31 }
 0x560   :  { %v1956_v5 = vpack.c.bf16 %v1943_v14, %v1942_v56  ;;  %4460 = vmatpush3.bf16.msra.mxu1 %v5681_v40 }
 0x561   :  { %4461 = vmatprep.subr.bf16.mxu1 %v5686_v6 }
 0x562   :  { %v4387_v42 = vpop.f32.mrb[88].mxu0  ;;  %4413 = vmatprep.mubr.bf16.mxu1 %v1956_v5 }
 0x563   :  { %v1907_v33 = vpop.f32.mrb[89].mxu0  ;;  %4414 = vmatmul.mubr.bf16.gmra.mrb[84].mxu1 %v1957_v45  ;;  %v1948_v46 = vmax.f32 %v4387_v42, 0.0 }
 0x564   :  { %4462 = vmatpush3.bf16.msra.mxu1 %v5686_v6  ;;  %v4388_v26 = vpop.f32.mrb[90].mxu0  ;;  %v1946_v18 = vmax.f32 %v1907_v33, 0.0 }
 0x565   :  { %v1949_v37 = vmax.f32 %v4388_v26, 0.0  ;;  %v1910_v52 = vpop.f32.mrb[91].mxu0  ;;  %4463 = vmatprep.subr.bf16.mxu1 %v5690_v53 }
 0x566   :  { %v1947_v47 = vmax.f32 %v1910_v52, 0.0 }
 0x567   :  { %v1959_v58 = vpack.c.bf16 %v1949_v37, %v1948_v46 }
 0x568   :  { %v1958_v56 = vpack.c.bf16 %v1947_v47, %v1946_v18  ;;  %4464 = vmatpush3.bf16.msra.mxu1 %v5690_v53 }
 0x569   :  { %4465 = vmatprep.subr.bf16.mxu1 %v5694_v36 }
 0x56a   :  { %v4391_v40 = vpop.f32.mrb[92].mxu0  ;;  %4417 = vmatprep.mubr.bf16.mxu1 %v1958_v56 }
 0x56b   :  { %v1923_v5 = vpop.f32.mrb[93].mxu0  ;;  %4418 = vmatmul.mubr.bf16.gmra.mrb[88].mxu1 %v1959_v58  ;;  %v1952_v31 = vmax.f32 %v4391_v40, 0.0 }
 0x56c   :  { %4466 = vmatpush3.bf16.msra.mxu1 %v5694_v36  ;;  %v4392_v6 = vpop.f32.mrb[94].mxu0  ;;  %v1950_v51 = vmax.f32 %v1923_v5, 0.0 }
 0x56d   :  { %v1953_v27 = vmax.f32 %v4392_v6, 0.0  ;;  %v1926_v20 = vpop.f32.mrb[95].mxu0  ;;  %4467 = vmatprep.subr.bf16.mxu1 %v5698_v9 }
 0x56e   :  { %v1951_v54 = vmax.f32 %v1926_v20, 0.0 }
 0x56f   :  { %v1961_v13 = vpack.c.bf16 %v1953_v27, %v1952_v31 }
 0x570   :  { %v1960_v14 = vpack.c.bf16 %v1951_v54, %v1950_v51  ;;  %4468 = vmatpush3.bf16.msra.mxu1 %v5698_v9 }
 0x571   :  { %4469 = vmatprep.subr.bf16.mxu1 %v5942_v4 }
 0x572   :  { %4421 = vmatprep.mubr.bf16.mxu1 %v1960_v14  ;;  %v4443_v53 = vpop.f32.mrb[96].mxu0 }
 0x573   :  { %4422 = vmatmul.mubr.bf16.gmra.mrb[92].mxu1 %v1961_v13  ;;  %v2165_v45 = vpop.f32.mrb[97].mxu0  ;;  %v2230_v42 = vmax.f32 %v4443_v53, 0.0 }
 0x574   :  { %4470 = vmatpush3.bf16.msra.mxu1 %v5942_v4  ;;  %v4444_v36 = vpop.f32.mrb[98].mxu0  ;;  %v2228_v46 = vmax.f32 %v2165_v45, 0.0 }
 0x575   :  { %v2231_v33 = vmax.f32 %v4444_v36, 0.0  ;;  %v2168_v26 = vpop.f32.mrb[99].mxu0  ;;  %4471 = vmatprep.subr.bf16.mxu1 %v5946_v49 }
 0x576   :  { %v2229_v37 = vmax.f32 %v2168_v26, 0.0 }
 0x577   :  { %v2245_v52 = vpack.c.bf16 %v2231_v33, %v2230_v42 }
 0x578   :  { %v2244_v18 = vpack.c.bf16 %v2229_v37, %v2228_v46  ;;  %4472 = vmatpush3.bf16.msra.mxu1 %v5946_v49 }
 0x57a   :  { %v4447_v9 = vpop.f32.mrb[100].mxu0  ;;  %4473 = vmatprep.mubr.bf16.mxu1 %v2244_v18 }
 0x57b   :  { %v2181_v47 = vpop.f32.mrb[101].mxu0  ;;  %4474 = vmatmul.mubr.bf16.vlgmr.msra.gmra.mrb[96].mxu1 %v2245_v52  ;;  %v2234_v56 = vmax.f32 %v4447_v9, 0.0 }
 0x57c   :  { %v4448_v58 = vpop.f32.mrb[102].mxu0  ;;  %v2232_v5 = vmax.f32 %v2181_v47, 0.0 }
 0x57d   :  { %v2235_v40 = vmax.f32 %v4448_v58, 0.0  ;;  %v2184_v4 = vpop.f32.mrb[103].mxu0 }
 0x57e   :  { %v2233_v6 = vmax.f32 %v2184_v4, 0.0  ;;  %v5994_v4 = vld [vmem:[#allocation2 + $0xf8] sm:$0xff]  }
 0x57f   :  { %v2247_v31 = vpack.c.bf16 %v2235_v40, %v2234_v56  ;;  %v5990_v40 = vld [vmem:[#allocation2 + $0xf0] sm:$0xff]  }
 0x580   :  { %v2246_v27 = vpack.c.bf16 %v2233_v6, %v2232_v5  ;;  %4501 = vmatprep.subr.bf16.mxu0 %v5990_v40  ;;  %v5999_v5 = vld [vmem:[#allocation5 + $0xc0] sm:$0xff]   ;;  %v6001_v6 = vld [vmem:[#allocation5 + $0xc8] sm:$0xff]  }
 0x581   :  { %4502 = vmatpush3.bf16.msra.mxu0 %v5990_v40  ;;  %4521 = vmatprep.subr.bf16.mxu1 %v5999_v5 }
 0x582   :  { %v4451_v20 = vpop.f32.mrb[104].mxu0  ;;  %4477 = vmatprep.mubr.bf16.mxu1 %v2246_v27  ;;  %4503 = vmatprep.subr.bf16.mxu0 %v5994_v4  ;;  %v6010_v27 = vld [vmem:[#allocation5 + $0xd8] sm:$0xff]  }
 0x583   :  { %v2197_v51 = vpop.f32.mrb[105].mxu0  ;;  %4478 = vmatmul.mubr.bf16.gmra.mrb[100].mxu1 %v2247_v31  ;;  %v2238_v13 = vmax.f32 %v4451_v20, 0.0  ;;  %v6006_v31 = vld [vmem:[#allocation5 + $0xd0] sm:$0xff]   ;;  %v6014_v20 = vld [vmem:[#allocation5 + $0xe0] sm:$0xff]  }
 0x584   :  { %v4452_v54 = vpop.f32.mrb[106].mxu0  ;;  %v2236_v53 = vmax.f32 %v2197_v51, 0.0  ;;  %4522 = vmatpush3.bf16.msra.mxu1 %v5999_v5  ;;  %v6018_v51 = vld [vmem:[#allocation5 + $0xe8] sm:$0xff]  }
 0x585   :  { %v2239_v14 = vmax.f32 %v4452_v54, 0.0  ;;  %v2200_v49 = vpop.f32.mrb[107].mxu0  ;;  %4504 = vmatpush3.bf16.msra.mxu0 %v5994_v4  ;;  %4523 = vmatprep.subr.bf16.mxu1 %v6001_v6 }
 0x586   :  { %v2237_v45 = vmax.f32 %v2200_v49, 0.0  ;;  %4553 = vmatprep.subr.bf16.mxu0 %v5951_v41 }
 0x587   :  { %v2249_v36 = vpack.c.bf16 %v2239_v14, %v2238_v13  ;;  %v6680_v14 = vmax.f32 %v5705_v21, 0.0 }
 0x588   :  { %v2248_v42 = vpack.c.bf16 %v2237_v45, %v2236_v53  ;;  %4524 = vmatpush3.bf16.msra.mxu1 %v6001_v6  ;;  %v6681_v45 = vmax.f32 %v5709_v23, 0.0 }
 0x589   :  { %4525 = vmatprep.subr.bf16.mxu1 %v6006_v31 }
 0x58a   :  { %v4455_v33 = vpop.f32.mrb[108].mxu0  ;;  %4481 = vmatprep.mubr.bf16.mxu1 %v2248_v42  ;;  %v6682_v42 = vmax.f32 %v5713_v44, 0.0 }
 0x58b   :  { %v2213_v26 = vpop.f32.mrb[109].mxu0  ;;  %4482 = vmatmul.mubr.bf16.gmra.mrb[104].mxu1 %v2249_v36  ;;  %v2242_v37 = vmax.f32 %v4455_v33, 0.0 }
 0x58c   :  { %v4456_v46 = vpop.f32.mrb[110].mxu0  ;;  %v2240_v9 = vmax.f32 %v2213_v26, 0.0  ;;  %4526 = vmatpush3.bf16.msra.mxu1 %v6006_v31 }
 0x58d   :  { %v2243_v52 = vmax.f32 %v4456_v46, 0.0  ;;  %v2216_v18 = vpop.f32.mrb[111].mxu0  ;;  %4527 = vmatprep.subr.bf16.mxu1 %v6010_v27  ;;  %v6683_v46 = vmax.f32 %v5717_v10, 0.0 }
 0x58e   :  { %v2241_v47 = vmax.f32 %v2216_v18, 0.0 }
 0x58f   :  { %v2251_v58 = vpack.c.bf16 %v2243_v52, %v2242_v37 }
 0x590   :  { %v2250_v56 = vpack.c.bf16 %v2241_v47, %v2240_v9  ;;  %4528 = vmatpush3.bf16.msra.mxu1 %v6010_v27 }
 0x591   :  { %4529 = vmatprep.subr.bf16.mxu1 %v6014_v20 }
 0x592   :  { %4485 = vmatprep.mubr.bf16.mxu1 %v2250_v56 }
 0x593   :  { %4486 = vmatmul.mubr.bf16.gmra.mrb[108].mxu1 %v2251_v58  ;;  %v6684_v58 = vmax.f32 %v5733_v48, 0.0 }
 0x594   :  { %4530 = vmatpush3.bf16.msra.mxu1 %v6014_v20 }
 0x595   :  { %4531 = vmatprep.subr.bf16.mxu1 %v6018_v51 }
 0x598   :  { %4532 = vmatpush3.bf16.msra.mxu1 %v6018_v51 }
 0x62e   :  { %v4411_v54 = vpop.f32.mrb[80].mxu1 }
 0x62f   :  { %v2044_v13 = vpop.f32.mrb[81].mxu1  ;;  %v6029_v36 = vadd.f32 %v4411_v54, %v6681_v45 }
 0x630   :  { %v6025_v49 = vadd.f32 %v2044_v13, %v6680_v14  ;;  %v4412_v53 = vpop.f32.mrb[82].mxu1  ;;  %v6685_v13 = vmax.f32 %v5737_v15, 0.0 }
 0x631   :  { %v6033_v33 = vadd.f32 %v4412_v53, %v6682_v42  ;;  %v2047_v26 = vpop.f32.mrb[83].mxu1  ;;  %v6647_v9 = vmax.f32 %v6029_v36, 0.0  ;;  %v6686_v53 = vmax.f32 %v5741_v59, 0.0 }
 0x632   :  { %v6037_v37 = vadd.f32 %v2047_v26, %v6683_v46  ;;  %v6646_v21 = vmax.f32 %v6025_v49, 0.0  ;;  %v6687_v26 = vmax.f32 %v5745_v35, 0.0 }
 0x633   :  { %v6645_v52 = vmax.f32 %v6033_v33, 0.0 }
 0x634   :  { %v6644_v18 = vmax.f32 %v6037_v37, 0.0 }
 0x635   :  { %v2400_v10 = vpack.c.bf16 %v6645_v52, %v6647_v9 }
 0x636   :  { %v2399_v23 = vpack.c.bf16 %v6644_v18, %v6646_v21  ;;  %v4415_v44 = vpop.f32.mrb[84].mxu1 }
 0x637   :  { %v2060_v47 = vpop.f32.mrb[85].mxu1  ;;  %v6057_v14 = vadd.f32 %v4415_v44, %v6685_v13  ;;  %v6689_v13 = vmax.f32 %v5769_v50, 0.0 }
 0x638   :  { %v6053_v56 = vadd.f32 %v2060_v47, %v6684_v58  ;;  %v4416_v54 = vpop.f32.mrb[86].mxu1  ;;  %4505 = vmatprep.mubr.bf16.mxu0 %v2399_v23  ;;  %v6688_v47 = vmax.f32 %v5765_v17, 0.0 }
 0x639   :  { %v6061_v45 = vadd.f32 %v4416_v54, %v6686_v53  ;;  %v2063_v42 = vpop.f32.mrb[87].mxu1  ;;  %4506 = vmatmul.mubr.bf16.vlgmr.msra.gmra.mrb[112].mxu0 %v2400_v10  ;;  %v6643_v59 = vmax.f32 %v6057_v14, 0.0 }
 0x63a   :  { %v6065_v46 = vadd.f32 %v2063_v42, %v6687_v26  ;;  %4554 = vmatpush3.bf16.msra.mxu0 %v5951_v41  ;;  %v6642_v15 = vmax.f32 %v6053_v56, 0.0 }
 0x63b   :  { %v6617_v48 = vmax.f32 %v6061_v45, 0.0  ;;  %4555 = vmatprep.subr.bf16.mxu0 %v5953_v16 }
 0x63c   :  { %v6616_v23 = vmax.f32 %v6065_v46, 0.0 }
 0x63d   :  { %v2402_v41 = vpack.c.bf16 %v6617_v48, %v6643_v59 }
 0x63e   :  { %v2401_v44 = vpack.c.bf16 %v6616_v23, %v6642_v15  ;;  %4556 = vmatpush3.bf16.msra.mxu0 %v5953_v16  ;;  %v4419_v35 = vpop.f32.mrb[88].mxu1  ;;  %v6690_v16 = vmax.f32 %v5773_v34, 0.0  ;;  %v6691_v23 = vmax.f32 %v5777_v32, 0.0 }
 0x63f   :  { %v2076_v10 = vpop.f32.mrb[89].mxu1  ;;  %4557 = vmatprep.subr.bf16.mxu0 %v5958_v55  ;;  %v6089_v53 = vadd.f32 %v4419_v35, %v6689_v13 }
 0x640   :  { %v6085_v58 = vadd.f32 %v2076_v10, %v6688_v47  ;;  %v4420_v54 = vpop.f32.mrb[90].mxu1  ;;  %4509 = vmatprep.mubr.bf16.mxu0 %v2401_v44 }
 0x641   :  { %v6093_v42 = vadd.f32 %v4420_v54, %v6690_v16  ;;  %v2079_v26 = vpop.f32.mrb[91].mxu1  ;;  %4510 = vmatmul.mubr.bf16.gmra.mrb[116].mxu0 %v2402_v41  ;;  %v6641_v34 = vmax.f32 %v6089_v53, 0.0  ;;  %v6692_v41 = vmax.f32 %v5797_v2, 0.0  ;;  %v6693_v54 = vmax.f32 %v5801_v22, 0.0 }
 0x642   :  { %v6097_v48 = vadd.f32 %v2079_v26, %v6691_v23  ;;  %4558 = vmatpush3.bf16.msra.mxu0 %v5958_v55  ;;  %v6640_v50 = vmax.f32 %v6085_v58, 0.0 }
 0x643   :  { %v6619_v17 = vmax.f32 %v6093_v42, 0.0  ;;  %4559 = vmatprep.subr.bf16.mxu0 %v5962_v28 }
 0x644   :  { %v6618_v44 = vmax.f32 %v6097_v48, 0.0 }
 0x645   :  { %v2404_v55 = vpack.c.bf16 %v6619_v17, %v6641_v34 }
 0x646   :  { %v2403_v35 = vpack.c.bf16 %v6618_v44, %v6640_v50  ;;  %4560 = vmatpush3.bf16.msra.mxu0 %v5962_v28  ;;  %v4423_v32 = vpop.f32.mrb[92].mxu1  ;;  %v6694_v28 = vmax.f32 %v5805_v38, 0.0  ;;  %v6695_v44 = vmax.f32 %v5809_v30, 0.0 }
 0x647   :  { %v2092_v23 = vpop.f32.mrb[93].mxu1  ;;  %4561 = vmatprep.subr.bf16.mxu0 %v5966_v25  ;;  %v6121_v13 = vadd.f32 %v4423_v32, %v6693_v54 }
 0x648   :  { %v6117_v10 = vadd.f32 %v2092_v23, %v6692_v41  ;;  %v4424_v47 = vpop.f32.mrb[94].mxu1  ;;  %4513 = vmatprep.mubr.bf16.mxu0 %v2403_v35 }
 0x649   :  { %v6125_v16 = vadd.f32 %v4424_v47, %v6694_v28  ;;  %v2095_v26 = vpop.f32.mrb[95].mxu1  ;;  %4514 = vmatmul.mubr.bf16.gmra.mrb[120].mxu0 %v2404_v55  ;;  %v6639_v38 = vmax.f32 %v6121_v13, 0.0  ;;  %v6696_v55 = vmax.f32 %v5829_v29, 0.0  ;;  %v6697_v47 = vmax.f32 %v5833_v11, 0.0 }
 0x64a   :  { %v6129_v17 = vadd.f32 %v2095_v26, %v6695_v44  ;;  %4562 = vmatpush3.bf16.msra.mxu0 %v5966_v25  ;;  %v6638_v22 = vmax.f32 %v6117_v10, 0.0 }
 0x64b   :  { %v6621_v2 = vmax.f32 %v6125_v16, 0.0  ;;  %4563 = vmatprep.subr.bf16.mxu0 %v5970_v39 }
 0x64c   :  { %v6620_v35 = vmax.f32 %v6129_v17, 0.0 }
 0x64d   :  { %v2406_v25 = vpack.c.bf16 %v6621_v2, %v6639_v38 }
 0x64e   :  { %v2405_v32 = vpack.c.bf16 %v6620_v35, %v6638_v22  ;;  %4564 = vmatpush3.bf16.msra.mxu0 %v5970_v39  ;;  %v4475_v30 = vpop.f32.mrb[96].mxu1  ;;  %v6698_v39 = vmax.f32 %v5837_v8, 0.0  ;;  %v6699_v35 = vmax.f32 %v5841_v7, 0.0 }
 0x64f   :  { %v2286_v44 = vpop.f32.mrb[97].mxu1  ;;  %4565 = vmatprep.subr.bf16.mxu0 %v5990_v40  ;;  %v6153_v54 = vadd.f32 %v4475_v30, %v6697_v47 }
 0x650   :  { %v6149_v23 = vadd.f32 %v2286_v44, %v6696_v55  ;;  %v4476_v41 = vpop.f32.mrb[98].mxu1  ;;  %4517 = vmatprep.mubr.bf16.mxu0 %v2405_v32 }
 0x651   :  { %v6157_v28 = vadd.f32 %v4476_v41, %v6698_v39  ;;  %v2289_v26 = vpop.f32.mrb[99].mxu1  ;;  %4518 = vmatmul.mubr.bf16.gmra.mrb[124].mxu0 %v2406_v25  ;;  %v6637_v8 = vmax.f32 %v6153_v54, 0.0  ;;  %v6700_v25 = vmax.f32 %v5860_v3, 0.0  ;;  %v6701_v41 = vmax.f32 %v5864_v12, 0.0 }
 0x652   :  { %v6161_v2 = vadd.f32 %v2289_v26, %v6699_v35  ;;  %4566 = vmatpush3.bf16.msra.mxu0 %v5990_v40  ;;  %v6626_v11 = vmax.f32 %v6149_v23, 0.0  ;;  %v6702_v39 = vmax.f32 %v5868_v43, 0.0 }
 0x653   :  { %v6623_v29 = vmax.f32 %v6157_v28, 0.0  ;;  %4567 = vmatprep.subr.bf16.mxu0 %v5994_v4 }
 0x654   :  { %v6622_v32 = vmax.f32 %v6161_v2, 0.0 }
 0x655   :  { %v2738_v40 = vpack.c.bf16 %v6623_v29, %v6637_v8 }
 0x656   :  { %v2737_v30 = vpack.c.bf16 %v6622_v32, %v6626_v11  ;;  %4568 = vmatpush3.bf16.msra.mxu0 %v5994_v4  ;;  %v4479_v7 = vpop.f32.mrb[100].mxu1  ;;  %v6703_v32 = vmax.f32 %v5872_v0, 0.0  ;;  %v6707_v11 = vmax.f32 %v5900_v62, 0.0 }
 0x657   :  { %v2302_v35 = vpop.f32.mrb[101].mxu1  ;;  %v6184_v47 = vadd.f32 %v4479_v7, %v6701_v41  ;;  %v6705_v41 = vmax.f32 %v5892_v24, 0.0 }
 0x658   :  { %v6180_v44 = vadd.f32 %v2302_v35, %v6700_v25  ;;  %v4480_v55 = vpop.f32.mrb[102].mxu1  ;;  %4569 = vmatprep.mubr.bf16.mxu0 %v2737_v30 }
 0x659   :  { %v6188_v4 = vadd.f32 %v4480_v55, %v6702_v39  ;;  %v2305_v26 = vpop.f32.mrb[103].mxu1  ;;  %4570 = vmatmul.mubr.bf16.vlgmr.msra.gmra.mrb[128].mxu0 %v2738_v40  ;;  %v6630_v12 = vmax.f32 %v6184_v47, 0.0  ;;  %v6704_v40 = vmax.f32 %v5888_v61, 0.0 }
 0x65a   :  { %v6192_v29 = vadd.f32 %v2305_v26, %v6703_v32  ;;  %v6625_v35 = vmax.f32 %v6180_v44, 0.0  ;;  %v6706_v26 = vmax.f32 %v5896_v63, 0.0 }
 0x65b   :  { %v6627_v3 = vmax.f32 %v6188_v4, 0.0 }
 0x65c   :  { %v6624_v30 = vmax.f32 %v6192_v29, 0.0 }
 0x65d   :  { %v2740_v0 = vpack.c.bf16 %v6627_v3, %v6630_v12  ;;  %v6711_v12 = vmax.f32 %v5928_v60, 0.0 }
 0x65e   :  { %v2739_v43 = vpack.c.bf16 %v6624_v30, %v6625_v35  ;;  %v4483_v7 = vpop.f32.mrb[104].mxu1 }
 0x65f   :  { %v2318_v32 = vpop.f32.mrb[105].mxu1  ;;  %v6212_v39 = vadd.f32 %v4483_v7, %v6705_v41 }
 0x660   :  { %v6208_v25 = vadd.f32 %v2318_v32, %v6704_v40  ;;  %v4484_v55 = vpop.f32.mrb[106].mxu1  ;;  %4573 = vmatprep.mubr.bf16.mxu0 %v2739_v43 }
 0x661   :  { %v6216_v30 = vadd.f32 %v4484_v55, %v6706_v26  ;;  %v2321_v35 = vpop.f32.mrb[107].mxu1  ;;  %4574 = vmatmul.mubr.bf16.gmra.mrb[132].mxu0 %v2740_v0  ;;  %v6636_v24 = vmax.f32 %v6212_v39, 0.0  ;;  %v6709_v55 = vmax.f32 %v5920_v57, 0.0  ;;  %v6710_v26 = vmax.f32 %v5924_v1, 0.0 }
 0x662   :  { %v6220_v3 = vadd.f32 %v2321_v35, %v6707_v11  ;;  %v6629_v32 = vmax.f32 %v6208_v25, 0.0  ;;  %v6708_v35 = vmax.f32 %v5916_v19, 0.0 }
 0x663   :  { %v6631_v61 = vmax.f32 %v6216_v30, 0.0 }
 0x664   :  { %v6628_v43 = vmax.f32 %v6220_v3, 0.0 }
 0x665   :  { %v2742_v62 = vpack.c.bf16 %v6631_v61, %v6636_v24 }
 0x666   :  { %v2741_v63 = vpack.c.bf16 %v6628_v43, %v6629_v32  ;;  %v4487_v7 = vpop.f32.mrb[108].mxu1 }
 0x667   :  { %v2334_v11 = vpop.f32.mrb[109].mxu1  ;;  %v6240_v41 = vadd.f32 %v4487_v7, %v6709_v55  ;;  %v6274_v7 = vld [vmem:[%s6548_s5] sm:$0xff]  }
 0x668   :  { %v6236_v0 = vadd.f32 %v2334_v11, %v6708_v35  ;;  %v4488_v40 = vpop.f32.mrb[110].mxu1  ;;  %4577 = vmatprep.mubr.bf16.mxu0 %v2741_v63  ;;  %4617 = vmatprep.subr.bf16.mxu0 %v6274_v7  ;;  %v6287_v35 = vld [vmem:[%s6548_s5 + $0x10] sm:$0xff]   ;;  %v6301_v55 = vld [vmem:[%s6548_s5 + $0x20] sm:$0xff]  }
 0x669   :  { %v6244_v43 = vadd.f32 %v4488_v40, %v6710_v26  ;;  %v2337_v32 = vpop.f32.mrb[111].mxu1  ;;  %4578 = vmatmul.mubr.bf16.gmra.mrb[136].mxu0 %v2742_v62  ;;  %v6635_v57 = vmax.f32 %v6240_v41, 0.0  ;;  %v6279_v62 = vld [vmem:[%s6548_s5 + $0x8] sm:$0xff]   ;;  %v6294_v40 = vld [vmem:[%s6548_s5 + $0x18] sm:$0xff]  }
 0x66a   :  { %v6248_v61 = vadd.f32 %v2337_v32, %v6711_v12  ;;  %v6634_v11 = vmax.f32 %v6236_v0, 0.0  ;;  %v6262_v12 = vld [vmem:[#allocation5 + $0xf0] sm:$0xff]   ;;  %v6266_v32 = vld [vmem:[#allocation5 + $0xf8] sm:$0xff]   ;;  %4618 = vmatpush3.bf16.msra.mxu0 %v6274_v7  ;;  %v6308_v26 = vld [vmem:[%s6548_s5 + $0x28] sm:$0xff]  }
 0x66b   :  { %v6633_v19 = vmax.f32 %v6244_v43, 0.0  ;;  %4533 = vmatprep.subr.bf16.mxu1 %v6262_v12  ;;  %4619 = vmatprep.subr.bf16.mxu0 %v6279_v62 }
 0x66c   :  { %v6632_v63 = vmax.f32 %v6248_v61, 0.0  ;;  %4534 = vmatpush3.bf16.msra.mxu1 %v6262_v12 }
 0x66d   :  { %v2744_v60 = vpack.c.bf16 %v6633_v19, %v6635_v57  ;;  %4535 = vmatprep.subr.bf16.mxu1 %v6266_v32 }
 0x66e   :  { %v2743_v1 = vpack.c.bf16 %v6632_v63, %v6634_v11  ;;  %4620 = vmatpush3.bf16.msra.mxu0 %v6279_v62 }
 0x66f   :  { %4621 = vmatprep.subr.bf16.mxu0 %v6287_v35 }
 0x670   :  { %4581 = vmatprep.mubr.bf16.mxu0 %v2743_v1  ;;  %4536 = vmatpush3.bf16.msra.mxu1 %v6266_v32 }
 0x671   :  { %4582 = vmatmul.mubr.bf16.gmra.mrb[140].mxu0 %v2744_v60  ;;  %4585 = vmatprep.subr.bf16.mxu1 %v5999_v5 }
 0x672   :  { %4622 = vmatpush3.bf16.msra.mxu0 %v6287_v35 }
 0x673   :  { %4623 = vmatprep.subr.bf16.mxu0 %v6294_v40 }
 0x676   :  { %4624 = vmatpush3.bf16.msra.mxu0 %v6294_v40 }
 0x677   :  { %4625 = vmatprep.subr.bf16.mxu0 %v6301_v55 }
 0x67a   :  { %4626 = vmatpush3.bf16.msra.mxu0 %v6301_v55 }
 0x67b   :  { %4627 = vmatprep.subr.bf16.mxu0 %v6308_v26 }
 0x67e   :  { %4628 = vmatpush3.bf16.msra.mxu0 %v6308_v26 }
 0x70c   :  { %v4507_v1 = vpop.f32.mrb[112].mxu0 }
 0x70d   :  { %v2489_v60 = vpop.f32.mrb[113].mxu0  ;;  %v2554_v19 = vmax.f32 %v4507_v1, 0.0 }
 0x70e   :  { %v4508_v63 = vpop.f32.mrb[114].mxu0  ;;  %v2552_v24 = vmax.f32 %v2489_v60, 0.0 }
 0x70f   :  { %v2555_v11 = vmax.f32 %v4508_v63, 0.0  ;;  %v2492_v57 = vpop.f32.mrb[115].mxu0 }
 0x710   :  { %v2553_v8 = vmax.f32 %v2492_v57, 0.0 }
 0x711   :  { %v2569_v22 = vpack.c.bf16 %v2555_v11, %v2554_v19 }
 0x712   :  { %v2568_v38 = vpack.c.bf16 %v2553_v8, %v2552_v24 }
 0x714   :  { %v4511_v50 = vpop.f32.mrb[116].mxu0  ;;  %4537 = vmatprep.mubr.bf16.mxu1 %v2568_v38 }
 0x715   :  { %v2505_v34 = vpop.f32.mrb[117].mxu0  ;;  %4538 = vmatmul.mubr.bf16.vlgmr.msra.gmra.mrb[112].mxu1 %v2569_v22  ;;  %v2558_v59 = vmax.f32 %v4511_v50, 0.0 }
 0x716   :  { %4586 = vmatpush3.bf16.msra.mxu1 %v5999_v5  ;;  %v4512_v15 = vpop.f32.mrb[118].mxu0  ;;  %v2556_v21 = vmax.f32 %v2505_v34, 0.0 }
 0x717   :  { %v2559_v18 = vmax.f32 %v4512_v15, 0.0  ;;  %v2508_v52 = vpop.f32.mrb[119].mxu0  ;;  %4587 = vmatprep.subr.bf16.mxu1 %v6001_v6 }
 0x718   :  { %v2557_v1 = vmax.f32 %v2508_v52, 0.0 }
 0x719   :  { %v2571_v63 = vpack.c.bf16 %v2559_v18, %v2558_v59 }
 0x71a   :  { %v2570_v9 = vpack.c.bf16 %v2557_v1, %v2556_v21  ;;  %4588 = vmatpush3.bf16.msra.mxu1 %v6001_v6 }
 0x71b   :  { %4589 = vmatprep.subr.bf16.mxu1 %v6006_v31 }
 0x71c   :  { %v4515_v8 = vpop.f32.mrb[120].mxu0  ;;  %4541 = vmatprep.mubr.bf16.mxu1 %v2570_v9 }
 0x71d   :  { %v2521_v38 = vpop.f32.mrb[121].mxu0  ;;  %4542 = vmatmul.mubr.bf16.gmra.mrb[116].mxu1 %v2571_v63  ;;  %v2562_v50 = vmax.f32 %v4515_v8, 0.0 }
 0x71e   :  { %4590 = vmatpush3.bf16.msra.mxu1 %v6006_v31  ;;  %v4516_v5 = vpop.f32.mrb[122].mxu0  ;;  %v2560_v34 = vmax.f32 %v2521_v38, 0.0 }
 0x71f   :  { %v2563_v15 = vmax.f32 %v4516_v5, 0.0  ;;  %v2524_v22 = vpop.f32.mrb[123].mxu0  ;;  %4591 = vmatprep.subr.bf16.mxu1 %v6010_v27 }
 0x720   :  { %v2561_v52 = vmax.f32 %v2524_v22, 0.0 }
 0x721   :  { %v2573_v18 = vpack.c.bf16 %v2563_v15, %v2562_v50 }
 0x722   :  { %v2572_v21 = vpack.c.bf16 %v2561_v52, %v2560_v34  ;;  %4592 = vmatpush3.bf16.msra.mxu1 %v6010_v27 }
 0x723   :  { %4593 = vmatprep.subr.bf16.mxu1 %v6014_v20 }
 0x724   :  { %v4519_v6 = vpop.f32.mrb[124].mxu0  ;;  %4545 = vmatprep.mubr.bf16.mxu1 %v2572_v21 }
 0x725   :  { %v2537_v9 = vpop.f32.mrb[125].mxu0  ;;  %4546 = vmatmul.mubr.bf16.gmra.mrb[120].mxu1 %v2573_v18  ;;  %v2566_v59 = vmax.f32 %v4519_v6, 0.0 }
 0x726   :  { %4594 = vmatpush3.bf16.msra.mxu1 %v6014_v20  ;;  %v4520_v31 = vpop.f32.mrb[126].mxu0  ;;  %v2564_v11 = vmax.f32 %v2537_v9, 0.0 }
 0x727   :  { %v2567_v24 = vmax.f32 %v4520_v31, 0.0  ;;  %v2540_v19 = vpop.f32.mrb[127].mxu0  ;;  %4595 = vmatprep.subr.bf16.mxu1 %v6018_v51 }
 0x728   :  { %v2565_v57 = vmax.f32 %v2540_v19, 0.0 }
 0x729   :  { %v2575_v60 = vpack.c.bf16 %v2567_v24, %v2566_v59 }
 0x72a   :  { %v2574_v1 = vpack.c.bf16 %v2565_v57, %v2564_v11  ;;  %4596 = vmatpush3.bf16.msra.mxu1 %v6018_v51 }
 0x72b   :  { %4597 = vmatprep.subr.bf16.mxu1 %v6262_v12 }
 0x72c   :  { %4549 = vmatprep.mubr.bf16.mxu1 %v2574_v1  ;;  %v4571_v27 = vpop.f32.mrb[128].mxu0 }
 0x72d   :  { %4550 = vmatmul.mubr.bf16.gmra.mrb[124].mxu1 %v2575_v60  ;;  %v2779_v63 = vpop.f32.mrb[129].mxu0  ;;  %v2844_v8 = vmax.f32 %v4571_v27, 0.0 }
 0x72e   :  { %4598 = vmatpush3.bf16.msra.mxu1 %v6262_v12  ;;  %v4572_v20 = vpop.f32.mrb[130].mxu0  ;;  %v2842_v50 = vmax.f32 %v2779_v63, 0.0 }
 0x72f   :  { %v2845_v38 = vmax.f32 %v4572_v20, 0.0  ;;  %v2782_v5 = vpop.f32.mrb[131].mxu0  ;;  %4599 = vmatprep.subr.bf16.mxu1 %v6266_v32 }
 0x730   :  { %v2843_v15 = vmax.f32 %v2782_v5, 0.0 }
 0x731   :  { %v2859_v22 = vpack.c.bf16 %v2845_v38, %v2844_v8 }
 0x732   :  { %v2858_v34 = vpack.c.bf16 %v2843_v15, %v2842_v50  ;;  %4600 = vmatpush3.bf16.msra.mxu1 %v6266_v32 }
 0x734   :  { %v4575_v51 = vpop.f32.mrb[132].mxu0  ;;  %4601 = vmatprep.mubr.bf16.mxu1 %v2858_v34 }
 0x735   :  { %v2795_v52 = vpop.f32.mrb[133].mxu0  ;;  %4602 = vmatmul.mubr.bf16.vlgmr.msra.gmra.mrb[128].mxu1 %v2859_v22  ;;  %v2848_v21 = vmax.f32 %v4575_v51, 0.0 }
 0x736   :  { %v4576_v18 = vpop.f32.mrb[134].mxu0  ;;  %v2846_v9 = vmax.f32 %v2795_v52, 0.0 }
 0x737   :  { %v2849_v6 = vmax.f32 %v4576_v18, 0.0  ;;  %v2798_v12 = vpop.f32.mrb[135].mxu0 }
 0x738   :  { %v2847_v31 = vmax.f32 %v2798_v12, 0.0  ;;  %v6338_v12 = vld [vmem:[%s6548_s5 + $0x38] sm:$0xff]  }
 0x739   :  { %v2861_v59 = vpack.c.bf16 %v2849_v6, %v2848_v21  ;;  %v6331_v6 = vld [vmem:[%s6548_s5 + $0x30] sm:$0xff]  }
 0x73a   :  { %v2860_v24 = vpack.c.bf16 %v2847_v31, %v2846_v9  ;;  %4629 = vmatprep.subr.bf16.mxu0 %v6331_v6  ;;  %v6346_v9 = vld [vmem:[%s6549_s6] sm:$0xff]   ;;  %v6351_v31 = vld [vmem:[%s6549_s6 + $0x8] sm:$0xff]  }
 0x73b   :  { %4630 = vmatpush3.bf16.msra.mxu0 %v6331_v6  ;;  %4649 = vmatprep.subr.bf16.mxu1 %v6346_v9 }
 0x73c   :  { %v4579_v19 = vpop.f32.mrb[136].mxu0  ;;  %4605 = vmatprep.mubr.bf16.mxu1 %v2860_v24  ;;  %4631 = vmatprep.subr.bf16.mxu0 %v6338_v12  ;;  %v6366_v24 = vld [vmem:[%s6549_s6 + $0x18] sm:$0xff]  }
 0x73d   :  { %v2811_v11 = vpop.f32.mrb[137].mxu0  ;;  %4606 = vmatmul.mubr.bf16.gmra.mrb[132].mxu1 %v2861_v59  ;;  %v2852_v60 = vmax.f32 %v4579_v19, 0.0  ;;  %v6359_v59 = vld [vmem:[%s6549_s6 + $0x10] sm:$0xff]   ;;  %v6373_v19 = vld [vmem:[%s6549_s6 + $0x20] sm:$0xff]  }
 0x73e   :  { %v4580_v57 = vpop.f32.mrb[138].mxu0  ;;  %v2850_v27 = vmax.f32 %v2811_v11, 0.0  ;;  %4650 = vmatpush3.bf16.msra.mxu1 %v6346_v9  ;;  %v6380_v11 = vld [vmem:[%s6549_s6 + $0x28] sm:$0xff]  }
 0x73f   :  { %v2853_v1 = vmax.f32 %v4580_v57, 0.0  ;;  %v2814_v32 = vpop.f32.mrb[139].mxu0  ;;  %4632 = vmatpush3.bf16.msra.mxu0 %v6338_v12  ;;  %4651 = vmatprep.subr.bf16.mxu1 %v6351_v31 }
 0x740   :  { %v2851_v63 = vmax.f32 %v2814_v32, 0.0  ;;  %4681 = vmatprep.subr.bf16.mxu0 %v6274_v7 }
 0x741   :  { %v2863_v20 = vpack.c.bf16 %v2853_v1, %v2852_v60  ;;  %v6712_v60 = vmax.f32 %v6029_v36, 0.0 }
 0x742   :  { %v2862_v8 = vpack.c.bf16 %v2851_v63, %v2850_v27  ;;  %4652 = vmatpush3.bf16.msra.mxu1 %v6351_v31  ;;  %v6713_v27 = vmax.f32 %v6025_v49, 0.0 }
 0x743   :  { %4653 = vmatprep.subr.bf16.mxu1 %v6359_v59 }
 0x744   :  { %v4583_v38 = vpop.f32.mrb[140].mxu0  ;;  %4609 = vmatprep.mubr.bf16.mxu1 %v2862_v8  ;;  %v6714_v8 = vmax.f32 %v6033_v33, 0.0 }
 0x745   :  { %v2827_v5 = vpop.f32.mrb[141].mxu0  ;;  %4610 = vmatmul.mubr.bf16.gmra.mrb[136].mxu1 %v2863_v20  ;;  %v2856_v15 = vmax.f32 %v4583_v38, 0.0 }
 0x746   :  { %v4584_v50 = vpop.f32.mrb[142].mxu0  ;;  %v2854_v51 = vmax.f32 %v2827_v5, 0.0  ;;  %4654 = vmatpush3.bf16.msra.mxu1 %v6359_v59 }
 0x747   :  { %v2857_v22 = vmax.f32 %v4584_v50, 0.0  ;;  %v2830_v34 = vpop.f32.mrb[143].mxu0  ;;  %4655 = vmatprep.subr.bf16.mxu1 %v6366_v24  ;;  %v6715_v50 = vmax.f32 %v6037_v37, 0.0 }
 0x748   :  { %v2855_v52 = vmax.f32 %v2830_v34, 0.0 }
 0x749   :  { %v2865_v18 = vpack.c.bf16 %v2857_v22, %v2856_v15 }
 0x74a   :  { %v2864_v21 = vpack.c.bf16 %v2855_v52, %v2854_v51  ;;  %4656 = vmatpush3.bf16.msra.mxu1 %v6366_v24 }
 0x74b   :  { %4657 = vmatprep.subr.bf16.mxu1 %v6373_v19 }
 0x74c   :  { %4613 = vmatprep.mubr.bf16.mxu1 %v2864_v21 }
 0x74d   :  { %4614 = vmatmul.mubr.bf16.gmra.mrb[140].mxu1 %v2865_v18 }
 0x74e   :  { %4658 = vmatpush3.bf16.msra.mxu1 %v6373_v19 }
 0x74f   :  { %4659 = vmatprep.subr.bf16.mxu1 %v6380_v11 }
 0x752   :  { %4660 = vmatpush3.bf16.msra.mxu1 %v6380_v11 }
 0x7e8   :  { %v4539_v57 = vpop.f32.mrb[112].mxu1 }
 0x7e9   :  { %v2667_v1 = vadd.f32 %v4539_v57, %v6712_v60  ;;  %v2658_v32 = vpop.f32.mrb[113].mxu1  ;;  %v6716_v57 = vmax.f32 %v6057_v14, 0.0 }
 0x7ea   :  { %v2659_v63 = vadd.f32 %v2658_v32, %v6713_v27  ;;  %v4540_v20 = vpop.f32.mrb[114].mxu1  ;;  %v6717_v32 = vmax.f32 %v6053_v56, 0.0 }
 0x7eb   :  { %v2670_v38 = vadd.f32 %v4540_v20, %v6714_v8  ;;  %v2661_v5 = vpop.f32.mrb[115].mxu1  ;;  %v2723_v22 = vmax.f32 %v2667_v1, 0.0  ;;  %v6718_v20 = vmax.f32 %v6061_v45, 0.0  ;;  %v6719_v1 = vmax.f32 %v6065_v46, 0.0 }
 0x7ec   :  { %v2662_v15 = vadd.f32 %v2661_v5, %v6715_v50  ;;  %v2721_v51 = vmax.f32 %v2659_v63, 0.0  ;;  %v6720_v45 = vmax.f32 %v6089_v53, 0.0  ;;  %v6721_v46 = vmax.f32 %v6085_v58, 0.0 }
 0x7ed   :  { %v2724_v34 = vmax.f32 %v2670_v38, 0.0 }
 0x7ee   :  { %v2722_v52 = vmax.f32 %v2662_v15, 0.0 }
 0x7ef   :  { %v3013_v18 = vpack.c.bf16 %v2724_v34, %v2723_v22 }
 0x7f0   :  { %v3012_v21 = vpack.c.bf16 %v2722_v52, %v2721_v51  ;;  %v4543_v36 = vpop.f32.mrb[116].mxu1 }
 0x7f1   :  { %v2683_v60 = vadd.f32 %v4543_v36, %v6716_v57  ;;  %v2674_v49 = vpop.f32.mrb[117].mxu1  ;;  %v6723_v57 = vmax.f32 %v6097_v48, 0.0  ;;  %v6725_v48 = vmax.f32 %v6117_v10, 0.0 }
 0x7f2   :  { %v2675_v27 = vadd.f32 %v2674_v49, %v6717_v32  ;;  %v4544_v33 = vpop.f32.mrb[118].mxu1  ;;  %4633 = vmatprep.mubr.bf16.mxu0 %v3012_v21 }
 0x7f3   :  { %v2686_v37 = vadd.f32 %v4544_v33, %v6718_v20  ;;  %v2677_v8 = vpop.f32.mrb[119].mxu1  ;;  %4634 = vmatmul.mubr.bf16.vlgmr.msra.gmra.mrb[144].mxu0 %v3013_v18  ;;  %v2727_v38 = vmax.f32 %v2683_v60, 0.0  ;;  %v6722_v18 = vmax.f32 %v6093_v42, 0.0  ;;  %v6724_v42 = vmax.f32 %v6121_v13, 0.0 }
 0x7f4   :  { %v2678_v63 = vadd.f32 %v2677_v8, %v6719_v1  ;;  %4682 = vmatpush3.bf16.msra.mxu0 %v6274_v7  ;;  %v2725_v14 = vmax.f32 %v2675_v27, 0.0  ;;  %v6726_v1 = vmax.f32 %v6125_v16, 0.0  ;;  %v6728_v16 = vmax.f32 %v6153_v54, 0.0 }
 0x7f5   :  { %v2728_v5 = vmax.f32 %v2686_v37, 0.0  ;;  %4683 = vmatprep.subr.bf16.mxu0 %v6279_v62 }
 0x7f6   :  { %v2726_v50 = vmax.f32 %v2678_v63, 0.0 }
 0x7f7   :  { %v3015_v56 = vpack.c.bf16 %v2728_v5, %v2727_v38  ;;  %v6727_v5 = vmax.f32 %v6129_v17, 0.0  ;;  %v6729_v17 = vmax.f32 %v6149_v23, 0.0 }
 0x7f8   :  { %v3014_v15 = vpack.c.bf16 %v2726_v50, %v2725_v14  ;;  %4684 = vmatpush3.bf16.msra.mxu0 %v6279_v62  ;;  %v4547_v22 = vpop.f32.mrb[120].mxu1 }
 0x7f9   :  { %v2699_v34 = vadd.f32 %v4547_v22, %v6720_v45  ;;  %v2690_v51 = vpop.f32.mrb[121].mxu1  ;;  %4685 = vmatprep.subr.bf16.mxu0 %v6287_v35 }
 0x7fa   :  { %v2691_v7 = vadd.f32 %v2690_v51, %v6721_v46  ;;  %v4548_v52 = vpop.f32.mrb[122].mxu1  ;;  %4637 = vmatprep.mubr.bf16.mxu0 %v3014_v15  ;;  %v6730_v46 = vmax.f32 %v6157_v28, 0.0  ;;  %v6732_v28 = vmax.f32 %v6184_v47, 0.0 }
 0x7fb   :  { %v2702_v21 = vadd.f32 %v4548_v52, %v6722_v18  ;;  %v2693_v36 = vpop.f32.mrb[123].mxu1  ;;  %4638 = vmatmul.mubr.bf16.gmra.mrb[148].mxu0 %v3015_v56  ;;  %v2731_v53 = vmax.f32 %v2699_v34, 0.0  ;;  %v6731_v18 = vmax.f32 %v6161_v2, 0.0  ;;  %v6733_v2 = vmax.f32 %v6180_v44, 0.0 }
 0x7fc   :  { %v2694_v62 = vadd.f32 %v2693_v36, %v6723_v57  ;;  %4686 = vmatpush3.bf16.msra.mxu0 %v6287_v35  ;;  %v2729_v49 = vmax.f32 %v2691_v7, 0.0  ;;  %v6736_v44 = vmax.f32 %v6212_v39, 0.0 }
 0x7fd   :  { %v2732_v60 = vmax.f32 %v2702_v21, 0.0  ;;  %4687 = vmatprep.subr.bf16.mxu0 %v6294_v40 }
 0x7fe   :  { %v2730_v32 = vmax.f32 %v2694_v62, 0.0 }
 0x7ff   :  { %v3017_v58 = vpack.c.bf16 %v2732_v60, %v2731_v53 }
 0x800   :  { %v3016_v27 = vpack.c.bf16 %v2730_v32, %v2729_v49  ;;  %4688 = vmatpush3.bf16.msra.mxu0 %v6294_v40  ;;  %v4551_v33 = vpop.f32.mrb[124].mxu1 }
 0x801   :  { %v2715_v20 = vadd.f32 %v4551_v33, %v6724_v42  ;;  %v2706_v37 = vpop.f32.mrb[125].mxu1  ;;  %4689 = vmatprep.subr.bf16.mxu0 %v6301_v55  ;;  %v6735_v42 = vmax.f32 %v6192_v29, 0.0 }
 0x802   :  { %v2707_v35 = vadd.f32 %v2706_v37, %v6725_v48  ;;  %v4552_v8 = vpop.f32.mrb[126].mxu1  ;;  %4641 = vmatprep.mubr.bf16.mxu0 %v3016_v27 }
 0x803   :  { %v2718_v63 = vadd.f32 %v4552_v8, %v6726_v1  ;;  %v2709_v38 = vpop.f32.mrb[127].mxu1  ;;  %4642 = vmatmul.mubr.bf16.gmra.mrb[152].mxu0 %v3017_v58  ;;  %v2735_v13 = vmax.f32 %v2715_v20, 0.0 }
 0x804   :  { %v2710_v40 = vadd.f32 %v2709_v38, %v6727_v5  ;;  %4690 = vmatpush3.bf16.msra.mxu0 %v6301_v55  ;;  %v2733_v50 = vmax.f32 %v2707_v35, 0.0  ;;  %v6737_v5 = vmax.f32 %v6208_v25, 0.0  ;;  %v6740_v25 = vmax.f32 %v6240_v41, 0.0 }
 0x805   :  { %v2736_v14 = vmax.f32 %v2718_v63, 0.0  ;;  %4691 = vmatprep.subr.bf16.mxu0 %v6308_v26 }
 0x806   :  { %v2734_v56 = vmax.f32 %v2710_v40, 0.0 }
 0x807   :  { %v3019_v10 = vpack.c.bf16 %v2736_v14, %v2735_v13  ;;  %v6738_v13 = vmax.f32 %v6216_v30, 0.0 }
 0x808   :  { %v3018_v15 = vpack.c.bf16 %v2734_v56, %v2733_v50  ;;  %4692 = vmatpush3.bf16.msra.mxu0 %v6308_v26  ;;  %v4603_v22 = vpop.f32.mrb[128].mxu1  ;;  %v6739_v50 = vmax.f32 %v6220_v3, 0.0 }
 0x809   :  { %v2909_v45 = vadd.f32 %v4603_v22, %v6728_v16  ;;  %v2900_v34 = vpop.f32.mrb[129].mxu1  ;;  %4693 = vmatprep.subr.bf16.mxu0 %v6331_v6 }
 0x80a   :  { %v2901_v55 = vadd.f32 %v2900_v34, %v6729_v17  ;;  %v4604_v51 = vpop.f32.mrb[130].mxu1  ;;  %4645 = vmatprep.mubr.bf16.mxu0 %v3018_v15 }
 0x80b   :  { %v2912_v7 = vadd.f32 %v4604_v51, %v6730_v46  ;;  %v2903_v52 = vpop.f32.mrb[131].mxu1  ;;  %4646 = vmatmul.mubr.bf16.gmra.mrb[156].mxu0 %v3019_v10  ;;  %v2965_v54 = vmax.f32 %v2909_v45, 0.0  ;;  %v6741_v51 = vmax.f32 %v6236_v0, 0.0  ;;  %v6467_v0 = vld [vmem:[%s6549_s6 + $0x30] sm:$0xff]  }
 0x80c   :  { %v2904_v26 = vadd.f32 %v2903_v52, %v6731_v18  ;;  %4694 = vmatpush3.bf16.msra.mxu0 %v6331_v6  ;;  %v2963_v36 = vmax.f32 %v2901_v55, 0.0  ;;  %v6734_v6 = vmax.f32 %v6188_v4, 0.0  ;;  %v6743_v18 = vmax.f32 %v6248_v61, 0.0  ;;  %4661 = vmatprep.subr.bf16.mxu1 %v6467_v0  ;;  %v6474_v61 = vld [vmem:[%s6549_s6 + $0x38] sm:$0xff]  }
 0x80d   :  { %v2966_v21 = vmax.f32 %v2912_v7, 0.0  ;;  %4695 = vmatprep.subr.bf16.mxu0 %v6338_v12  ;;  %v6742_v7 = vmax.f32 %v6244_v43, 0.0  ;;  %4662 = vmatpush3.bf16.msra.mxu1 %v6467_v0 }
 0x80e   :  { %v2964_v57 = vmax.f32 %v2904_v26, 0.0  ;;  %4663 = vmatprep.subr.bf16.mxu1 %v6474_v61 }
 0x80f   :  { %v3357_v23 = vpack.c.bf16 %v2966_v21, %v2965_v54 }
 0x810   :  { %v3356_v62 = vpack.c.bf16 %v2964_v57, %v2963_v36  ;;  %4696 = vmatpush3.bf16.msra.mxu0 %v6338_v12  ;;  %v4607_v53 = vpop.f32.mrb[132].mxu1 }
 0x811   :  { %v2925_v60 = vadd.f32 %v4607_v53, %v6732_v28  ;;  %v2916_v49 = vpop.f32.mrb[133].mxu1  ;;  %4664 = vmatpush3.bf16.msra.mxu1 %v6474_v61 }
 0x812   :  { %v2917_v32 = vadd.f32 %v2916_v49, %v6733_v2  ;;  %v4608_v58 = vpop.f32.mrb[134].mxu1  ;;  %4697 = vmatprep.mubr.bf16.mxu0 %v3356_v62  ;;  %4713 = vmatprep.subr.bf16.mxu1 %v6346_v9 }
 0x813   :  { %v2928_v27 = vadd.f32 %v4608_v58, %v6734_v6  ;;  %v2919_v33 = vpop.f32.mrb[135].mxu1  ;;  %4698 = vmatmul.mubr.bf16.vlgmr.msra.gmra.mrb[160].mxu0 %v3357_v23  ;;  %v2969_v37 = vmax.f32 %v2925_v60, 0.0 }
 0x814   :  { %v2920_v20 = vadd.f32 %v2919_v33, %v6735_v42  ;;  %v2967_v48 = vmax.f32 %v2917_v32, 0.0 }
 0x815   :  { %v2970_v12 = vmax.f32 %v2928_v27, 0.0 }
 0x816   :  { %v2968_v35 = vmax.f32 %v2920_v20, 0.0 }
 0x817   :  { %v3359_v47 = vpack.c.bf16 %v2970_v12, %v2969_v37 }
 0x818   :  { %v3358_v8 = vpack.c.bf16 %v2968_v35, %v2967_v48  ;;  %v4611_v1 = vpop.f32.mrb[136].mxu1 }
 0x819   :  { %v2941_v63 = vadd.f32 %v4611_v1, %v6736_v44  ;;  %v2932_v38 = vpop.f32.mrb[137].mxu1 }
 0x81a   :  { %v2933_v4 = vadd.f32 %v2932_v38, %v6737_v5  ;;  %v4612_v40 = vpop.f32.mrb[138].mxu1  ;;  %4701 = vmatprep.mubr.bf16.mxu0 %v3358_v8 }
 0x81b   :  { %v2944_v29 = vadd.f32 %v4612_v40, %v6738_v13  ;;  %v2935_v14 = vpop.f32.mrb[139].mxu1  ;;  %4702 = vmatmul.mubr.bf16.gmra.mrb[164].mxu0 %v3359_v47  ;;  %v2973_v10 = vmax.f32 %v2941_v63, 0.0 }
 0x81c   :  { %v2936_v56 = vadd.f32 %v2935_v14, %v6739_v50  ;;  %v2971_v22 = vmax.f32 %v2933_v4, 0.0 }
 0x81d   :  { %v2974_v15 = vmax.f32 %v2944_v29, 0.0 }
 0x81e   :  { %v2972_v16 = vmax.f32 %v2936_v56, 0.0 }
 0x81f   :  { %v3361_v39 = vpack.c.bf16 %v2974_v15, %v2973_v10 }
 0x820   :  { %v3360_v45 = vpack.c.bf16 %v2972_v16, %v2971_v22  ;;  %v4615_v34 = vpop.f32.mrb[140].mxu1 }
 0x821   :  { %v2957_v17 = vadd.f32 %v4615_v34, %v6740_v25  ;;  %v2948_v55 = vpop.f32.mrb[141].mxu1 }
 0x822   :  { %v2949_v30 = vadd.f32 %v2948_v55, %v6741_v51  ;;  %v4616_v46 = vpop.f32.mrb[142].mxu1  ;;  %4705 = vmatprep.mubr.bf16.mxu0 %v3360_v45 }
 0x823   :  { %v2960_v3 = vadd.f32 %v4616_v46, %v6742_v7  ;;  %v2951_v52 = vpop.f32.mrb[143].mxu1  ;;  %4706 = vmatmul.mubr.bf16.gmra.mrb[168].mxu0 %v3361_v39  ;;  %v2977_v54 = vmax.f32 %v2957_v17, 0.0 }
 0x824   :  { %v2952_v26 = vadd.f32 %v2951_v52, %v6743_v18  ;;  %v2975_v36 = vmax.f32 %v2949_v30, 0.0 }
 0x825   :  { %v2978_v21 = vmax.f32 %v2960_v3, 0.0 }
 0x826   :  { %v2976_v57 = vmax.f32 %v2952_v26, 0.0 }
 0x827   :  { %v3363_v41 = vpack.c.bf16 %v2978_v21, %v2977_v54 }
 0x828   :  { %v3362_v23 = vpack.c.bf16 %v2976_v57, %v2975_v36 }
 0x82a   :  { %4709 = vmatprep.mubr.bf16.mxu0 %v3362_v23 }
 0x82b   :  { %4710 = vmatmul.mubr.bf16.gmra.mrb[172].mxu0 %v3363_v41 }
 0x8c6   :  { %v4635_v43 = vpop.f32.mrb[144].mxu0 }
 0x8c7   :  { %v3102_v62 = vpop.f32.mrb[145].mxu0  ;;  %v3167_v28 = vmax.f32 %v4635_v43, 0.0 }
 0x8c8   :  { %v4636_v53 = vpop.f32.mrb[146].mxu0  ;;  %v3165_v2 = vmax.f32 %v3102_v62, 0.0 }
 0x8c9   :  { %v3168_v60 = vmax.f32 %v4636_v53, 0.0  ;;  %v3105_v49 = vpop.f32.mrb[147].mxu0 }
 0x8ca   :  { %v3166_v32 = vmax.f32 %v3105_v49, 0.0 }
 0x8cb   :  { %v3182_v58 = vpack.c.bf16 %v3168_v60, %v3167_v28 }
 0x8cc   :  { %v3181_v6 = vpack.c.bf16 %v3166_v32, %v3165_v2 }
 0x8ce   :  { %v4639_v27 = vpop.f32.mrb[148].mxu0  ;;  %4665 = vmatprep.mubr.bf16.mxu1 %v3181_v6 }
 0x8cf   :  { %v3118_v33 = vpop.f32.mrb[149].mxu0  ;;  %4666 = vmatmul.mubr.bf16.vlgmr.msra.gmra.mrb[144].mxu1 %v3182_v58  ;;  %v3171_v20 = vmax.f32 %v4639_v27, 0.0 }
 0x8d0   :  { %4714 = vmatpush3.bf16.msra.mxu1 %v6346_v9  ;;  %v4640_v42 = vpop.f32.mrb[150].mxu0  ;;  %v3169_v48 = vmax.f32 %v3118_v33, 0.0 }
 0x8d1   :  { %v3172_v37 = vmax.f32 %v4640_v42, 0.0  ;;  %v3121_v12 = vpop.f32.mrb[151].mxu0  ;;  %4715 = vmatprep.subr.bf16.mxu1 %v6351_v31 }
 0x8d2   :  { %v3170_v35 = vmax.f32 %v3121_v12, 0.0 }
 0x8d3   :  { %v3184_v47 = vpack.c.bf16 %v3172_v37, %v3171_v20 }
 0x8d4   :  { %v3183_v8 = vpack.c.bf16 %v3170_v35, %v3169_v48  ;;  %4716 = vmatpush3.bf16.msra.mxu1 %v6351_v31  ;;  %v6497_v48 = vld [vmem:[%s6550_s7] ss:$0 sm:$0xff]  ;;  %s4926_s7 = smov [#allocation7]  }
 0x8d5   :  { %4717 = vmatprep.subr.bf16.mxu1 %v6359_v59  ;;  %s3603_s22 = sshll.u32 %s4926_s7, 4  ;;  %s3604_s22 = int_to_ptr.vmem [resolvable:$true] %s3603_s22 }
 0x8d6   :  { %v4643_v1 = vpop.f32.mrb[152].mxu0  ;;  %4669 = vmatprep.mubr.bf16.mxu1 %v3183_v8  ;;  %s4894_s23 = scalar_lea.vmem %s3604_s22, 4096  ;;  %p4899_p3 = scmp.lt.s32.totalorder %s3604_s22, %s3604_s22 }
 0x8d7   :  { %v3134_v44 = vpop.f32.mrb[153].mxu0  ;;  %4670 = vmatmul.mubr.bf16.gmra.mrb[148].mxu1 %v3184_v47  ;;  %v3175_v63 = vmax.f32 %v4643_v1, 0.0  ;;  %p4895_p2 = scmp.ne.s32.totalorder %s3604_s22, %s4894_s23  ;;  %p4900_p4 = scmp.lt.s32.totalorder %s4894_s23, %s4894_s23 }
 0x8d8   :  { %4718 = vmatpush3.bf16.msra.mxu1 %v6359_v59  ;;  %v4644_v9 = vpop.f32.mrb[154].mxu0  ;;  %v3173_v4 = vmax.f32 %v3134_v44, 0.0 }
 0x8d9   :  { %v3176_v38 = vmax.f32 %v4644_v9, 0.0  ;;  %v3137_v5 = vpop.f32.mrb[155].mxu0  ;;  %4719 = vmatprep.subr.bf16.mxu1 %v6366_v24  ;;  %p4901_p5 = por %p4900_p4, %p4899_p3 }
 0x8da   :  { %v3174_v40 = vmax.f32 %v3137_v5, 0.0 }
 0x8db   :  { %v3186_v13 = vpack.c.bf16 %v3176_v38, %v3175_v63  ;;  %p4902_p6 = pnand %p4901_p5, %p4895_p2 }
 0x8dc   :  { %v3185_v29 = vpack.c.bf16 %v3174_v40, %v3173_v4  ;;  %4720 = vmatpush3.bf16.msra.mxu1 %v6366_v24 }
 0x8dd   :  { %4721 = vmatprep.subr.bf16.mxu1 %v6373_v19 }
 0x8de   :  { %v4647_v31 = vpop.f32.mrb[156].mxu0  ;;  %4673 = vmatprep.mubr.bf16.mxu1 %v3185_v29 }
 0x8df   :  { %v3150_v14 = vpop.f32.mrb[157].mxu0  ;;  %4674 = vmatmul.mubr.bf16.gmra.mrb[152].mxu1 %v3186_v13  ;;  %v3179_v50 = vmax.f32 %v4647_v31, 0.0 }
 0x8e0   :  { %4722 = vmatpush3.bf16.msra.mxu1 %v6373_v19  ;;  %v4648_v59 = vpop.f32.mrb[158].mxu0  ;;  %v3177_v15 = vmax.f32 %v3150_v14, 0.0 }
 0x8e1   :  { %v3180_v56 = vmax.f32 %v4648_v59, 0.0  ;;  %v3153_v10 = vpop.f32.mrb[159].mxu0  ;;  %4723 = vmatprep.subr.bf16.mxu1 %v6380_v11 }
 0x8e2   :  { %v3178_v22 = vmax.f32 %v3153_v10, 0.0 }
 0x8e3   :  { %v3188_v16 = vpack.c.bf16 %v3180_v56, %v3179_v50 }
 0x8e4   :  { %v3187_v39 = vpack.c.bf16 %v3178_v22, %v3177_v15  ;;  %4724 = vmatpush3.bf16.msra.mxu1 %v6380_v11 }
 0x8e5   :  { %4725 = vmatprep.subr.bf16.mxu1 %v6467_v0 }
 0x8e6   :  { %4677 = vmatprep.mubr.bf16.mxu1 %v3187_v39  ;;  %v4699_v24 = vpop.f32.mrb[160].mxu0 }
 0x8e7   :  { %4678 = vmatmul.mubr.bf16.gmra.mrb[156].mxu1 %v3188_v16  ;;  %v3398_v45 = vpop.f32.mrb[161].mxu0  ;;  %v3463_v34 = vmax.f32 %v4699_v24, 0.0 }
 0x8e8   :  { %4726 = vmatpush3.bf16.msra.mxu1 %v6467_v0  ;;  %v4700_v19 = vpop.f32.mrb[162].mxu0  ;;  %v3461_v55 = vmax.f32 %v3398_v45, 0.0 }
 0x8e9   :  { %v3464_v25 = vmax.f32 %v4700_v19, 0.0  ;;  %v3401_v17 = vpop.f32.mrb[163].mxu0  ;;  %4727 = vmatprep.subr.bf16.mxu1 %v6474_v61 }
 0x8ea   :  { %v3462_v51 = vmax.f32 %v3401_v17, 0.0 }
 0x8eb   :  { %v3478_v30 = vpack.c.bf16 %v3464_v25, %v3463_v34 }
 0x8ec   :  { %v3477_v46 = vpack.c.bf16 %v3462_v51, %v3461_v55  ;;  %4728 = vmatpush3.bf16.msra.mxu1 %v6474_v61 }
 0x8ee   :  { %v4703_v11 = vpop.f32.mrb[164].mxu0  ;;  %4729 = vmatprep.mubr.bf16.mxu1 %v3477_v46 }
 0x8ef   :  { %v3414_v7 = vpop.f32.mrb[165].mxu0  ;;  %4730 = vmatmul.mubr.bf16.vlgmr.msra.gmra.mrb[160].mxu1 %v3478_v30  ;;  %v3467_v52 = vmax.f32 %v4703_v11, 0.0 }
 0x8f0   :  { %v4704_v3 = vpop.f32.mrb[166].mxu0  ;;  %v3465_v54 = vmax.f32 %v3414_v7, 0.0 }
 0x8f1   :  { %v3468_v18 = vmax.f32 %v4704_v3, 0.0  ;;  %v3417_v26 = vpop.f32.mrb[167].mxu0 }
 0x8f2   :  { %v3466_v21 = vmax.f32 %v3417_v26, 0.0 }
 0x8f3   :  { %v3480_v36 = vpack.c.bf16 %v3468_v18, %v3467_v52 }
 0x8f4   :  { %v3479_v57 = vpack.c.bf16 %v3466_v21, %v3465_v54 }
 0x8f6   :  { %v4707_v41 = vpop.f32.mrb[168].mxu0  ;;  %4733 = vmatprep.mubr.bf16.mxu1 %v3479_v57 }
 0x8f7   :  { %v3430_v23 = vpop.f32.mrb[169].mxu0  ;;  %4734 = vmatmul.mubr.bf16.gmra.mrb[164].mxu1 %v3480_v36  ;;  %v3471_v43 = vmax.f32 %v4707_v41, 0.0 }
 0x8f8   :  { %v4708_v0 = vpop.f32.mrb[170].mxu0  ;;  %v3469_v53 = vmax.f32 %v3430_v23, 0.0 }
 0x8f9   :  { %v3472_v62 = vmax.f32 %v4708_v0, 0.0  ;;  %v3433_v61 = vpop.f32.mrb[171].mxu0 }
 0x8fa   :  { %v3470_v28 = vmax.f32 %v3433_v61, 0.0 }
 0x8fb   :  { %v3482_v60 = vpack.c.bf16 %v3472_v62, %v3471_v43 }
 0x8fc   :  { %v3481_v49 = vpack.c.bf16 %v3470_v28, %v3469_v53 }
 0x8fe   :  { %v4711_v2 = vpop.f32.mrb[172].mxu0  ;;  %4737 = vmatprep.mubr.bf16.mxu1 %v3481_v49 }
 0x8ff   :  { %v3446_v32 = vpop.f32.mrb[173].mxu0  ;;  %4738 = vmatmul.mubr.bf16.gmra.mrb[168].mxu1 %v3482_v60  ;;  %v3475_v6 = vmax.f32 %v4711_v2, 0.0 }
 0x900   :  { %v4712_v58 = vpop.f32.mrb[174].mxu0  ;;  %v3473_v42 = vmax.f32 %v3446_v32, 0.0 }
 0x901   :  { %v3476_v27 = vmax.f32 %v4712_v58, 0.0  ;;  %v3449_v33 = vpop.f32.mrb[175].mxu0 }
 0x902   :  { %v3474_v20 = vmax.f32 %v3449_v33, 0.0 }
 0x903   :  { %v3484_v37 = vpack.c.bf16 %v3476_v27, %v3475_v6 }
 0x904   :  { %v3483_v12 = vpack.c.bf16 %v3474_v20, %v3473_v42 }
 0x906   :  { %4741 = vmatprep.mubr.bf16.mxu1 %v3483_v12 }
 0x907   :  { %4742 = vmatmul.mubr.bf16.gmra.mrb[172].mxu1 %v3484_v37 }
 0x9a2   :  { %v4667_v35 = vpop.f32.mrb[144].mxu1 }
 0x9a3   :  { %v3286_v47 = vadd.f32 %v4667_v35, %v6497_v48  ;;  %v3277_v8 = vpop.f32.mrb[145].mxu1 }
 0x9a4   :  { %v3278_v1 = vadd.f32 %v6497_v48, %v3277_v8  ;;  %v4668_v44 = vpop.f32.mrb[146].mxu1 }
 0x9a5   :  { %3342 = vst [vmem:[#allocation7 + $0x10] sm:$0xff] %v3286_v47  ;;  %v3289_v9 = vadd.f32 %v4668_v44, %v6497_v48  ;;  %v3280_v63 = vpop.f32.mrb[147].mxu1 }
 0x9a6   :  { %3340 = vst [vmem:[#allocation7] sm:$0xff] %v3278_v1  ;;  %v3281_v38 = vadd.f32 %v6497_v48, %v3280_v63 }
 0x9a7   :  { %3343 = vst [vmem:[#allocation7 + $0x18] sm:$0xff] %v3289_v9 }
 0x9a8   :  { %3341 = vst [vmem:[#allocation7 + $0x8] sm:$0xff] %v3281_v38 }
 0x9aa   :  { %v4671_v5 = vpop.f32.mrb[148].mxu1 }
 0x9ab   :  { %v3302_v4 = vadd.f32 %v4671_v5, %v6497_v48  ;;  %v3293_v40 = vpop.f32.mrb[149].mxu1 }
 0x9ac   :  { %v3294_v13 = vadd.f32 %v6497_v48, %v3293_v40  ;;  %v4672_v29 = vpop.f32.mrb[150].mxu1 }
 0x9ad   :  { %3346 = vst [vmem:[#allocation7 + $0x30] sm:$0xff] %v3302_v4  ;;  %v3305_v31 = vadd.f32 %v4672_v29, %v6497_v48  ;;  %v3296_v14 = vpop.f32.mrb[151].mxu1 }
 0x9ae   :  { %3344 = vst [vmem:[#allocation7 + $0x20] sm:$0xff] %v3294_v13  ;;  %v3297_v59 = vadd.f32 %v6497_v48, %v3296_v14 }
 0x9af   :  { %3347 = vst [vmem:[#allocation7 + $0x38] sm:$0xff] %v3305_v31 }
 0x9b0   :  { %3345 = vst [vmem:[#allocation7 + $0x28] sm:$0xff] %v3297_v59 }
 0x9b2   :  { %v4675_v50 = vpop.f32.mrb[152].mxu1 }
 0x9b3   :  { %v3318_v56 = vadd.f32 %v4675_v50, %v6497_v48  ;;  %v3309_v10 = vpop.f32.mrb[153].mxu1 }
 0x9b4   :  { %v3310_v15 = vadd.f32 %v6497_v48, %v3309_v10  ;;  %v4676_v22 = vpop.f32.mrb[154].mxu1 }
 0x9b5   :  { %3350 = vst [vmem:[#allocation7 + $0x50] sm:$0xff] %v3318_v56  ;;  %v3321_v16 = vadd.f32 %v4676_v22, %v6497_v48  ;;  %v3312_v39 = vpop.f32.mrb[155].mxu1 }
 0x9b6   :  { %3348 = vst [vmem:[#allocation7 + $0x40] sm:$0xff] %v3310_v15  ;;  %v3313_v24 = vadd.f32 %v6497_v48, %v3312_v39 }
 0x9b7   :  { %3351 = vst [vmem:[#allocation7 + $0x58] sm:$0xff] %v3321_v16 }
 0x9b8   :  { %3349 = vst [vmem:[#allocation7 + $0x48] sm:$0xff] %v3313_v24 }
 0x9ba   :  { %v4679_v45 = vpop.f32.mrb[156].mxu1 }
 0x9bb   :  { %v3334_v19 = vadd.f32 %v4679_v45, %v6497_v48  ;;  %v3325_v34 = vpop.f32.mrb[157].mxu1 }
 0x9bc   :  { %v3326_v25 = vadd.f32 %v6497_v48, %v3325_v34  ;;  %v4680_v17 = vpop.f32.mrb[158].mxu1 }
 0x9bd   :  { %3354 = vst [vmem:[#allocation7 + $0x70] sm:$0xff] %v3334_v19  ;;  %v3337_v55 = vadd.f32 %v4680_v17, %v6497_v48  ;;  %v3328_v51 = vpop.f32.mrb[159].mxu1 }
 0x9be   :  { %3352 = vst [vmem:[#allocation7 + $0x60] sm:$0xff] %v3326_v25  ;;  %v3329_v30 = vadd.f32 %v6497_v48, %v3328_v51 }
 0x9bf   :  { %3355 = vst [vmem:[#allocation7 + $0x78] sm:$0xff] %v3337_v55 }
 0x9c0   :  { %3353 = vst [vmem:[#allocation7 + $0x68] sm:$0xff] %v3329_v30 }
 0x9c2   :  { %v4731_v46 = vpop.f32.mrb[160].mxu1 }
 0x9c3   :  { %v3528_v11 = vadd.f32 %v4731_v46, %v6497_v48  ;;  %v3519_v7 = vpop.f32.mrb[161].mxu1 }
 0x9c4   :  { %v3520_v3 = vadd.f32 %v6497_v48, %v3519_v7  ;;  %v4732_v52 = vpop.f32.mrb[162].mxu1 }
 0x9c5   :  { %3584 = vst [vmem:[#allocation7 + $0x90] sm:$0xff] %v3528_v11  ;;  %v3531_v18 = vadd.f32 %v4732_v52, %v6497_v48  ;;  %v3522_v26 = vpop.f32.mrb[163].mxu1 }
 0x9c6   :  { %3582 = vst [vmem:[#allocation7 + $0x80] sm:$0xff] %v3520_v3  ;;  %v3523_v54 = vadd.f32 %v6497_v48, %v3522_v26 }
 0x9c7   :  { %3585 = vst [vmem:[#allocation7 + $0x98] sm:$0xff] %v3531_v18 }
 0x9c8   :  { %3583 = vst [vmem:[#allocation7 + $0x88] sm:$0xff] %v3523_v54 }
 0x9ca   :  { %v4735_v21 = vpop.f32.mrb[164].mxu1 }
 0x9cb   :  { %v3544_v36 = vadd.f32 %v4735_v21, %v6497_v48  ;;  %v3535_v57 = vpop.f32.mrb[165].mxu1 }
 0x9cc   :  { %v3536_v41 = vadd.f32 %v6497_v48, %v3535_v57  ;;  %v4736_v23 = vpop.f32.mrb[166].mxu1 }
 0x9cd   :  { %3588 = vst [vmem:[#allocation7 + $0xb0] sm:$0xff] %v3544_v36  ;;  %v3547_v0 = vadd.f32 %v4736_v23, %v6497_v48  ;;  %v3538_v43 = vpop.f32.mrb[167].mxu1 }
 0x9ce   :  { %3586 = vst [vmem:[#allocation7 + $0xa0] sm:$0xff] %v3536_v41  ;;  %v3539_v62 = vadd.f32 %v6497_v48, %v3538_v43 }
 0x9cf   :  { %3589 = vst [vmem:[#allocation7 + $0xb8] sm:$0xff] %v3547_v0 }
 0x9d0   :  { %3587 = vst [vmem:[#allocation7 + $0xa8] sm:$0xff] %v3539_v62 }
 0x9d2   :  { %v4739_v61 = vpop.f32.mrb[168].mxu1 }
 0x9d3   :  { %v3560_v53 = vadd.f32 %v4739_v61, %v6497_v48  ;;  %v3551_v28 = vpop.f32.mrb[169].mxu1 }
 0x9d4   :  { %v3552_v60 = vadd.f32 %v6497_v48, %v3551_v28  ;;  %v4740_v49 = vpop.f32.mrb[170].mxu1 }
 0x9d5   :  { %3592 = vst [vmem:[#allocation7 + $0xd0] sm:$0xff] %v3560_v53  ;;  %v3563_v2 = vadd.f32 %v4740_v49, %v6497_v48  ;;  %v3554_v32 = vpop.f32.mrb[171].mxu1 }
 0x9d6   :  { %3590 = vst [vmem:[#allocation7 + $0xc0] sm:$0xff] %v3552_v60  ;;  %v3555_v58 = vadd.f32 %v6497_v48, %v3554_v32 }
 0x9d7   :  { %3593 = vst [vmem:[#allocation7 + $0xd8] sm:$0xff] %v3563_v2 }
 0x9d8   :  { %3591 = vst [vmem:[#allocation7 + $0xc8] sm:$0xff] %v3555_v58 }
 0x9da   :  { %v4743_v6 = vpop.f32.mrb[172].mxu1 }
 0x9db   :  { %v3576_v27 = vadd.f32 %v4743_v6, %v6497_v48  ;;  %v3567_v33 = vpop.f32.mrb[173].mxu1 }
 0x9dc   :  { %v3568_v42 = vadd.f32 %v6497_v48, %v3567_v33  ;;  %v4744_v20 = vpop.f32.mrb[174].mxu1 }
 0x9dd   :  { %3596 = vst [vmem:[#allocation7 + $0xf0] sm:$0xff] %v3576_v27  ;;  %v3579_v37 = vadd.f32 %v4744_v20, %v6497_v48  ;;  %v3570_v12 = vpop.f32.mrb[175].mxu1 }
 0x9de   :  { %3594 = vst [vmem:[#allocation7 + $0xe0] sm:$0xff] %v3568_v42  ;;  %v3571_v35 = vadd.f32 %v6497_v48, %v3570_v12 }
 0x9df   :  { %3597 = vst [vmem:[#allocation7 + $0xf8] sm:$0xff] %v3579_v37 }
 0x9e0   :  { %3595 = vst [vmem:[#allocation7 + $0xe8] sm:$0xff] %v3571_v35 }
 0x9e1   :  { %4905 = shalt.err (!%p4902_p6)
}
 0x9e2   :  { %s4906_s26 = scalar_lea.hbm %s6551_s8, 4096 }
 0x9e3   :  { %p4907_p7 = scmp.ne.s32.totalorder %s6551_s8, %s4906_s26  ;;  %p4910_p8 = scmp.lt.u32.totalorder %s4906_s26, %s6551_s8 }
 0x9e5   :  { %p4912_p9 = pnand %p4910_p8, %p4907_p7 }
 0x9e7   :  { %4915 = shalt.err (!%p4912_p9)
}
 0x9e8   :  { %s4927_s30 = smov 128   ;;  %s4928_s9 = smov 8  }
 0x9e9   :  { %3609 = dma.vmem_to_hbm [thread:$0]  %s3604_s22, 4096, %s6551_s8, [#allocation4], %s4927_s30, %s4927_s30, %s4928_s9  }
 0x9ea   :  { %4920 = dma.done.wait [#allocation4], 4096  }
 0x9eb   :  { %4921 = vsyncadd [#allocation4], 4294963200 }
 0x9ec   :  { %3613 = vsyncpa [#allocation3], 1 }
 0x9ed   :  { %3614 = vsyncpa [#allocation6], 1 }
 0x9ee   :  { %3615 = vsyncpa [#allocation4], 1 }

</bundles_post_ra>
